<compile_context>
chip_gen: v5e
topology: v5e:2x2
jax: 0.10.0
libtpu: 0.0.40
codegen_flags: <defaults>
</compile_context>

<pallas_src>
import jax
import jax.numpy as jnp
from jax import lax
from jax.experimental import pallas as pl
from jax.experimental.pallas import tpu as pltpu

_MIB = 1024 * 1024


def _vmem_limit(nbytes, *, floor=16 * _MIB, cap=48 * _MIB):
    """Explicit scoped-VMEM request sized to the real footprint (+50% margin)."""
    return int(max(floor, min(int(nbytes * 1.5), cap)))


# ---------------------------------------------------------------------------
# Kernel 1: hoisted input projection for one layer, both directions.
#   gx = x2d @ W_ih_both + (b_ih + b_hh)_both        (T*B, 8H)
# Tiled along M = T*B; full-width N (= 8H) per MXU pass; bf16 operands.
# ---------------------------------------------------------------------------
def _input_proj_kernel(x_ref, w_ref, b_ref, out_ref):
    out_ref[...] = (
        jnp.dot(x_ref[...].astype(jnp.bfloat16), w_ref[...],
                preferred_element_type=jnp.float32)
        + b_ref[...]
    )


def _input_projection(h_tm, wih_t_bf16, bias_f32):
    """h_tm: (T, B, E) f32 -> gx: (T, B, 8H) f32."""
    T, B, E = h_tm.shape
    G8 = wih_t_bf16.shape[1]
    M = T * B
    x2d = h_tm.reshape(M, E)

    # >=512-row M tiles when possible; single full block otherwise.
    tm = M if M <= 512 else 512
    grid_m = pl.cdiv(M, tm)

    vmem = _vmem_limit(2 * (tm * E * 4 + tm * G8 * 4) + E * G8 * 2 + G8 * 4)

    gx2d = pl.pallas_call(
        _input_proj_kernel,
        out_shape=jax.ShapeDtypeStruct((M, G8), jnp.float32),
        grid_spec=pltpu.PrefetchScalarGridSpec(
            num_scalar_prefetch=0,
            grid=(grid_m,),
            in_specs=[
                pl.BlockSpec((tm, E), lambda i: (i, 0)),     # activation tile
                pl.BlockSpec((E, G8), lambda i: (0, 0)),     # fused W_ih (bf16)
                pl.BlockSpec((1, G8), lambda i: (0, 0)),     # fused bias (f32)
            ],
            out_specs=pl.BlockSpec((tm, G8), lambda i: (i, 0)),
        ),
        compiler_params=pltpu.CompilerParams(
            dimension_semantics=("parallel",),
            vmem_limit_bytes=vmem),
    )(x2d, wih_t_bf16, bias_f32)
    return gx2d.reshape(T, B, G8)


# ---------------------------------------------------------------------------
# Kernel 2: fused bidirectional LSTM recurrence for a whole layer.
# Grid over batch chunks ("parallel"); the per-chunk gate slab and output
# block are VMEM-resident; an unrolled in-kernel loop walks the T timesteps.
# Gate column order is [i | f | o | g] per direction; the two directions share
# one per-step MXU matmul via a block-diagonal recurrent weight.
# ---------------------------------------------------------------------------
def _bilstm_recurrence_kernel(gx_ref, whh_ref, out_ref, h_scr, cf_scr, cb_scr):
    T = gx_ref.shape[0]
    H = whh_ref.shape[0] // 2
    G = 4 * H

    # States are re-initialized every grid step (each batch chunk independent).
    h_scr[...] = jnp.zeros_like(h_scr)
    cf_scr[...] = jnp.zeros_like(cf_scr)
    cb_scr[...] = jnp.zeros_like(cb_scr)

    whh = whh_ref[...]                       # (2H, 8H) bf16, grid-invariant

    def cell(pre, c_prev):
        # One sigmoid over (B, 3H) = [i|f|o], one tanh over (B, H) = [g].
        sig = jax.nn.sigmoid(pre[:, 0:3 * H])
        g_g = jnp.tanh(pre[:, 3 * H:4 * H])
        i_g = sig[:, 0:H]
        f_g = sig[:, H:2 * H]
        o_g = sig[:, 2 * H:3 * H]
        c_new = f_g * c_prev + i_g * g_g
        h_new = o_g * jnp.tanh(c_new)
        return h_new, c_new

    def step(t, carry):
        tb = T - 1 - t

        # ONE fused MXU pass for both directions:
        #   [h_f | h_b] (B, 2H) @ blockdiag(W_hh_f, W_hh_b) (2H, 8H)
        hh = jnp.dot(h_scr[...].astype(jnp.bfloat16), whh,
                     preferred_element_type=jnp.float32)         # (B, 8H)

        pre_f = gx_ref[t, :, 0:G] + hh[:, 0:G]                   # fwd @ t
        pre_b = gx_ref[tb, :, G:2 * G] + hh[:, G:2 * G]          # bwd @ T-1-t

        h_f, c_f = cell(pre_f, cf_scr[...])
        h_b, c_b = cell(pre_b, cb_scr[...])

        h_scr[:, 0:H] = h_f
        h_scr[:, H:2 * H] = h_b
        cf_scr[...] = c_f
        cb_scr[...] = c_b

        # Direct per-step writes into the VMEM-resident output block; backward
        # direction writes time index T-1-t (no wrapper reversal/concat).
        out_ref[t, :, 0:H] = h_f
        out_ref[tb, :, H:2 * H] = h_b
        return carry

    # Unrolled loop gives the LLO scheduler room to overlap the two directions'
    # MXU-pop / EUP latency with the other's gate math.
    unroll = True if T <= 32 else 4
    lax.fori_loop(0, T, step, 0, unroll=unroll)


def _choose_batch_chunk(T, B, H, budget_bytes=24 * _MIB):
    """Largest batch chunk whose double-buffered gx + out blocks fit budget."""
    per_row = 2 * T * (8 * H + 2 * H) * 4          # gx f32 + out f32, x2 buffers
    if B * per_row <= budget_bytes or B <= 8:
        # TODO(synk): configs where even a B<=8 chunk exceeds VMEM need
        # T-chunked HBM streaming of gx (manual double-buffer); not needed
        # at these sizes.
        return B
    bc = max(8, int(budget_bytes // per_row) // 8 * 8)
    return min(bc, B)


def _bilstm_recurrence(gx, whh_bd_bf16):
    """gx: (T, B, 8H) f32 gate pre-activations -> (T, B, 2H) f32 outputs."""
    T, B, G8 = gx.shape
    H = whh_bd_bf16.shape[0] // 2
    bc = _choose_batch_chunk(T, B, H)
    grid_b = pl.cdiv(B, bc)

    vmem = _vmem_limit(
        2 * (T * bc * G8 * 4 + T * bc * 2 * H * 4)   # gx + out blocks (x2 buf)
        + 2 * H * G8 * 2                             # whh bf16
        + bc * 2 * H * 4 + 2 * bc * H * 4)           # h/c state scratch

    return pl.pallas_call(
        _bilstm_recurrence_kernel,
        out_shape=jax.ShapeDtypeStruct((T, B, 2 * H), jnp.float32),
        grid_spec=pltpu.PrefetchScalarGridSpec(
            num_scalar_prefetch=0,
            grid=(grid_b,),
            in_specs=[
                pl.BlockSpec((T, bc, G8), lambda j: (0, j, 0)),     # gates
                pl.BlockSpec((2 * H, G8), lambda j: (0, 0)),        # W_hh blockdiag
            ],
            out_specs=pl.BlockSpec((T, bc, 2 * H), lambda j: (0, j, 0)),
            scratch_shapes=[
                pltpu.VMEM((bc, 2 * H), jnp.float32),   # [h_f | h_b]
                pltpu.VMEM((bc, H), jnp.float32),       # c_f
                pltpu.VMEM((bc, H), jnp.float32),       # c_b
            ],
        ),
        compiler_params=pltpu.CompilerParams(
            dimension_semantics=("parallel",),
            vmem_limit_bytes=vmem),
    )(gx, whh_bd_bf16)


# ---------------------------------------------------------------------------
# Parameter construction (deterministic; matches nn.LSTM / nn.Embedding
# shapes).  PyTorch gate row order [i, f, g, o] is remapped to the kernel's
# [i, f, o, g]; input weights/biases are direction-fused; recurrent weights
# are pre-built as a block-diagonal (2H, 8H); MXU operands pre-cast to bf16.
# ---------------------------------------------------------------------------
def _gate_perm(H):
    return jnp.concatenate([
        jnp.arange(0, 2 * H),        # i, f
        jnp.arange(3 * H, 4 * H),    # o
        jnp.arange(2 * H, 3 * H),    # g
    ])


def make_params(key, vocab_size, embed_size, num_units, num_layers):
    H = num_units
    keys = jax.random.split(key, 1 + num_layers * 2 * 4)
    kidx = 0

    def nxt():
        nonlocal kidx
        k = keys[kidx]
        kidx += 1
        return k

    embedding = jax.random.normal(nxt(), (vocab_size, embed_size),
                                  dtype=jnp.float32) * 0.1

    perm = _gate_perm(H)
    layers = []
    for layer in range(num_layers):
        in_size = embed_size if layer == 0 else 2 * H
        scale = 1.0 / float(jnp.sqrt(H))
        dirs = []
        for _ in range(2):  # forward, backward
            w_ih = jax.random.uniform(nxt(), (4 * H, in_size),
                                      minval=-scale, maxval=scale,
                                      dtype=jnp.float32)
            w_hh = jax.random.uniform(nxt(), (4 * H, H),
                                      minval=-scale, maxval=scale,
                                      dtype=jnp.float32)
            b_ih = jax.random.uniform(nxt(), (4 * H,),
                                      minval=-scale, maxval=scale,
                                      dtype=jnp.float32)
            b_hh = jax.random.uniform(nxt(), (4 * H,),
                                      minval=-scale, maxval=scale,
                                      dtype=jnp.float32)
            # Remap gate rows: PyTorch [i,f,g,o] -> kernel [i,f,o,g].
            dirs.append((w_ih[perm], w_hh[perm], (b_ih + b_hh)[perm]))

        (wih_f, whh_f, b_f), (wih_b, whh_b, b_b) = dirs

        # Direction-fused input weights (E, 8H) in bf16; fused bias in f32.
        wih_t = jnp.concatenate([wih_f.T, wih_b.T], axis=1).astype(jnp.bfloat16)
        bias = jnp.concatenate([b_f, b_b]).reshape(1, 8 * H).astype(jnp.float32)

        # Block-diagonal recurrent weight (2H, 8H) -> one fused per-step matmul.
        whh_bd = jnp.zeros((2 * H, 8 * H), jnp.float32)
        whh_bd = whh_bd.at[0:H, 0:4 * H].set(whh_f.T)
        whh_bd = whh_bd.at[H:2 * H, 4 * H:8 * H].set(whh_b.T)

        layers.append(dict(wih_t=wih_t, bias=bias,
                           whh_bd=whh_bd.astype(jnp.bfloat16)))
    return dict(embedding=embedding, layers=layers)


# ---------------------------------------------------------------------------
# rnn_layer: mask + embedding/gate-table gather (glue) + per-layer Pallas
# projection + Pallas fused bidirectional recurrence.
# ---------------------------------------------------------------------------
def create_mask(seq_lens, batch_size, max_len):
    pos = jnp.arange(max_len, dtype=jnp.int32)[None, :]
    return (pos < seq_lens[:, None]).astype(jnp.uint8)       # (B, T), batch_first


@jax.jit
def rnn_layer(params, x, seq_lens):
    B, T = x.shape
    mask = create_mask(seq_lens, B, T)
    x_tm = x.T                                               # (T, B) time-major ids

    layers = params["layers"]
    vocab, _ = params["embedding"].shape
    G8_l0 = layers[0]["wih_t"].shape[1]

    if vocab * G8_l0 * 4 <= 4 * _MIB:
        # Layer 0 fast path: pre-project the embedding table once
        # (vocab, 8H) = E @ W_ih + b via the same Pallas kernel, then gather.
        gx_table = _input_projection(params["embedding"][:, None, :],
                                     layers[0]["wih_t"], layers[0]["bias"])
        gx = jnp.take(gx_table[:, 0, :], x_tm, axis=0)       # (T, B, 8H) glue gather
    else:
        embed = jnp.take(params["embedding"], x_tm, axis=0)  # (T, B, E) glue gather
        gx = _input_projection(embed, layers[0]["wih_t"], layers[0]["bias"])

    h = _bilstm_recurrence(gx, layers[0]["whh_bd"])          # (T, B, 2H)

    for lp in layers[1:]:
        gx = _input_projection(h, lp["wih_t"], lp["bias"])   # (T, B, 8H)
        h = _bilstm_recurrence(gx, lp["whh_bd"])             # (T, B, 2H)

    emissions = jnp.transpose(h, (1, 0, 2))                  # (B, T, 2*num_units)
    return emissions, mask


def rnncrf_forward(params, x, y, seq_lens):
    """Mirrors RNNCRF.forward up to the (undefined) CRF head."""
    emissions, mask = rnn_layer(params, x, seq_lens)
    # TODO(synk): loss, path = CRF(emissions, y, mask) -- CRF source not given.
    return emissions, mask


# ---------------------------------------------------------------------------
if __name__ == "__main__":
    vocab_size = 50
    embed_size = 32
    num_units = 32
    num_layers = 2
    num_tag = 5          # only needed by the (absent) CRF / linear head
    batch_size = 2
    seq_len = 8

    key = jax.random.PRNGKey(0)
    k_par, k_x, k_y = jax.random.split(key, 3)

    params = make_params(k_par, vocab_size, embed_size, num_units, num_layers)

    x = jax.random.randint(k_x, (batch_size, seq_len), 0, vocab_size,
                           dtype=jnp.int32)
    y = jax.random.randint(k_y, (batch_size, seq_len), 0, num_tag,
                           dtype=jnp.int32)
    seq_lens = jnp.array([8, 5], dtype=jnp.int32)

    emissions, mask = rnncrf_forward(params, x, y, seq_lens)
    emissions = jax.block_until_ready(emissions)
    mask = jax.block_until_ready(mask)

    assert emissions.shape == (batch_size, seq_len, 2 * num_units)
    assert mask.shape == (batch_size, seq_len)
    assert mask.dtype == jnp.uint8
    assert bool(jnp.all(jnp.isfinite(emissions)))

    print("KERNEL_OK")
</pallas_src>

<mosaic_0001>
module attributes {stable_mosaic.version = 11 : i64} {
  func.func @_input_proj_kernel(%arg0: i32, %arg1: memref<50x32xf32, #tpu.memory_space<vmem>>, %arg2: memref<32x256xbf16, #tpu.memory_space<vmem>>, %arg3: memref<1x256xf32, #tpu.memory_space<vmem>>, %arg4: memref<50x256xf32, #tpu.memory_space<vmem>>) attributes {dimension_semantics = [#tpu.dimension_semantics<parallel>], iteration_bounds = array<i64: 1>, scalar_prefetch = 0 : i64, scratch_operands = 0 : i64, tpu.core_type = #tpu.core_type<tc>, window_params = [{transform_indices = @transform_0, window_bounds = array<i64: 50, 32>}, {pipeline_mode = #tpu.pipeline_mode<synchronous>, transform_indices = @transform_1, window_bounds = array<i64: 32, 256>}, {pipeline_mode = #tpu.pipeline_mode<synchronous>, transform_indices = @transform_2, window_bounds = array<i64: 1, 256>}, {transform_indices = @transform_3, window_bounds = array<i64: 50, 256>}]} {
    %c0 = arith.constant 0 : index
    %c0_0 = arith.constant 0 : index
    %0 = vector.load %arg1[%c0, %c0_0] : memref<50x32xf32, #tpu.memory_space<vmem>>, vector<50x32xf32>
    %1 = arith.truncf %0 : vector<50x32xf32> to vector<50x32xbf16>
    %c0_1 = arith.constant 0 : index
    %c0_2 = arith.constant 0 : index
    %2 = vector.load %arg2[%c0_1, %c0_2] : memref<32x256xbf16, #tpu.memory_space<vmem>>, vector<32x256xbf16>
    %cst = arith.constant dense<0.000000e+00> : vector<50x256xf32>
    %3 = tpu.matmul %1, %2, %cst {dimension_numbers = #tpu.dot_dimension_numbers<[1], [0], [0], [1], [0, 0, 1, 1], [], []>} : vector<50x32xbf16>, vector<32x256xbf16>, vector<50x256xf32> -> vector<50x256xf32>
    %c0_3 = arith.constant 0 : index
    %c0_4 = arith.constant 0 : index
    %4 = vector.load %arg3[%c0_3, %c0_4] : memref<1x256xf32, #tpu.memory_space<vmem>>, vector<1x256xf32>
    %5 = vector.broadcast %4 : vector<1x256xf32> to vector<50x256xf32>
    %6 = arith.addf %3, %5 : vector<50x256xf32>
    %c0_5 = arith.constant 0 : index
    %c0_6 = arith.constant 0 : index
    %7 = vector.load %arg4[%c0_5, %c0_6] : memref<50x256xf32, #tpu.memory_space<vmem>>, vector<50x256xf32>
    tpu.vector_store %arg4[%c0_5, %c0_6], %6 {strides = array<i32>} : memref<50x256xf32, #tpu.memory_space<vmem>>, vector<50x256xf32>,
    return
  }
  func.func @transform_0(%arg0: i32) -> (i32, i32) {
    %c0_i32 = arith.constant 0 : i32
    %c0_i32_0 = arith.constant 0 : i32
    return %arg0, %c0_i32 : i32, i32
  }
  func.func @transform_1(%arg0: i32) -> (i32, i32) {
    %c0_i32 = arith.constant 0 : i32
    %c0_i32_0 = arith.constant 0 : i32
    %c0_i32_1 = arith.constant 0 : i32
    return %c0_i32, %c0_i32_0 : i32, i32
  }
  func.func @transform_2(%arg0: i32) -> (i32, i32) {
    %c0_i32 = arith.constant 0 : i32
    %c0_i32_0 = arith.constant 0 : i32
    %c0_i32_1 = arith.constant 0 : i32
    return %c0_i32, %c0_i32_0 : i32, i32
  }
  func.func @transform_3(%arg0: i32) -> (i32, i32) {
    %c0_i32 = arith.constant 0 : i32
    %c0_i32_0 = arith.constant 0 : i32
    return %arg0, %c0_i32 : i32, i32
  }
}

module attributes {stable_mosaic.version = 11 : i64} {
  func.func @_input_proj_kernel(%arg0: i32, %arg1: memref<16x64xf32, #tpu.memory_space<vmem>>, %arg2: memref<64x256xbf16, #tpu.memory_space<vmem>>, %arg3: memref<1x256xf32, #tpu.memory_space<vmem>>, %arg4: memref<16x256xf32, #tpu.memory_space<vmem>>) attributes {dimension_semantics = [#tpu.dimension_semantics<parallel>], iteration_bounds = array<i64: 1>, scalar_prefetch = 0 : i64, scratch_operands = 0 : i64, tpu.core_type = #tpu.core_type<tc>, window_params = [{transform_indices = @transform_0, window_bounds = array<i64: 16, 64>}, {pipeline_mode = #tpu.pipeline_mode<synchronous>, transform_indices = @transform_1, window_bounds = array<i64: 64, 256>}, {pipeline_mode = #tpu.pipeline_mode<synchronous>, transform_indices = @transform_2, window_bounds = array<i64: 1, 256>}, {transform_indices = @transform_3, window_bounds = array<i64: 16, 256>}]} {
    %c0 = arith.constant 0 : index
    %c0_0 = arith.constant 0 : index
    %0 = vector.load %arg1[%c0, %c0_0] : memref<16x64xf32, #tpu.memory_space<vmem>>, vector<16x64xf32>
    %1 = arith.truncf %0 : vector<16x64xf32> to vector<16x64xbf16>
    %c0_1 = arith.constant 0 : index
    %c0_2 = arith.constant 0 : index
    %2 = vector.load %arg2[%c0_1, %c0_2] : memref<64x256xbf16, #tpu.memory_space<vmem>>, vector<64x256xbf16>
    %cst = arith.constant dense<0.000000e+00> : vector<16x256xf32>
    %3 = tpu.matmul %1, %2, %cst {dimension_numbers = #tpu.dot_dimension_numbers<[1], [0], [0], [1], [0, 0, 1, 1], [], []>} : vector<16x64xbf16>, vector<64x256xbf16>, vector<16x256xf32> -> vector<16x256xf32>
    %c0_3 = arith.constant 0 : index
    %c0_4 = arith.constant 0 : index
    %4 = vector.load %arg3[%c0_3, %c0_4] : memref<1x256xf32, #tpu.memory_space<vmem>>, vector<1x256xf32>
    %5 = vector.broadcast %4 : vector<1x256xf32> to vector<16x256xf32>
    %6 = arith.addf %3, %5 : vector<16x256xf32>
    %c0_5 = arith.constant 0 : index
    %c0_6 = arith.constant 0 : index
    %7 = vector.load %arg4[%c0_5, %c0_6] : memref<16x256xf32, #tpu.memory_space<vmem>>, vector<16x256xf32>
    tpu.vector_store %arg4[%c0_5, %c0_6], %6 {strides = array<i32>} : memref<16x256xf32, #tpu.memory_space<vmem>>, vector<16x256xf32>,
    return
  }
  func.func @transform_0(%arg0: i32) -> (i32, i32) {
    %c0_i32 = arith.constant 0 : i32
    %c0_i32_0 = arith.constant 0 : i32
    return %arg0, %c0_i32 : i32, i32
  }
  func.func @transform_1(%arg0: i32) -> (i32, i32) {
    %c0_i32 = arith.constant 0 : i32
    %c0_i32_0 = arith.constant 0 : i32
    %c0_i32_1 = arith.constant 0 : i32
    return %c0_i32, %c0_i32_0 : i32, i32
  }
  func.func @transform_2(%arg0: i32) -> (i32, i32) {
    %c0_i32 = arith.constant 0 : i32
    %c0_i32_0 = arith.constant 0 : i32
    %c0_i32_1 = arith.constant 0 : i32
    return %c0_i32, %c0_i32_0 : i32, i32
  }
  func.func @transform_3(%arg0: i32) -> (i32, i32) {
    %c0_i32 = arith.constant 0 : i32
    %c0_i32_0 = arith.constant 0 : i32
    return %arg0, %c0_i32 : i32, i32
  }
}

module attributes {stable_mosaic.version = 11 : i64} {
  func.func @_bilstm_recurrence_kernel(%arg0: i32, %arg1: memref<8x2x256xf32, #tpu.memory_space<vmem>>, %arg2: memref<64x256xbf16, #tpu.memory_space<vmem>>, %arg3: memref<8x2x64xf32, #tpu.memory_space<vmem>>, %arg4: memref<2x64xf32, #tpu.memory_space<vmem>>, %arg5: memref<2x32xf32, #tpu.memory_space<vmem>>, %arg6: memref<2x32xf32, #tpu.memory_space<vmem>>) attributes {dimension_semantics = [#tpu.dimension_semantics<parallel>], iteration_bounds = array<i64: 1>, scalar_prefetch = 0 : i64, scratch_operands = 3 : i64, tpu.core_type = #tpu.core_type<tc>, window_params = [{transform_indices = @transform_0, window_bounds = array<i64: 8, 2, 256>}, {pipeline_mode = #tpu.pipeline_mode<synchronous>, transform_indices = @transform_1, window_bounds = array<i64: 64, 256>}, {transform_indices = @transform_2, window_bounds = array<i64: 8, 2, 64>}]} {
    %cst = arith.constant 0.000000e+00 : f32
    %0 = vector.broadcast %cst : f32 to vector<2x64xf32>
    %c0 = arith.constant 0 : index
    %c0_0 = arith.constant 0 : index
    %1 = vector.load %arg4[%c0, %c0_0] : memref<2x64xf32, #tpu.memory_space<vmem>>, vector<2x64xf32>
    tpu.vector_store %arg4[%c0, %c0_0], %0 {strides = array<i32>} : memref<2x64xf32, #tpu.memory_space<vmem>>, vector<2x64xf32>,
    %cst_1 = arith.constant 0.000000e+00 : f32
    %2 = vector.broadcast %cst_1 : f32 to vector<2x32xf32>
    %c0_2 = arith.constant 0 : index
    %c0_3 = arith.constant 0 : index
    %3 = vector.load %arg5[%c0_2, %c0_3] : memref<2x32xf32, #tpu.memory_space<vmem>>, vector<2x32xf32>
    tpu.vector_store %arg5[%c0_2, %c0_3], %2 {strides = array<i32>} : memref<2x32xf32, #tpu.memory_space<vmem>>, vector<2x32xf32>,
    %cst_4 = arith.constant 0.000000e+00 : f32
    %4 = vector.broadcast %cst_4 : f32 to vector<2x32xf32>
    %c0_5 = arith.constant 0 : index
    %c0_6 = arith.constant 0 : index
    %5 = vector.load %arg6[%c0_5, %c0_6] : memref<2x32xf32, #tpu.memory_space<vmem>>, vector<2x32xf32>
    tpu.vector_store %arg6[%c0_5, %c0_6], %4 {strides = array<i32>} : memref<2x32xf32, #tpu.memory_space<vmem>>, vector<2x32xf32>,
    %c0_7 = arith.constant 0 : index
    %c0_8 = arith.constant 0 : index
    %6 = vector.load %arg2[%c0_7, %c0_8] : memref<64x256xbf16, #tpu.memory_space<vmem>>, vector<64x256xbf16>
    %c0_i32 = arith.constant 0 : i32
    %c7_i32 = arith.constant 7 : i32
    %7 = arith.subi %c7_i32, %c0_i32 : i32
    %c0_9 = arith.constant 0 : index
    %c0_10 = arith.constant 0 : index
    %8 = vector.load %arg4[%c0_9, %c0_10] : memref<2x64xf32, #tpu.memory_space<vmem>>, vector<2x64xf32>
    %9 = arith.truncf %8 : vector<2x64xf32> to vector<2x64xbf16>
    %cst_11 = arith.constant dense<0.000000e+00> : vector<2x256xf32>
    %10 = tpu.matmul %9, %6, %cst_11 {dimension_numbers = #tpu.dot_dimension_numbers<[1], [0], [0], [1], [0, 0, 1, 1], [], []>} : vector<2x64xbf16>, vector<64x256xbf16>, vector<2x256xf32> -> vector<2x256xf32>
    %11 = arith.index_cast %c0_i32 : i32 to index
    %c0_12 = arith.constant 0 : index
    %c0_13 = arith.constant 0 : index
    %12 = vector.load %arg1[%11, %c0_12, %c0_13] : memref<8x2x256xf32, #tpu.memory_space<vmem>>, vector<1x2x128xf32>
    %13 = vector.shape_cast %12 : vector<1x2x128xf32> to vector<2x128xf32>
    %14 = vector.extract_strided_slice %10 {offsets = [0, 0], sizes = [2, 128], strides = [1, 1]} : vector<2x256xf32> to vector<2x128xf32>
    %15 = arith.addf %13, %14 : vector<2x128xf32>
    %16 = arith.index_cast %7 : i32 to index
    %c0_14 = arith.constant 0 : index
    %c128 = arith.constant 128 : index
    %17 = vector.load %arg1[%16, %c0_14, %c128] : memref<8x2x256xf32, #tpu.memory_space<vmem>>, vector<1x2x128xf32>
    %18 = vector.shape_cast %17 : vector<1x2x128xf32> to vector<2x128xf32>
    %19 = vector.extract_strided_slice %10 {offsets = [0, 128], sizes = [2, 128], strides = [1, 1]} : vector<2x256xf32> to vector<2x128xf32>
    %20 = arith.addf %18, %19 : vector<2x128xf32>
    %c0_15 = arith.constant 0 : index
    %c0_16 = arith.constant 0 : index
    %21 = vector.load %arg5[%c0_15, %c0_16] : memref<2x32xf32, #tpu.memory_space<vmem>>, vector<2x32xf32>
    %22 = vector.extract_strided_slice %15 {offsets = [0, 0], sizes = [2, 96], strides = [1, 1]} : vector<2x128xf32> to vector<2x96xf32>
    %23 = arith.negf %22 : vector<2x96xf32>
    %24 = math.exp %23 : vector<2x96xf32>
    %cst_17 = arith.constant 1.000000e+00 : f32
    %25 = vector.broadcast %cst_17 : f32 to vector<2x96xf32>
    %26 = arith.addf %25, %24 : vector<2x96xf32>
    %27 = arith.divf %25, %26 : vector<2x96xf32>
    %28 = vector.extract_strided_slice %15 {offsets = [0, 96], sizes = [2, 32], strides = [1, 1]} : vector<2x128xf32> to vector<2x32xf32>
    %29 = math.tanh %28 : vector<2x32xf32>
    %30 = vector.extract_strided_slice %27 {offsets = [0, 0], sizes = [2, 32], strides = [1, 1]} : vector<2x96xf32> to vector<2x32xf32>
    %31 = vector.extract_strided_slice %27 {offsets = [0, 32], sizes = [2, 32], strides = [1, 1]} : vector<2x96xf32> to vector<2x32xf32>
    %32 = vector.extract_strided_slice %27 {offsets = [0, 64], sizes = [2, 32], strides = [1, 1]} : vector<2x96xf32> to vector<2x32xf32>
    %33 = arith.mulf %31, %21 : vector<2x32xf32>
    %34 = arith.mulf %30, %29 : vector<2x32xf32>
    %35 = arith.addf %33, %34 : vector<2x32xf32>
    %36 = math.tanh %35 : vector<2x32xf32>
    %37 = arith.mulf %32, %36 : vector<2x32xf32>
    %c0_18 = arith.constant 0 : index
    %c0_19 = arith.constant 0 : index
    %38 = vector.load %arg6[%c0_18, %c0_19] : memref<2x32xf32, #tpu.memory_space<vmem>>, vector<2x32xf32>
    %39 = vector.extract_strided_slice %20 {offsets = [0, 0], sizes = [2, 96], strides = [1, 1]} : vector<2x128xf32> to vector<2x96xf32>
    %40 = arith.negf %39 : vector<2x96xf32>
    %41 = math.exp %40 : vector<2x96xf32>
    %cst_20 = arith.constant 1.000000e+00 : f32
    %42 = vector.broadcast %cst_20 : f32 to vector<2x96xf32>
    %43 = arith.addf %42, %41 : vector<2x96xf32>
    %44 = arith.divf %42, %43 : vector<2x96xf32>
    %45 = vector.extract_strided_slice %20 {offsets = [0, 96], sizes = [2, 32], strides = [1, 1]} : vector<2x128xf32> to vector<2x32xf32>
    %46 = math.tanh %45 : vector<2x32xf32>
    %47 = vector.extract_strided_slice %44 {offsets = [0, 0], sizes = [2, 32], strides = [1, 1]} : vector<2x96xf32> to vector<2x32xf32>
    %48 = vector.extract_strided_slice %44 {offsets = [0, 32], sizes = [2, 32], strides = [1, 1]} : vector<2x96xf32> to vector<2x32xf32>
    %49 = vector.extract_strided_slice %44 {offsets = [0, 64], sizes = [2, 32], strides = [1, 1]} : vector<2x96xf32> to vector<2x32xf32>
    %50 = arith.mulf %48, %38 : vector<2x32xf32>
    %51 = arith.mulf %47, %46 : vector<2x32xf32>
    %52 = arith.addf %50, %51 : vector<2x32xf32>
    %53 = math.tanh %52 : vector<2x32xf32>
    %54 = arith.mulf %49, %53 : vector<2x32xf32>
    %c0_21 = arith.constant 0 : index
    %c0_22 = arith.constant 0 : index
    %55 = vector.load %arg4[%c0_21, %c0_22] : memref<2x64xf32, #tpu.memory_space<vmem>>, vector<2x32xf32>
    tpu.vector_store %arg4[%c0_21, %c0_22], %37 {strides = array<i32>} : memref<2x64xf32, #tpu.memory_space<vmem>>, vector<2x32xf32>,
    %c0_23 = arith.constant 0 : index
    %c32 = arith.constant 32 : index
    %56 = vector.load %arg4[%c0_23, %c32] : memref<2x64xf32, #tpu.memory_space<vmem>>, vector<2x32xf32>
    tpu.vector_store %arg4[%c0_23, %c32], %54 {strides = array<i32>} : memref<2x64xf32, #tpu.memory_space<vmem>>, vector<2x32xf32>,
    %c0_24 = arith.constant 0 : index
    %c0_25 = arith.constant 0 : index
    %57 = vector.load %arg5[%c0_24, %c0_25] : memref<2x32xf32, #tpu.memory_space<vmem>>, vector<2x32xf32>
    tpu.vector_store %arg5[%c0_24, %c0_25], %35 {strides = array<i32>} : memref<2x32xf32, #tpu.memory_space<vmem>>, vector<2x32xf32>,
    %c0_26 = arith.constant 0 : index
    %c0_27 = arith.constant 0 : index
    %58 = vector.load %arg6[%c0_26, %c0_27] : memref<2x32xf32, #tpu.memory_space<vmem>>, vector<2x32xf32>
    tpu.vector_store %arg6[%c0_26, %c0_27], %52 {strides = array<i32>} : memref<2x32xf32, #tpu.memory_space<vmem>>, vector<2x32xf32>,
    %59 = arith.index_cast %c0_i32 : i32 to index
    %c0_28 = arith.constant 0 : index
    %c0_29 = arith.constant 0 : index
    %60 = vector.load %arg3[%59, %c0_28, %c0_29] : memref<8x2x64xf32, #tpu.memory_space<vmem>>, vector<1x2x32xf32>
    %61 = vector.shape_cast %60 : vector<1x2x32xf32> to vector<2x32xf32>
    %62 = vector.shape_cast %37 : vector<2x32xf32> to vector<1x2x32xf32>
    tpu.vector_store %arg3[%59, %c0_28, %c0_29], %62 {strides = array<i32>} : memref<8x2x64xf32, #tpu.memory_space<vmem>>, vector<1x2x32xf32>,
    %63 = arith.index_cast %7 : i32 to index
    %c0_30 = arith.constant 0 : index
    %c32_31 = arith.constant 32 : index
    %64 = vector.load %arg3[%63, %c0_30, %c32_31] : memref<8x2x64xf32, #tpu.memory_space<vmem>>, vector<1x2x32xf32>
    %65 = vector.shape_cast %64 : vector<1x2x32xf32> to vector<2x32xf32>
    %66 = vector.shape_cast %54 : vector<2x32xf32> to vector<1x2x32xf32>
    tpu.vector_store %arg3[%63, %c0_30, %c32_31], %66 {strides = array<i32>} : memref<8x2x64xf32, #tpu.memory_space<vmem>>, vector<1x2x32xf32>,
    %c1_i32 = arith.constant 1 : i32
    %c7_i32_32 = arith.constant 7 : i32
    %67 = arith.subi %c7_i32_32, %c1_i32 : i32
    %c0_33 = arith.constant 0 : index
    %c0_34 = arith.constant 0 : index
    %68 = vector.load %arg4[%c0_33, %c0_34] : memref<2x64xf32, #tpu.memory_space<vmem>>, vector<2x64xf32>
    %69 = arith.truncf %68 : vector<2x64xf32> to vector<2x64xbf16>
    %cst_35 = arith.constant dense<0.000000e+00> : vector<2x256xf32>
    %70 = tpu.matmul %69, %6, %cst_35 {dimension_numbers = #tpu.dot_dimension_numbers<[1], [0], [0], [1], [0, 0, 1, 1], [], []>} : vector<2x64xbf16>, vector<64x256xbf16>, vector<2x256xf32> -> vector<2x256xf32>
    %71 = arith.index_cast %c1_i32 : i32 to index
    %c0_36 = arith.constant 0 : index
    %c0_37 = arith.constant 0 : index
    %72 = vector.load %arg1[%71, %c0_36, %c0_37] : memref<8x2x256xf32, #tpu.memory_space<vmem>>, vector<1x2x128xf32>
    %73 = vector.shape_cast %72 : vector<1x2x128xf32> to vector<2x128xf32>
    %74 = vector.extract_strided_slice %70 {offsets = [0, 0], sizes = [2, 128], strides = [1, 1]} : vector<2x256xf32> to vector<2x128xf32>
    %75 = arith.addf %73, %74 : vector<2x128xf32>
    %76 = arith.index_cast %67 : i32 to index
    %c0_38 = arith.constant 0 : index
    %c128_39 = arith.constant 128 : index
    %77 = vector.load %arg1[%76, %c0_38, %c128_39] : memref<8x2x256xf32, #tpu.memory_space<vmem>>, vector<1x2x128xf32>
    %78 = vector.shape_cast %77 : vector<1x2x128xf32> to vector<2x128xf32>
    %79 = vector.extract_strided_slice %70 {offsets = [0, 128], sizes = [2, 128], strides = [1, 1]} : vector<2x256xf32> to vector<2x128xf32>
    %80 = arith.addf %78, %79 : vector<2x128xf32>
    %c0_40 = arith.constant 0 : index
    %c0_41 = arith.constant 0 : index
    %81 = vector.load %arg5[%c0_40, %c0_41] : memref<2x32xf32, #tpu.memory_space<vmem>>, vector<2x32xf32>
    %82 = vector.extract_strided_slice %75 {offsets = [0, 0], sizes = [2, 96], strides = [1, 1]} : vector<2x128xf32> to vector<2x96xf32>
    %83 = arith.negf %82 : vector<2x96xf32>
    %84 = math.exp %83 : vector<2x96xf32>
    %cst_42 = arith.constant 1.000000e+00 : f32
    %85 = vector.broadcast %cst_42 : f32 to vector<2x96xf32>
    %86 = arith.addf %85, %84 : vector<2x96xf32>
    %87 = arith.divf %85, %86 : vector<2x96xf32>
    %88 = vector.extract_strided_slice %75 {offsets = [0, 96], sizes = [2, 32], strides = [1, 1]} : vector<2x128xf32> to vector<2x32xf32>
    %89 = math.tanh %88 : vector<2x32xf32>
    %90 = vector.extract_strided_slice %87 {offsets = [0, 0], sizes = [2, 32], strides = [1, 1]} : vector<2x96xf32> to vector<2x32xf32>
    %91 = vector.extract_strided_slice %87 {offsets = [0, 32], sizes = [2, 32], strides = [1, 1]} : vector<2x96xf32> to vector<2x32xf32>
    %92 = vector.extract_strided_slice %87 {offsets = [0, 64], sizes = [2, 32], strides = [1, 1]} : vector<2x96xf32> to vector<2x32xf32>
    %93 = arith.mulf %91, %81 : vector<2x32xf32>
    %94 = arith.mulf %90, %89 : vector<2x32xf32>
    %95 = arith.addf %93, %94 : vector<2x32xf32>
    %96 = math.tanh %95 : vector<2x32xf32>
    %97 = arith.mulf %92, %96 : vector<2x32xf32>
    %c0_43 = arith.constant 0 : index
    %c0_44 = arith.constant 0 : index
    %98 = vector.load %arg6[%c0_43, %c0_44] : memref<2x32xf32, #tpu.memory_space<vmem>>, vector<2x32xf32>
    %99 = vector.extract_strided_slice %80 {offsets = [0, 0], sizes = [2, 96], strides = [1, 1]} : vector<2x128xf32> to vector<2x96xf32>
    %100 = arith.negf %99 : vector<2x96xf32>
    %101 = math.exp %100 : vector<2x96xf32>
    %cst_45 = arith.constant 1.000000e+00 : f32
    %102 = vector.broadcast %cst_45 : f32 to vector<2x96xf32>
    %103 = arith.addf %102, %101 : vector<2x96xf32>
    %104 = arith.divf %102, %103 : vector<2x96xf32>
    %105 = vector.extract_strided_slice %80 {offsets = [0, 96], sizes = [2, 32], strides = [1, 1]} : vector<2x128xf32> to vector<2x32xf32>
    %106 = math.tanh %105 : vector<2x32xf32>
    %107 = vector.extract_strided_slice %104 {offsets = [0, 0], sizes = [2, 32], strides = [1, 1]} : vector<2x96xf32> to vector<2x32xf32>
    %108 = vector.extract_strided_slice %104 {offsets = [0, 32], sizes = [2, 32], strides = [1, 1]} : vector<2x96xf32> to vector<2x32xf32>
    %109 = vector.extract_strided_slice %104 {offsets = [0, 64], sizes = [2, 32], strides = [1, 1]} : vector<2x96xf32> to vector<2x32xf32>
    %110 = arith.mulf %108, %98 : vector<2x32xf32>
    %111 = arith.mulf %107, %106 : vector<2x32xf32>
    %112 = arith.addf %110, %111 : vector<2x32xf32>
    %113 = math.tanh %112 : vector<2x32xf32>
    %114 = arith.mulf %109, %113 : vector<2x32xf32>
    %c0_46 = arith.constant 0 : index
    %c0_47 = arith.constant 0 : index
    %115 = vector.load %arg4[%c0_46, %c0_47] : memref<2x64xf32, #tpu.memory_space<vmem>>, vector<2x32xf32>
    tpu.vector_store %arg4[%c0_46, %c0_47], %97 {strides = array<i32>} : memref<2x64xf32, #tpu.memory_space<vmem>>, vector<2x32xf32>,
    %c0_48 = arith.constant 0 : index
    %c32_49 = arith.constant 32 : index
    %116 = vector.load %arg4[%c0_48, %c32_49] : memref<2x64xf32, #tpu.memory_space<vmem>>, vector<2x32xf32>
    tpu.vector_store %arg4[%c0_48, %c32_49], %114 {strides = array<i32>} : memref<2x64xf32, #tpu.memory_space<vmem>>, vector<2x32xf32>,
    %c0_50 = arith.constant 0 : index
    %c0_51 = arith.constant 0 : index
    %117 = vector.load %arg5[%c0_50, %c0_51] : memref<2x32xf32, #tpu.memory_space<vmem>>, vector<2x32xf32>
    tpu.vector_store %arg5[%c0_50, %c0_51], %95 {strides = array<i32>} : memref<2x32xf32, #tpu.memory_space<vmem>>, vector<2x32xf32>,
    %c0_52 = arith.constant 0 : index
    %c0_53 = arith.constant 0 : index
    %118 = vector.load %arg6[%c0_52, %c0_53] : memref<2x32xf32, #tpu.memory_space<vmem>>, vector<2x32xf32>
    tpu.vector_store %arg6[%c0_52, %c0_53], %112 {strides = array<i32>} : memref<2x32xf32, #tpu.memory_space<vmem>>, vector<2x32xf32>,
    %119 = arith.index_cast %c1_i32 : i32 to index
    %c0_54 = arith.constant 0 : index
    %c0_55 = arith.constant 0 : index
    %120 = vector.load %arg3[%119, %c0_54, %c0_55] : memref<8x2x64xf32, #tpu.memory_space<vmem>>, vector<1x2x32xf32>
    %121 = vector.shape_cast %120 : vector<1x2x32xf32> to vector<2x32xf32>
    %122 = vector.shape_cast %97 : vector<2x32xf32> to vector<1x2x32xf32>
    tpu.vector_store %arg3[%119, %c0_54, %c0_55], %122 {strides = array<i32>} : memref<8x2x64xf32, #tpu.memory_space<vmem>>, vector<1x2x32xf32>,
    %123 = arith.index_cast %67 : i32 to index
    %c0_56 = arith.constant 0 : index
    %c32_57 = arith.constant 32 : index
    %124 = vector.load %arg3[%123, %c0_56, %c32_57] : memref<8x2x64xf32, #tpu.memory_space<vmem>>, vector<1x2x32xf32>
    %125 = vector.shape_cast %124 : vector<1x2x32xf32> to vector<2x32xf32>
    %126 = vector.shape_cast %114 : vector<2x32xf32> to vector<1x2x32xf32>
    tpu.vector_store %arg3[%123, %c0_56, %c32_57], %126 {strides = array<i32>} : memref<8x2x64xf32, #tpu.memory_space<vmem>>, vector<1x2x32xf32>,
    %c2_i32 = arith.constant 2 : i32
    %c7_i32_58 = arith.constant 7 : i32
    %127 = arith.subi %c7_i32_58, %c2_i32 : i32
    %c0_59 = arith.constant 0 : index
    %c0_60 = arith.constant 0 : index
    %128 = vector.load %arg4[%c0_59, %c0_60] : memref<2x64xf32, #tpu.memory_space<vmem>>, vector<2x64xf32>
    %129 = arith.truncf %128 : vector<2x64xf32> to vector<2x64xbf16>
    %cst_61 = arith.constant dense<0.000000e+00> : vector<2x256xf32>
    %130 = tpu.matmul %129, %6, %cst_61 {dimension_numbers = #tpu.dot_dimension_numbers<[1], [0], [0], [1], [0, 0, 1, 1], [], []>} : vector<2x64xbf16>, vector<64x256xbf16>, vector<2x256xf32> -> vector<2x256xf32>
    %131 = arith.index_cast %c2_i32 : i32 to index
    %c0_62 = arith.constant 0 : index
    %c0_63 = arith.constant 0 : index
    %132 = vector.load %arg1[%131, %c0_62, %c0_63] : memref<8x2x256xf32, #tpu.memory_space<vmem>>, vector<1x2x128xf32>
    %133 = vector.shape_cast %132 : vector<1x2x128xf32> to vector<2x128xf32>
    %134 = vector.extract_strided_slice %130 {offsets = [0, 0], sizes = [2, 128], strides = [1, 1]} : vector<2x256xf32> to vector<2x128xf32>
    %135 = arith.addf %133, %134 : vector<2x128xf32>
    %136 = arith.index_cast %127 : i32 to index
    %c0_64 = arith.constant 0 : index
    %c128_65 = arith.constant 128 : index
    %137 = vector.load %arg1[%136, %c0_64, %c128_65] : memref<8x2x256xf32, #tpu.memory_space<vmem>>, vector<1x2x128xf32>
    %138 = vector.shape_cast %137 : vector<1x2x128xf32> to vector<2x128xf32>
    %139 = vector.extract_strided_slice %130 {offsets = [0, 128], sizes = [2, 128], strides = [1, 1]} : vector<2x256xf32> to vector<2x128xf32>
    %140 = arith.addf %138, %139 : vector<2x128xf32>
    %c0_66 = arith.constant 0 : index
    %c0_67 = arith.constant 0 : index
    %141 = vector.load %arg5[%c0_66, %c0_67] : memref<2x32xf32, #tpu.memory_space<vmem>>, vector<2x32xf32>
    %142 = vector.extract_strided_slice %135 {offsets = [0, 0], sizes = [2, 96], strides = [1, 1]} : vector<2x128xf32> to vector<2x96xf32>
    %143 = arith.negf %142 : vector<2x96xf32>
    %144 = math.exp %143 : vector<2x96xf32>
    %cst_68 = arith.constant 1.000000e+00 : f32
    %145 = vector.broadcast %cst_68 : f32 to vector<2x96xf32>
    %146 = arith.addf %145, %144 : vector<2x96xf32>
    %147 = arith.divf %145, %146 : vector<2x96xf32>
    %148 = vector.extract_strided_slice %135 {offsets = [0, 96], sizes = [2, 32], strides = [1, 1]} : vector<2x128xf32> to vector<2x32xf32>
    %149 = math.tanh %148 : vector<2x32xf32>
    %150 = vector.extract_strided_slice %147 {offsets = [0, 0], sizes = [2, 32], strides = [1, 1]} : vector<2x96xf32> to vector<2x32xf32>
    %151 = vector.extract_strided_slice %147 {offsets = [0, 32], sizes = [2, 32], strides = [1, 1]} : vector<2x96xf32> to vector<2x32xf32>
    %152 = vector.extract_strided_slice %147 {offsets = [0, 64], sizes = [2, 32], strides = [1, 1]} : vector<2x96xf32> to vector<2x32xf32>
    %153 = arith.mulf %151, %141 : vector<2x32xf32>
    %154 = arith.mulf %150, %149 : vector<2x32xf32>
    %155 = arith.addf %153, %154 : vector<2x32xf32>
    %156 = math.tanh %155 : vector<2x32xf32>
    %157 = arith.mulf %152, %156 : vector<2x32xf32>
    %c0_69 = arith.constant 0 : index
    %c0_70 = arith.constant 0 : index
    %158 = vector.load %arg6[%c0_69, %c0_70] : memref<2x32xf32, #tpu.memory_space<vmem>>, vector<2x32xf32>
    %159 = vector.extract_strided_slice %140 {offsets = [0, 0], sizes = [2, 96], strides = [1, 1]} : vector<2x128xf32> to vector<2x96xf32>
    %160 = arith.negf %159 : vector<2x96xf32>
    %161 = math.exp %160 : vector<2x96xf32>
    %cst_71 = arith.constant 1.000000e+00 : f32
    %162 = vector.broadcast %cst_71 : f32 to vector<2x96xf32>
    %163 = arith.addf %162, %161 : vector<2x96xf32>
    %164 = arith.divf %162, %163 : vector<2x96xf32>
    %165 = vector.extract_strided_slice %140 {offsets = [0, 96], sizes = [2, 32], strides = [1, 1]} : vector<2x128xf32> to vector<2x32xf32>
    %166 = math.tanh %165 : vector<2x32xf32>
    %167 = vector.extract_strided_slice %164 {offsets = [0, 0], sizes = [2, 32], strides = [1, 1]} : vector<2x96xf32> to vector<2x32xf32>
    %168 = vector.extract_strided_slice %164 {offsets = [0, 32], sizes = [2, 32], strides = [1, 1]} : vector<2x96xf32> to vector<2x32xf32>
    %169 = vector.extract_strided_slice %164 {offsets = [0, 64], sizes = [2, 32], strides = [1, 1]} : vector<2x96xf32> to vector<2x32xf32>
    %170 = arith.mulf %168, %158 : vector<2x32xf32>
    %171 = arith.mulf %167, %166 : vector<2x32xf32>
    %172 = arith.addf %170, %171 : vector<2x32xf32>
    %173 = math.tanh %172 : vector<2x32xf32>
    %174 = arith.mulf %169, %173 : vector<2x32xf32>
    %c0_72 = arith.constant 0 : index
    %c0_73 = arith.constant 0 : index
    %175 = vector.load %arg4[%c0_72, %c0_73] : memref<2x64xf32, #tpu.memory_space<vmem>>, vector<2x32xf32>
    tpu.vector_store %arg4[%c0_72, %c0_73], %157 {strides = array<i32>} : memref<2x64xf32, #tpu.memory_space<vmem>>, vector<2x32xf32>,
    %c0_74 = arith.constant 0 : index
    %c32_75 = arith.constant 32 : index
    %176 = vector.load %arg4[%c0_74, %c32_75] : memref<2x64xf32, #tpu.memory_space<vmem>>, vector<2x32xf32>
    tpu.vector_store %arg4[%c0_74, %c32_75], %174 {strides = array<i32>} : memref<2x64xf32, #tpu.memory_space<vmem>>, vector<2x32xf32>,
    %c0_76 = arith.constant 0 : index
    %c0_77 = arith.constant 0 : index
    %177 = vector.load %arg5[%c0_76, %c0_77] : memref<2x32xf32, #tpu.memory_space<vmem>>, vector<2x32xf32>
    tpu.vector_store %arg5[%c0_76, %c0_77], %155 {strides = array<i32>} : memref<2x32xf32, #tpu.memory_space<vmem>>, vector<2x32xf32>,
    %c0_78 = arith.constant 0 : index
    %c0_79 = arith.constant 0 : index
    %178 = vector.load %arg6[%c0_78, %c0_79] : memref<2x32xf32, #tpu.memory_space<vmem>>, vector<2x32xf32>
    tpu.vector_store %arg6[%c0_78, %c0_79], %172 {strides = array<i32>} : memref<2x32xf32, #tpu.memory_space<vmem>>, vector<2x32xf32>,
    %179 = arith.index_cast %c2_i32 : i32 to index
    %c0_80 = arith.constant 0 : index
    %c0_81 = arith.constant 0 : index
    %180 = vector.load %arg3[%179, %c0_80, %c0_81] : memref<8x2x64xf32, #tpu.memory_space<vmem>>, vector<1x2x32xf32>
    %181 = vector.shape_cast %180 : vector<1x2x32xf32> to vector<2x32xf32>
    %182 = vector.shape_cast %157 : vector<2x32xf32> to vector<1x2x32xf32>
    tpu.vector_store %arg3[%179, %c0_80, %c0_81], %182 {strides = array<i32>} : memref<8x2x64xf32, #tpu.memory_space<vmem>>, vector<1x2x32xf32>,
    %183 = arith.index_cast %127 : i32 to index
    %c0_82 = arith.constant 0 : index
    %c32_83 = arith.constant 32 : index
    %184 = vector.load %arg3[%183, %c0_82, %c32_83] : memref<8x2x64xf32, #tpu.memory_space<vmem>>, vector<1x2x32xf32>
    %185 = vector.shape_cast %184 : vector<1x2x32xf32> to vector<2x32xf32>
    %186 = vector.shape_cast %174 : vector<2x32xf32> to vector<1x2x32xf32>
    tpu.vector_store %arg3[%183, %c0_82, %c32_83], %186 {strides = array<i32>} : memref<8x2x64xf32, #tpu.memory_space<vmem>>, vector<1x2x32xf32>,
    %c3_i32 = arith.constant 3 : i32
    %c7_i32_84 = arith.constant 7 : i32
    %187 = arith.subi %c7_i32_84, %c3_i32 : i32
    %c0_85 = arith.constant 0 : index
    %c0_86 = arith.constant 0 : index
    %188 = vector.load %arg4[%c0_85, %c0_86] : memref<2x64xf32, #tpu.memory_space<vmem>>, vector<2x64xf32>
    %189 = arith.truncf %188 : vector<2x64xf32> to vector<2x64xbf16>
    %cst_87 = arith.constant dense<0.000000e+00> : vector<2x256xf32>
    %190 = tpu.matmul %189, %6, %cst_87 {dimension_numbers = #tpu.dot_dimension_numbers<[1], [0], [0], [1], [0, 0, 1, 1], [], []>} : vector<2x64xbf16>, vector<64x256xbf16>, vector<2x256xf32> -> vector<2x256xf32>
    %191 = arith.index_cast %c3_i32 : i32 to index
    %c0_88 = arith.constant 0 : index
    %c0_89 = arith.constant 0 : index
    %192 = vector.load %arg1[%191, %c0_88, %c0_89] : memref<8x2x256xf32, #tpu.memory_space<vmem>>, vector<1x2x128xf32>
    %193 = vector.shape_cast %192 : vector<1x2x128xf32> to vector<2x128xf32>
    %194 = vector.extract_strided_slice %190 {offsets = [0, 0], sizes = [2, 128], strides = [1, 1]} : vector<2x256xf32> to vector<2x128xf32>
    %195 = arith.addf %193, %194 : vector<2x128xf32>
    %196 = arith.index_cast %187 : i32 to index
    %c0_90 = arith.constant 0 : index
    %c128_91 = arith.constant 128 : index
    %197 = vector.load %arg1[%196, %c0_90, %c128_91] : memref<8x2x256xf32, #tpu.memory_space<vmem>>, vector<1x2x128xf32>
    %198 = vector.shape_cast %197 : vector<1x2x128xf32> to vector<2x128xf32>
    %199 = vector.extract_strided_slice %190 {offsets = [0, 128], sizes = [2, 128], strides = [1, 1]} : vector<2x256xf32> to vector<2x128xf32>
    %200 = arith.addf %198, %199 : vector<2x128xf32>
    %c0_92 = arith.constant 0 : index
    %c0_93 = arith.constant 0 : index
    %201 = vector.load %arg5[%c0_92, %c0_93] : memref<2x32xf32, #tpu.memory_space<vmem>>, vector<2x32xf32>
    %202 = vector.extract_strided_slice %195 {offsets = [0, 0], sizes = [2, 96], strides = [1, 1]} : vector<2x128xf32> to vector<2x96xf32>
    %203 = arith.negf %202 : vector<2x96xf32>
    %204 = math.exp %203 : vector<2x96xf32>
    %cst_94 = arith.constant 1.000000e+00 : f32
    %205 = vector.broadcast %cst_94 : f32 to vector<2x96xf32>
    %206 = arith.addf %205, %204 : vector<2x96xf32>
    %207 = arith.divf %205, %206 : vector<2x96xf32>
    %208 = vector.extract_strided_slice %195 {offsets = [0, 96], sizes = [2, 32], strides = [1, 1]} : vector<2x128xf32> to vector<2x32xf32>
    %209 = math.tanh %208 : vector<2x32xf32>
    %210 = vector.extract_strided_slice %207 {offsets = [0, 0], sizes = [2, 32], strides = [1, 1]} : vector<2x96xf32> to vector<2x32xf32>
    %211 = vector.extract_strided_slice %207 {offsets = [0, 32], sizes = [2, 32], strides = [1, 1]} : vector<2x96xf32> to vector<2x32xf32>
    %212 = vector.extract_strided_slice %207 {offsets = [0, 64], sizes = [2, 32], strides = [1, 1]} : vector<2x96xf32> to vector<2x32xf32>
    %213 = arith.mulf %211, %201 : vector<2x32xf32>
    %214 = arith.mulf %210, %209 : vector<2x32xf32>
    %215 = arith.addf %213, %214 : vector<2x32xf32>
    %216 = math.tanh %215 : vector<2x32xf32>
    %217 = arith.mulf %212, %216 : vector<2x32xf32>
    %c0_95 = arith.constant 0 : index
    %c0_96 = arith.constant 0 : index
    %218 = vector.load %arg6[%c0_95, %c0_96] : memref<2x32xf32, #tpu.memory_space<vmem>>, vector<2x32xf32>
    %219 = vector.extract_strided_slice %200 {offsets = [0, 0], sizes = [2, 96], strides = [1, 1]} : vector<2x128xf32> to vector<2x96xf32>
    %220 = arith.negf %219 : vector<2x96xf32>
    %221 = math.exp %220 : vector<2x96xf32>
    %cst_97 = arith.constant 1.000000e+00 : f32
    %222 = vector.broadcast %cst_97 : f32 to vector<2x96xf32>
    %223 = arith.addf %222, %221 : vector<2x96xf32>
    %224 = arith.divf %222, %223 : vector<2x96xf32>
    %225 = vector.extract_strided_slice %200 {offsets = [0, 96], sizes = [2, 32], strides = [1, 1]} : vector<2x128xf32> to vector<2x32xf32>
    %226 = math.tanh %225 : vector<2x32xf32>
    %227 = vector.extract_strided_slice %224 {offsets = [0, 0], sizes = [2, 32], strides = [1, 1]} : vector<2x96xf32> to vector<2x32xf32>
    %228 = vector.extract_strided_slice %224 {offsets = [0, 32], sizes = [2, 32], strides = [1, 1]} : vector<2x96xf32> to vector<2x32xf32>
    %229 = vector.extract_strided_slice %224 {offsets = [0, 64], sizes = [2, 32], strides = [1, 1]} : vector<2x96xf32> to vector<2x32xf32>
    %230 = arith.mulf %228, %218 : vector<2x32xf32>
    %231 = arith.mulf %227, %226 : vector<2x32xf32>
    %232 = arith.addf %230, %231 : vector<2x32xf32>
    %233 = math.tanh %232 : vector<2x32xf32>
    %234 = arith.mulf %229, %233 : vector<2x32xf32>
    %c0_98 = arith.constant 0 : index
    %c0_99 = arith.constant 0 : index
    %235 = vector.load %arg4[%c0_98, %c0_99] : memref<2x64xf32, #tpu.memory_space<vmem>>, vector<2x32xf32>
    tpu.vector_store %arg4[%c0_98, %c0_99], %217 {strides = array<i32>} : memref<2x64xf32, #tpu.memory_space<vmem>>, vector<2x32xf32>,
    %c0_100 = arith.constant 0 : index
    %c32_101 = arith.constant 32 : index
    %236 = vector.load %arg4[%c0_100, %c32_101] : memref<2x64xf32, #tpu.memory_space<vmem>>, vector<2x32xf32>
    tpu.vector_store %arg4[%c0_100, %c32_101], %234 {strides = array<i32>} : memref<2x64xf32, #tpu.memory_space<vmem>>, vector<2x32xf32>,
    %c0_102 = arith.constant 0 : index
    %c0_103 = arith.constant 0 : index
    %237 = vector.load %arg5[%c0_102, %c0_103] : memref<2x32xf32, #tpu.memory_space<vmem>>, vector<2x32xf32>
    tpu.vector_store %arg5[%c0_102, %c0_103], %215 {strides = array<i32>} : memref<2x32xf32, #tpu.memory_space<vmem>>, vector<2x32xf32>,
    %c0_104 = arith.constant 0 : index
    %c0_105 = arith.constant 0 : index
    %238 = vector.load %arg6[%c0_104, %c0_105] : memref<2x32xf32, #tpu.memory_space<vmem>>, vector<2x32xf32>
    tpu.vector_store %arg6[%c0_104, %c0_105], %232 {strides = array<i32>} : memref<2x32xf32, #tpu.memory_space<vmem>>, vector<2x32xf32>,
    %239 = arith.index_cast %c3_i32 : i32 to index
    %c0_106 = arith.constant 0 : index
    %c0_107 = arith.constant 0 : index
    %240 = vector.load %arg3[%239, %c0_106, %c0_107] : memref<8x2x64xf32, #tpu.memory_space<vmem>>, vector<1x2x32xf32>
    %241 = vector.shape_cast %240 : vector<1x2x32xf32> to vector<2x32xf32>
    %242 = vector.shape_cast %217 : vector<2x32xf32> to vector<1x2x32xf32>
    tpu.vector_store %arg3[%239, %c0_106, %c0_107], %242 {strides = array<i32>} : memref<8x2x64xf32, #tpu.memory_space<vmem>>, vector<1x2x32xf32>,
    %243 = arith.index_cast %187 : i32 to index
    %c0_108 = arith.constant 0 : index
    %c32_109 = arith.constant 32 : index
    %244 = vector.load %arg3[%243, %c0_108, %c32_109] : memref<8x2x64xf32, #tpu.memory_space<vmem>>, vector<1x2x32xf32>
    %245 = vector.shape_cast %244 : vector<1x2x32xf32> to vector<2x32xf32>
    %246 = vector.shape_cast %234 : vector<2x32xf32> to vector<1x2x32xf32>
    tpu.vector_store %arg3[%243, %c0_108, %c32_109], %246 {strides = array<i32>} : memref<8x2x64xf32, #tpu.memory_space<vmem>>, vector<1x2x32xf32>,
    %c4_i32 = arith.constant 4 : i32
    %c7_i32_110 = arith.constant 7 : i32
    %247 = arith.subi %c7_i32_110, %c4_i32 : i32
    %c0_111 = arith.constant 0 : index
    %c0_112 = arith.constant 0 : index
    %248 = vector.load %arg4[%c0_111, %c0_112] : memref<2x64xf32, #tpu.memory_space<vmem>>, vector<2x64xf32>
    %249 = arith.truncf %248 : vector<2x64xf32> to vector<2x64xbf16>
    %cst_113 = arith.constant dense<0.000000e+00> : vector<2x256xf32>
    %250 = tpu.matmul %249, %6, %cst_113 {dimension_numbers = #tpu.dot_dimension_numbers<[1], [0], [0], [1], [0, 0, 1, 1], [], []>} : vector<2x64xbf16>, vector<64x256xbf16>, vector<2x256xf32> -> vector<2x256xf32>
    %251 = arith.index_cast %c4_i32 : i32 to index
    %c0_114 = arith.constant 0 : index
    %c0_115 = arith.constant 0 : index
    %252 = vector.load %arg1[%251, %c0_114, %c0_115] : memref<8x2x256xf32, #tpu.memory_space<vmem>>, vector<1x2x128xf32>
    %253 = vector.shape_cast %252 : vector<1x2x128xf32> to vector<2x128xf32>
    %254 = vector.extract_strided_slice %250 {offsets = [0, 0], sizes = [2, 128], strides = [1, 1]} : vector<2x256xf32> to vector<2x128xf32>
    %255 = arith.addf %253, %254 : vector<2x128xf32>
    %256 = arith.index_cast %247 : i32 to index
    %c0_116 = arith.constant 0 : index
    %c128_117 = arith.constant 128 : index
    %257 = vector.load %arg1[%256, %c0_116, %c128_117] : memref<8x2x256xf32, #tpu.memory_space<vmem>>, vector<1x2x128xf32>
    %258 = vector.shape_cast %257 : vector<1x2x128xf32> to vector<2x128xf32>
    %259 = vector.extract_strided_slice %250 {offsets = [0, 128], sizes = [2, 128], strides = [1, 1]} : vector<2x256xf32> to vector<2x128xf32>
    %260 = arith.addf %258, %259 : vector<2x128xf32>
    %c0_118 = arith.constant 0 : index
    %c0_119 = arith.constant 0 : index
    %261 = vector.load %arg5[%c0_118, %c0_119] : memref<2x32xf32, #tpu.memory_space<vmem>>, vector<2x32xf32>
    %262 = vector.extract_strided_slice %255 {offsets = [0, 0], sizes = [2, 96], strides = [1, 1]} : vector<2x128xf32> to vector<2x96xf32>
    %263 = arith.negf %262 : vector<2x96xf32>
    %264 = math.exp %263 : vector<2x96xf32>
    %cst_120 = arith.constant 1.000000e+00 : f32
    %265 = vector.broadcast %cst_120 : f32 to vector<2x96xf32>
    %266 = arith.addf %265, %264 : vector<2x96xf32>
    %267 = arith.divf %265, %266 : vector<2x96xf32>
    %268 = vector.extract_strided_slice %255 {offsets = [0, 96], sizes = [2, 32], strides = [1, 1]} : vector<2x128xf32> to vector<2x32xf32>
    %269 = math.tanh %268 : vector<2x32xf32>
    %270 = vector.extract_strided_slice %267 {offsets = [0, 0], sizes = [2, 32], strides = [1, 1]} : vector<2x96xf32> to vector<2x32xf32>
    %271 = vector.extract_strided_slice %267 {offsets = [0, 32], sizes = [2, 32], strides = [1, 1]} : vector<2x96xf32> to vector<2x32xf32>
    %272 = vector.extract_strided_slice %267 {offsets = [0, 64], sizes = [2, 32], strides = [1, 1]} : vector<2x96xf32> to vector<2x32xf32>
    %273 = arith.mulf %271, %261 : vector<2x32xf32>
    %274 = arith.mulf %270, %269 : vector<2x32xf32>
    %275 = arith.addf %273, %274 : vector<2x32xf32>
    %276 = math.tanh %275 : vector<2x32xf32>
    %277 = arith.mulf %272, %276 : vector<2x32xf32>
    %c0_121 = arith.constant 0 : index
    %c0_122 = arith.constant 0 : index
    %278 = vector.load %arg6[%c0_121, %c0_122] : memref<2x32xf32, #tpu.memory_space<vmem>>, vector<2x32xf32>
    %279 = vector.extract_strided_slice %260 {offsets = [0, 0], sizes = [2, 96], strides = [1, 1]} : vector<2x128xf32> to vector<2x96xf32>
    %280 = arith.negf %279 : vector<2x96xf32>
    %281 = math.exp %280 : vector<2x96xf32>
    %cst_123 = arith.constant 1.000000e+00 : f32
    %282 = vector.broadcast %cst_123 : f32 to vector<2x96xf32>
    %283 = arith.addf %282, %281 : vector<2x96xf32>
    %284 = arith.divf %282, %283 : vector<2x96xf32>
    %285 = vector.extract_strided_slice %260 {offsets = [0, 96], sizes = [2, 32], strides = [1, 1]} : vector<2x128xf32> to vector<2x32xf32>
    %286 = math.tanh %285 : vector<2x32xf32>
    %287 = vector.extract_strided_slice %284 {offsets = [0, 0], sizes = [2, 32], strides = [1, 1]} : vector<2x96xf32> to vector<2x32xf32>
    %288 = vector.extract_strided_slice %284 {offsets = [0, 32], sizes = [2, 32], strides = [1, 1]} : vector<2x96xf32> to vector<2x32xf32>
    %289 = vector.extract_strided_slice %284 {offsets = [0, 64], sizes = [2, 32], strides = [1, 1]} : vector<2x96xf32> to vector<2x32xf32>
    %290 = arith.mulf %288, %278 : vector<2x32xf32>
    %291 = arith.mulf %287, %286 : vector<2x32xf32>
    %292 = arith.addf %290, %291 : vector<2x32xf32>
    %293 = math.tanh %292 : vector<2x32xf32>
    %294 = arith.mulf %289, %293 : vector<2x32xf32>
    %c0_124 = arith.constant 0 : index
    %c0_125 = arith.constant 0 : index
    %295 = vector.load %arg4[%c0_124, %c0_125] : memref<2x64xf32, #tpu.memory_space<vmem>>, vector<2x32xf32>
    tpu.vector_store %arg4[%c0_124, %c0_125], %277 {strides = array<i32>} : memref<2x64xf32, #tpu.memory_space<vmem>>, vector<2x32xf32>,
    %c0_126 = arith.constant 0 : index
    %c32_127 = arith.constant 32 : index
    %296 = vector.load %arg4[%c0_126, %c32_127] : memref<2x64xf32, #tpu.memory_space<vmem>>, vector<2x32xf32>
    tpu.vector_store %arg4[%c0_126, %c32_127], %294 {strides = array<i32>} : memref<2x64xf32, #tpu.memory_space<vmem>>, vector<2x32xf32>,
    %c0_128 = arith.constant 0 : index
    %c0_129 = arith.constant 0 : index
    %297 = vector.load %arg5[%c0_128, %c0_129] : memref<2x32xf32, #tpu.memory_space<vmem>>, vector<2x32xf32>
    tpu.vector_store %arg5[%c0_128, %c0_129], %275 {strides = array<i32>} : memref<2x32xf32, #tpu.memory_space<vmem>>, vector<2x32xf32>,
    %c0_130 = arith.constant 0 : index
    %c0_131 = arith.constant 0 : index
    %298 = vector.load %arg6[%c0_130, %c0_131] : memref<2x32xf32, #tpu.memory_space<vmem>>, vector<2x32xf32>
    tpu.vector_store %arg6[%c0_130, %c0_131], %292 {strides = array<i32>} : memref<2x32xf32, #tpu.memory_space<vmem>>, vector<2x32xf32>,
    %299 = arith.index_cast %c4_i32 : i32 to index
    %c0_132 = arith.constant 0 : index
    %c0_133 = arith.constant 0 : index
    %300 = vector.load %arg3[%299, %c0_132, %c0_133] : memref<8x2x64xf32, #tpu.memory_space<vmem>>, vector<1x2x32xf32>
    %301 = vector.shape_cast %300 : vector<1x2x32xf32> to vector<2x32xf32>
    %302 = vector.shape_cast %277 : vector<2x32xf32> to vector<1x2x32xf32>
    tpu.vector_store %arg3[%299, %c0_132, %c0_133], %302 {strides = array<i32>} : memref<8x2x64xf32, #tpu.memory_space<vmem>>, vector<1x2x32xf32>,
    %303 = arith.index_cast %247 : i32 to index
    %c0_134 = arith.constant 0 : index
    %c32_135 = arith.constant 32 : index
    %304 = vector.load %arg3[%303, %c0_134, %c32_135] : memref<8x2x64xf32, #tpu.memory_space<vmem>>, vector<1x2x32xf32>
    %305 = vector.shape_cast %304 : vector<1x2x32xf32> to vector<2x32xf32>
    %306 = vector.shape_cast %294 : vector<2x32xf32> to vector<1x2x32xf32>
    tpu.vector_store %arg3[%303, %c0_134, %c32_135], %306 {strides = array<i32>} : memref<8x2x64xf32, #tpu.memory_space<vmem>>, vector<1x2x32xf32>,
    %c5_i32 = arith.constant 5 : i32
    %c7_i32_136 = arith.constant 7 : i32
    %307 = arith.subi %c7_i32_136, %c5_i32 : i32
    %c0_137 = arith.constant 0 : index
    %c0_138 = arith.constant 0 : index
    %308 = vector.load %arg4[%c0_137, %c0_138] : memref<2x64xf32, #tpu.memory_space<vmem>>, vector<2x64xf32>
    %309 = arith.truncf %308 : vector<2x64xf32> to vector<2x64xbf16>
    %cst_139 = arith.constant dense<0.000000e+00> : vector<2x256xf32>
    %310 = tpu.matmul %309, %6, %cst_139 {dimension_numbers = #tpu.dot_dimension_numbers<[1], [0], [0], [1], [0, 0, 1, 1], [], []>} : vector<2x64xbf16>, vector<64x256xbf16>, vector<2x256xf32> -> vector<2x256xf32>
    %311 = arith.index_cast %c5_i32 : i32 to index
    %c0_140 = arith.constant 0 : index
    %c0_141 = arith.constant 0 : index
    %312 = vector.load %arg1[%311, %c0_140, %c0_141] : memref<8x2x256xf32, #tpu.memory_space<vmem>>, vector<1x2x128xf32>
    %313 = vector.shape_cast %312 : vector<1x2x128xf32> to vector<2x128xf32>
    %314 = vector.extract_strided_slice %310 {offsets = [0, 0], sizes = [2, 128], strides = [1, 1]} : vector<2x256xf32> to vector<2x128xf32>
    %315 = arith.addf %313, %314 : vector<2x128xf32>
    %316 = arith.index_cast %307 : i32 to index
    %c0_142 = arith.constant 0 : index
    %c128_143 = arith.constant 128 : index
    %317 = vector.load %arg1[%316, %c0_142, %c128_143] : memref<8x2x256xf32, #tpu.memory_space<vmem>>, vector<1x2x128xf32>
    %318 = vector.shape_cast %317 : vector<1x2x128xf32> to vector<2x128xf32>
    %319 = vector.extract_strided_slice %310 {offsets = [0, 128], sizes = [2, 128], strides = [1, 1]} : vector<2x256xf32> to vector<2x128xf32>
    %320 = arith.addf %318, %319 : vector<2x128xf32>
    %c0_144 = arith.constant 0 : index
    %c0_145 = arith.constant 0 : index
    %321 = vector.load %arg5[%c0_144, %c0_145] : memref<2x32xf32, #tpu.memory_space<vmem>>, vector<2x32xf32>
    %322 = vector.extract_strided_slice %315 {offsets = [0, 0], sizes = [2, 96], strides = [1, 1]} : vector<2x128xf32> to vector<2x96xf32>
    %323 = arith.negf %322 : vector<2x96xf32>
    %324 = math.exp %323 : vector<2x96xf32>
    %cst_146 = arith.constant 1.000000e+00 : f32
    %325 = vector.broadcast %cst_146 : f32 to vector<2x96xf32>
    %326 = arith.addf %325, %324 : vector<2x96xf32>
    %327 = arith.divf %325, %326 : vector<2x96xf32>
    %328 = vector.extract_strided_slice %315 {offsets = [0, 96], sizes = [2, 32], strides = [1, 1]} : vector<2x128xf32> to vector<2x32xf32>
    %329 = math.tanh %328 : vector<2x32xf32>
    %330 = vector.extract_strided_slice %327 {offsets = [0, 0], sizes = [2, 32], strides = [1, 1]} : vector<2x96xf32> to vector<2x32xf32>
    %331 = vector.extract_strided_slice %327 {offsets = [0, 32], sizes = [2, 32], strides = [1, 1]} : vector<2x96xf32> to vector<2x32xf32>
    %332 = vector.extract_strided_slice %327 {offsets = [0, 64], sizes = [2, 32], strides = [1, 1]} : vector<2x96xf32> to vector<2x32xf32>
    %333 = arith.mulf %331, %321 : vector<2x32xf32>
    %334 = arith.mulf %330, %329 : vector<2x32xf32>
    %335 = arith.addf %333, %334 : vector<2x32xf32>
    %336 = math.tanh %335 : vector<2x32xf32>
    %337 = arith.mulf %332, %336 : vector<2x32xf32>
    %c0_147 = arith.constant 0 : index
    %c0_148 = arith.constant 0 : index
    %338 = vector.load %arg6[%c0_147, %c0_148] : memref<2x32xf32, #tpu.memory_space<vmem>>, vector<2x32xf32>
    %339 = vector.extract_strided_slice %320 {offsets = [0, 0], sizes = [2, 96], strides = [1, 1]} : vector<2x128xf32> to vector<2x96xf32>
    %340 = arith.negf %339 : vector<2x96xf32>
    %341 = math.exp %340 : vector<2x96xf32>
    %cst_149 = arith.constant 1.000000e+00 : f32
    %342 = vector.broadcast %cst_149 : f32 to vector<2x96xf32>
    %343 = arith.addf %342, %341 : vector<2x96xf32>
    %344 = arith.divf %342, %343 : vector<2x96xf32>
    %345 = vector.extract_strided_slice %320 {offsets = [0, 96], sizes = [2, 32], strides = [1, 1]} : vector<2x128xf32> to vector<2x32xf32>
    %346 = math.tanh %345 : vector<2x32xf32>
    %347 = vector.extract_strided_slice %344 {offsets = [0, 0], sizes = [2, 32], strides = [1, 1]} : vector<2x96xf32> to vector<2x32xf32>
    %348 = vector.extract_strided_slice %344 {offsets = [0, 32], sizes = [2, 32], strides = [1, 1]} : vector<2x96xf32> to vector<2x32xf32>
    %349 = vector.extract_strided_slice %344 {offsets = [0, 64], sizes = [2, 32], strides = [1, 1]} : vector<2x96xf32> to vector<2x32xf32>
    %350 = arith.mulf %348, %338 : vector<2x32xf32>
    %351 = arith.mulf %347, %346 : vector<2x32xf32>
    %352 = arith.addf %350, %351 : vector<2x32xf32>
    %353 = math.tanh %352 : vector<2x32xf32>
    %354 = arith.mulf %349, %353 : vector<2x32xf32>
    %c0_150 = arith.constant 0 : index
    %c0_151 = arith.constant 0 : index
    %355 = vector.load %arg4[%c0_150, %c0_151] : memref<2x64xf32, #tpu.memory_space<vmem>>, vector<2x32xf32>
    tpu.vector_store %arg4[%c0_150, %c0_151], %337 {strides = array<i32>} : memref<2x64xf32, #tpu.memory_space<vmem>>, vector<2x32xf32>,
    %c0_152 = arith.constant 0 : index
    %c32_153 = arith.constant 32 : index
    %356 = vector.load %arg4[%c0_152, %c32_153] : memref<2x64xf32, #tpu.memory_space<vmem>>, vector<2x32xf32>
    tpu.vector_store %arg4[%c0_152, %c32_153], %354 {strides = array<i32>} : memref<2x64xf32, #tpu.memory_space<vmem>>, vector<2x32xf32>,
    %c0_154 = arith.constant 0 : index
    %c0_155 = arith.constant 0 : index
    %357 = vector.load %arg5[%c0_154, %c0_155] : memref<2x32xf32, #tpu.memory_space<vmem>>, vector<2x32xf32>
    tpu.vector_store %arg5[%c0_154, %c0_155], %335 {strides = array<i32>} : memref<2x32xf32, #tpu.memory_space<vmem>>, vector<2x32xf32>,
    %c0_156 = arith.constant 0 : index
    %c0_157 = arith.constant 0 : index
    %358 = vector.load %arg6[%c0_156, %c0_157] : memref<2x32xf32, #tpu.memory_space<vmem>>, vector<2x32xf32>
    tpu.vector_store %arg6[%c0_156, %c0_157], %352 {strides = array<i32>} : memref<2x32xf32, #tpu.memory_space<vmem>>, vector<2x32xf32>,
    %359 = arith.index_cast %c5_i32 : i32 to index
    %c0_158 = arith.constant 0 : index
    %c0_159 = arith.constant 0 : index
    %360 = vector.load %arg3[%359, %c0_158, %c0_159] : memref<8x2x64xf32, #tpu.memory_space<vmem>>, vector<1x2x32xf32>
    %361 = vector.shape_cast %360 : vector<1x2x32xf32> to vector<2x32xf32>
    %362 = vector.shape_cast %337 : vector<2x32xf32> to vector<1x2x32xf32>
    tpu.vector_store %arg3[%359, %c0_158, %c0_159], %362 {strides = array<i32>} : memref<8x2x64xf32, #tpu.memory_space<vmem>>, vector<1x2x32xf32>,
    %363 = arith.index_cast %307 : i32 to index
    %c0_160 = arith.constant 0 : index
    %c32_161 = arith.constant 32 : index
    %364 = vector.load %arg3[%363, %c0_160, %c32_161] : memref<8x2x64xf32, #tpu.memory_space<vmem>>, vector<1x2x32xf32>
    %365 = vector.shape_cast %364 : vector<1x2x32xf32> to vector<2x32xf32>
    %366 = vector.shape_cast %354 : vector<2x32xf32> to vector<1x2x32xf32>
    tpu.vector_store %arg3[%363, %c0_160, %c32_161], %366 {strides = array<i32>} : memref<8x2x64xf32, #tpu.memory_space<vmem>>, vector<1x2x32xf32>,
    %c6_i32 = arith.constant 6 : i32
    %c7_i32_162 = arith.constant 7 : i32
    %367 = arith.subi %c7_i32_162, %c6_i32 : i32
    %c0_163 = arith.constant 0 : index
    %c0_164 = arith.constant 0 : index
    %368 = vector.load %arg4[%c0_163, %c0_164] : memref<2x64xf32, #tpu.memory_space<vmem>>, vector<2x64xf32>
    %369 = arith.truncf %368 : vector<2x64xf32> to vector<2x64xbf16>
    %cst_165 = arith.constant dense<0.000000e+00> : vector<2x256xf32>
    %370 = tpu.matmul %369, %6, %cst_165 {dimension_numbers = #tpu.dot_dimension_numbers<[1], [0], [0], [1], [0, 0, 1, 1], [], []>} : vector<2x64xbf16>, vector<64x256xbf16>, vector<2x256xf32> -> vector<2x256xf32>
    %371 = arith.index_cast %c6_i32 : i32 to index
    %c0_166 = arith.constant 0 : index
    %c0_167 = arith.constant 0 : index
    %372 = vector.load %arg1[%371, %c0_166, %c0_167] : memref<8x2x256xf32, #tpu.memory_space<vmem>>, vector<1x2x128xf32>
    %373 = vector.shape_cast %372 : vector<1x2x128xf32> to vector<2x128xf32>
    %374 = vector.extract_strided_slice %370 {offsets = [0, 0], sizes = [2, 128], strides = [1, 1]} : vector<2x256xf32> to vector<2x128xf32>
    %375 = arith.addf %373, %374 : vector<2x128xf32>
    %376 = arith.index_cast %367 : i32 to index
    %c0_168 = arith.constant 0 : index
    %c128_169 = arith.constant 128 : index
    %377 = vector.load %arg1[%376, %c0_168, %c128_169] : memref<8x2x256xf32, #tpu.memory_space<vmem>>, vector<1x2x128xf32>
    %378 = vector.shape_cast %377 : vector<1x2x128xf32> to vector<2x128xf32>
    %379 = vector.extract_strided_slice %370 {offsets = [0, 128], sizes = [2, 128], strides = [1, 1]} : vector<2x256xf32> to vector<2x128xf32>
    %380 = arith.addf %378, %379 : vector<2x128xf32>
    %c0_170 = arith.constant 0 : index
    %c0_171 = arith.constant 0 : index
    %381 = vector.load %arg5[%c0_170, %c0_171] : memref<2x32xf32, #tpu.memory_space<vmem>>, vector<2x32xf32>
    %382 = vector.extract_strided_slice %375 {offsets = [0, 0], sizes = [2, 96], strides = [1, 1]} : vector<2x128xf32> to vector<2x96xf32>
    %383 = arith.negf %382 : vector<2x96xf32>
    %384 = math.exp %383 : vector<2x96xf32>
    %cst_172 = arith.constant 1.000000e+00 : f32
    %385 = vector.broadcast %cst_172 : f32 to vector<2x96xf32>
    %386 = arith.addf %385, %384 : vector<2x96xf32>
    %387 = arith.divf %385, %386 : vector<2x96xf32>
    %388 = vector.extract_strided_slice %375 {offsets = [0, 96], sizes = [2, 32], strides = [1, 1]} : vector<2x128xf32> to vector<2x32xf32>
    %389 = math.tanh %388 : vector<2x32xf32>
    %390 = vector.extract_strided_slice %387 {offsets = [0, 0], sizes = [2, 32], strides = [1, 1]} : vector<2x96xf32> to vector<2x32xf32>
    %391 = vector.extract_strided_slice %387 {offsets = [0, 32], sizes = [2, 32], strides = [1, 1]} : vector<2x96xf32> to vector<2x32xf32>
    %392 = vector.extract_strided_slice %387 {offsets = [0, 64], sizes = [2, 32], strides = [1, 1]} : vector<2x96xf32> to vector<2x32xf32>
    %393 = arith.mulf %391, %381 : vector<2x32xf32>
    %394 = arith.mulf %390, %389 : vector<2x32xf32>
    %395 = arith.addf %393, %394 : vector<2x32xf32>
    %396 = math.tanh %395 : vector<2x32xf32>
    %397 = arith.mulf %392, %396 : vector<2x32xf32>
    %c0_173 = arith.constant 0 : index
    %c0_174 = arith.constant 0 : index
    %398 = vector.load %arg6[%c0_173, %c0_174] : memref<2x32xf32, #tpu.memory_space<vmem>>, vector<2x32xf32>
    %399 = vector.extract_strided_slice %380 {offsets = [0, 0], sizes = [2, 96], strides = [1, 1]} : vector<2x128xf32> to vector<2x96xf32>
    %400 = arith.negf %399 : vector<2x96xf32>
    %401 = math.exp %400 : vector<2x96xf32>
    %cst_175 = arith.constant 1.000000e+00 : f32
    %402 = vector.broadcast %cst_175 : f32 to vector<2x96xf32>
    %403 = arith.addf %402, %401 : vector<2x96xf32>
    %404 = arith.divf %402, %403 : vector<2x96xf32>
    %405 = vector.extract_strided_slice %380 {offsets = [0, 96], sizes = [2, 32], strides = [1, 1]} : vector<2x128xf32> to vector<2x32xf32>
    %406 = math.tanh %405 : vector<2x32xf32>
    %407 = vector.extract_strided_slice %404 {offsets = [0, 0], sizes = [2, 32], strides = [1, 1]} : vector<2x96xf32> to vector<2x32xf32>
    %408 = vector.extract_strided_slice %404 {offsets = [0, 32], sizes = [2, 32], strides = [1, 1]} : vector<2x96xf32> to vector<2x32xf32>
    %409 = vector.extract_strided_slice %404 {offsets = [0, 64], sizes = [2, 32], strides = [1, 1]} : vector<2x96xf32> to vector<2x32xf32>
    %410 = arith.mulf %408, %398 : vector<2x32xf32>
    %411 = arith.mulf %407, %406 : vector<2x32xf32>
    %412 = arith.addf %410, %411 : vector<2x32xf32>
    %413 = math.tanh %412 : vector<2x32xf32>
    %414 = arith.mulf %409, %413 : vector<2x32xf32>
    %c0_176 = arith.constant 0 : index
    %c0_177 = arith.constant 0 : index
    %415 = vector.load %arg4[%c0_176, %c0_177] : memref<2x64xf32, #tpu.memory_space<vmem>>, vector<2x32xf32>
    tpu.vector_store %arg4[%c0_176, %c0_177], %397 {strides = array<i32>} : memref<2x64xf32, #tpu.memory_space<vmem>>, vector<2x32xf32>,
    %c0_178 = arith.constant 0 : index
    %c32_179 = arith.constant 32 : index
    %416 = vector.load %arg4[%c0_178, %c32_179] : memref<2x64xf32, #tpu.memory_space<vmem>>, vector<2x32xf32>
    tpu.vector_store %arg4[%c0_178, %c32_179], %414 {strides = array<i32>} : memref<2x64xf32, #tpu.memory_space<vmem>>, vector<2x32xf32>,
    %c0_180 = arith.constant 0 : index
    %c0_181 = arith.constant 0 : index
    %417 = vector.load %arg5[%c0_180, %c0_181] : memref<2x32xf32, #tpu.memory_space<vmem>>, vector<2x32xf32>
    tpu.vector_store %arg5[%c0_180, %c0_181], %395 {strides = array<i32>} : memref<2x32xf32, #tpu.memory_space<vmem>>, vector<2x32xf32>,
    %c0_182 = arith.constant 0 : index
    %c0_183 = arith.constant 0 : index
    %418 = vector.load %arg6[%c0_182, %c0_183] : memref<2x32xf32, #tpu.memory_space<vmem>>, vector<2x32xf32>
    tpu.vector_store %arg6[%c0_182, %c0_183], %412 {strides = array<i32>} : memref<2x32xf32, #tpu.memory_space<vmem>>, vector<2x32xf32>,
    %419 = arith.index_cast %c6_i32 : i32 to index
    %c0_184 = arith.constant 0 : index
    %c0_185 = arith.constant 0 : index
    %420 = vector.load %arg3[%419, %c0_184, %c0_185] : memref<8x2x64xf32, #tpu.memory_space<vmem>>, vector<1x2x32xf32>
    %421 = vector.shape_cast %420 : vector<1x2x32xf32> to vector<2x32xf32>
    %422 = vector.shape_cast %397 : vector<2x32xf32> to vector<1x2x32xf32>
    tpu.vector_store %arg3[%419, %c0_184, %c0_185], %422 {strides = array<i32>} : memref<8x2x64xf32, #tpu.memory_space<vmem>>, vector<1x2x32xf32>,
    %423 = arith.index_cast %367 : i32 to index
    %c0_186 = arith.constant 0 : index
    %c32_187 = arith.constant 32 : index
    %424 = vector.load %arg3[%423, %c0_186, %c32_187] : memref<8x2x64xf32, #tpu.memory_space<vmem>>, vector<1x2x32xf32>
    %425 = vector.shape_cast %424 : vector<1x2x32xf32> to vector<2x32xf32>
    %426 = vector.shape_cast %414 : vector<2x32xf32> to vector<1x2x32xf32>
    tpu.vector_store %arg3[%423, %c0_186, %c32_187], %426 {strides = array<i32>} : memref<8x2x64xf32, #tpu.memory_space<vmem>>, vector<1x2x32xf32>,
    %c7_i32_188 = arith.constant 7 : i32
    %c7_i32_189 = arith.constant 7 : i32
    %427 = arith.subi %c7_i32_189, %c7_i32_188 : i32
    %c0_190 = arith.constant 0 : index
    %c0_191 = arith.constant 0 : index
    %428 = vector.load %arg4[%c0_190, %c0_191] : memref<2x64xf32, #tpu.memory_space<vmem>>, vector<2x64xf32>
    %429 = arith.truncf %428 : vector<2x64xf32> to vector<2x64xbf16>
    %cst_192 = arith.constant dense<0.000000e+00> : vector<2x256xf32>
    %430 = tpu.matmul %429, %6, %cst_192 {dimension_numbers = #tpu.dot_dimension_numbers<[1], [0], [0], [1], [0, 0, 1, 1], [], []>} : vector<2x64xbf16>, vector<64x256xbf16>, vector<2x256xf32> -> vector<2x256xf32>
    %431 = arith.index_cast %c7_i32_188 : i32 to index
    %c0_193 = arith.constant 0 : index
    %c0_194 = arith.constant 0 : index
    %432 = vector.load %arg1[%431, %c0_193, %c0_194] : memref<8x2x256xf32, #tpu.memory_space<vmem>>, vector<1x2x128xf32>
    %433 = vector.shape_cast %432 : vector<1x2x128xf32> to vector<2x128xf32>
    %434 = vector.extract_strided_slice %430 {offsets = [0, 0], sizes = [2, 128], strides = [1, 1]} : vector<2x256xf32> to vector<2x128xf32>
    %435 = arith.addf %433, %434 : vector<2x128xf32>
    %436 = arith.index_cast %427 : i32 to index
    %c0_195 = arith.constant 0 : index
    %c128_196 = arith.constant 128 : index
    %437 = vector.load %arg1[%436, %c0_195, %c128_196] : memref<8x2x256xf32, #tpu.memory_space<vmem>>, vector<1x2x128xf32>
    %438 = vector.shape_cast %437 : vector<1x2x128xf32> to vector<2x128xf32>
    %439 = vector.extract_strided_slice %430 {offsets = [0, 128], sizes = [2, 128], strides = [1, 1]} : vector<2x256xf32> to vector<2x128xf32>
    %440 = arith.addf %438, %439 : vector<2x128xf32>
    %c0_197 = arith.constant 0 : index
    %c0_198 = arith.constant 0 : index
    %441 = vector.load %arg5[%c0_197, %c0_198] : memref<2x32xf32, #tpu.memory_space<vmem>>, vector<2x32xf32>
    %442 = vector.extract_strided_slice %435 {offsets = [0, 0], sizes = [2, 96], strides = [1, 1]} : vector<2x128xf32> to vector<2x96xf32>
    %443 = arith.negf %442 : vector<2x96xf32>
    %444 = math.exp %443 : vector<2x96xf32>
    %cst_199 = arith.constant 1.000000e+00 : f32
    %445 = vector.broadcast %cst_199 : f32 to vector<2x96xf32>
    %446 = arith.addf %445, %444 : vector<2x96xf32>
    %447 = arith.divf %445, %446 : vector<2x96xf32>
    %448 = vector.extract_strided_slice %435 {offsets = [0, 96], sizes = [2, 32], strides = [1, 1]} : vector<2x128xf32> to vector<2x32xf32>
    %449 = math.tanh %448 : vector<2x32xf32>
    %450 = vector.extract_strided_slice %447 {offsets = [0, 0], sizes = [2, 32], strides = [1, 1]} : vector<2x96xf32> to vector<2x32xf32>
    %451 = vector.extract_strided_slice %447 {offsets = [0, 32], sizes = [2, 32], strides = [1, 1]} : vector<2x96xf32> to vector<2x32xf32>
    %452 = vector.extract_strided_slice %447 {offsets = [0, 64], sizes = [2, 32], strides = [1, 1]} : vector<2x96xf32> to vector<2x32xf32>
    %453 = arith.mulf %451, %441 : vector<2x32xf32>
    %454 = arith.mulf %450, %449 : vector<2x32xf32>
    %455 = arith.addf %453, %454 : vector<2x32xf32>
    %456 = math.tanh %455 : vector<2x32xf32>
    %457 = arith.mulf %452, %456 : vector<2x32xf32>
    %c0_200 = arith.constant 0 : index
    %c0_201 = arith.constant 0 : index
    %458 = vector.load %arg6[%c0_200, %c0_201] : memref<2x32xf32, #tpu.memory_space<vmem>>, vector<2x32xf32>
    %459 = vector.extract_strided_slice %440 {offsets = [0, 0], sizes = [2, 96], strides = [1, 1]} : vector<2x128xf32> to vector<2x96xf32>
    %460 = arith.negf %459 : vector<2x96xf32>
    %461 = math.exp %460 : vector<2x96xf32>
    %cst_202 = arith.constant 1.000000e+00 : f32
    %462 = vector.broadcast %cst_202 : f32 to vector<2x96xf32>
    %463 = arith.addf %462, %461 : vector<2x96xf32>
    %464 = arith.divf %462, %463 : vector<2x96xf32>
    %465 = vector.extract_strided_slice %440 {offsets = [0, 96], sizes = [2, 32], strides = [1, 1]} : vector<2x128xf32> to vector<2x32xf32>
    %466 = math.tanh %465 : vector<2x32xf32>
    %467 = vector.extract_strided_slice %464 {offsets = [0, 0], sizes = [2, 32], strides = [1, 1]} : vector<2x96xf32> to vector<2x32xf32>
    %468 = vector.extract_strided_slice %464 {offsets = [0, 32], sizes = [2, 32], strides = [1, 1]} : vector<2x96xf32> to vector<2x32xf32>
    %469 = vector.extract_strided_slice %464 {offsets = [0, 64], sizes = [2, 32], strides = [1, 1]} : vector<2x96xf32> to vector<2x32xf32>
    %470 = arith.mulf %468, %458 : vector<2x32xf32>
    %471 = arith.mulf %467, %466 : vector<2x32xf32>
    %472 = arith.addf %470, %471 : vector<2x32xf32>
    %473 = math.tanh %472 : vector<2x32xf32>
    %474 = arith.mulf %469, %473 : vector<2x32xf32>
    %c0_203 = arith.constant 0 : index
    %c0_204 = arith.constant 0 : index
    %475 = vector.load %arg4[%c0_203, %c0_204] : memref<2x64xf32, #tpu.memory_space<vmem>>, vector<2x32xf32>
    tpu.vector_store %arg4[%c0_203, %c0_204], %457 {strides = array<i32>} : memref<2x64xf32, #tpu.memory_space<vmem>>, vector<2x32xf32>,
    %c0_205 = arith.constant 0 : index
    %c32_206 = arith.constant 32 : index
    %476 = vector.load %arg4[%c0_205, %c32_206] : memref<2x64xf32, #tpu.memory_space<vmem>>, vector<2x32xf32>
    tpu.vector_store %arg4[%c0_205, %c32_206], %474 {strides = array<i32>} : memref<2x64xf32, #tpu.memory_space<vmem>>, vector<2x32xf32>,
    %c0_207 = arith.constant 0 : index
    %c0_208 = arith.constant 0 : index
    %477 = vector.load %arg5[%c0_207, %c0_208] : memref<2x32xf32, #tpu.memory_space<vmem>>, vector<2x32xf32>
    tpu.vector_store %arg5[%c0_207, %c0_208], %455 {strides = array<i32>} : memref<2x32xf32, #tpu.memory_space<vmem>>, vector<2x32xf32>,
    %c0_209 = arith.constant 0 : index
    %c0_210 = arith.constant 0 : index
    %478 = vector.load %arg6[%c0_209, %c0_210] : memref<2x32xf32, #tpu.memory_space<vmem>>, vector<2x32xf32>
    tpu.vector_store %arg6[%c0_209, %c0_210], %472 {strides = array<i32>} : memref<2x32xf32, #tpu.memory_space<vmem>>, vector<2x32xf32>,
    %479 = arith.index_cast %c7_i32_188 : i32 to index
    %c0_211 = arith.constant 0 : index
    %c0_212 = arith.constant 0 : index
    %480 = vector.load %arg3[%479, %c0_211, %c0_212] : memref<8x2x64xf32, #tpu.memory_space<vmem>>, vector<1x2x32xf32>
    %481 = vector.shape_cast %480 : vector<1x2x32xf32> to vector<2x32xf32>
    %482 = vector.shape_cast %457 : vector<2x32xf32> to vector<1x2x32xf32>
    tpu.vector_store %arg3[%479, %c0_211, %c0_212], %482 {strides = array<i32>} : memref<8x2x64xf32, #tpu.memory_space<vmem>>, vector<1x2x32xf32>,
    %483 = arith.index_cast %427 : i32 to index
    %c0_213 = arith.constant 0 : index
    %c32_214 = arith.constant 32 : index
    %484 = vector.load %arg3[%483, %c0_213, %c32_214] : memref<8x2x64xf32, #tpu.memory_space<vmem>>, vector<1x2x32xf32>
    %485 = vector.shape_cast %484 : vector<1x2x32xf32> to vector<2x32xf32>
    %486 = vector.shape_cast %474 : vector<2x32xf32> to vector<1x2x32xf32>
    tpu.vector_store %arg3[%483, %c0_213, %c32_214], %486 {strides = array<i32>} : memref<8x2x64xf32, #tpu.memory_space<vmem>>, vector<1x2x32xf32>,
    %c8_i32 = arith.constant 8 : i32
    return
  }
  func.func @transform_0(%arg0: i32) -> (i32, i32, i32) {
    %c0_i32 = arith.constant 0 : i32
    %c0_i32_0 = arith.constant 0 : i32
    %c0_i32_1 = arith.constant 0 : i32
    return %c0_i32, %arg0, %c0_i32_0 : i32, i32, i32
  }
  func.func @transform_1(%arg0: i32) -> (i32, i32) {
    %c0_i32 = arith.constant 0 : i32
    %c0_i32_0 = arith.constant 0 : i32
    %c0_i32_1 = arith.constant 0 : i32
    return %c0_i32, %c0_i32_0 : i32, i32
  }
  func.func @transform_2(%arg0: i32) -> (i32, i32, i32) {
    %c0_i32 = arith.constant 0 : i32
    %c0_i32_0 = arith.constant 0 : i32
    %c0_i32_1 = arith.constant 0 : i32
    return %c0_i32, %arg0, %c0_i32_0 : i32, i32, i32
  }
}

</mosaic_0001>

<bundles_post_ra>
// kernel: rnn_layer.4
= control target key start
LH: loop header
LB: loop body
LE: loop exit
PB: predicated region body
PF: predicated region fallthrough
CT: control target
= control target key end

     0   :  { %vm56_vm0 = vcmask 261120   ;;  %s285_s1 = inlined_call_operand.vmem [shape: bf16[32,256], index: 1, kind: input, shape index: {}]   ;;  %s286_s0 = inlined_call_operand.vmem [shape: f32[50,32], index: 0, kind: input, shape index: {}]   ;;  %s287_s2 = inlined_call_operand.vmem [shape: f32[1,256], index: 2, kind: input, shape index: {}]   ;;  %s288_s3 = inlined_call_operand.vmem [shape: f32[50,256], index: 3, kind: output, shape index: {}]  }
   0x1   :  { %v153_v0 = vld [vmem:[%s285_s1 + $0x10] sm:$0xf]  ;;  %v170_v1 = vld [vmem:[%s285_s1 + $0x14] sm:$0xf0]  ;;  %v169_v2 = vld [vmem:[%s285_s1 + $0x14] sm:$0xf] }
   0x2   :  { %v154_v3 = vor.u32 %v170_v1, %v153_v0  ;;  %v155_v4 = vld [vmem:[%s285_s1 + $0x18] sm:$0xf0]  ;;  %v145_v5 = vld [vmem:[%s285_s1] sm:$0xf]  ;;  %v168_v6 = vld [vmem:[%s285_s1 + $0x4] sm:$0xf0] }
   0x3   :  { %v158_v7 = vor.u32 %v169_v2, %v155_v4  ;;  %v167_v8 = vld [vmem:[%s285_s1 + $0x4] sm:$0xf]  ;;  %v147_v9 = vld [vmem:[%s285_s1 + $0x8] sm:$0xf0]  ;;  %v146_v11 = vor.u32 %v168_v6, %v145_v5  ;;  %v17_v18 = vld [vmem:[%s286_s0 + $0x10] sm:$0xff] }
   0x4   :  { %v15_v10 = vld [vmem:[%s286_s0] sm:$0xff]  ;;  %75 = vmatpush.bf16.msra.mxu0 %v154_v3  ;;  %171 = vmatpush.bf16.msra.mxu2 %v154_v3  ;;  %v16_v12 = vld [vmem:[%s286_s0 + $0x8] sm:$0xff]  ;;  %v150_v15 = vor.u32 %v167_v8, %v147_v9  ;;  %v18_v19 = vld [vmem:[%s286_s0 + $0x18] sm:$0xff] }
   0x5   :  { %v19_v13 = vld [vmem:[%s286_s0 + $0x20] sm:$0xff]  ;;  %v20_v14 = vld [vmem:[%s286_s0 + $0x28] sm:$0xff]  ;;  %103 = vmatpush.bf16.msra.mxu1 %v158_v7  ;;  %173 = vmatpush.bf16.msra.mxu3 %v158_v7  ;;  %v22_v16 = vpack.c.bf16 %v16_v12, %v15_v10  ;;  %v21_v20 = vld [vmem:[%s286_s0 + $0x30] sm:$0x3]  ;;  %v23_v21 = vpack.c.bf16 %v18_v19, %v17_v18 }
   0x6   :  { %v24_v17 = vpack.c.bf16 %v20_v14, %v19_v13  ;;  %v25_v22 = vpack.c.bf16 %v21_v20, %v21_v20  ;;  %v30_v23 = vld [vmem:[%s287_s2] sm:$0x3] }
   0x7   :  { %v32_v24 = vperm.slane %v30_v23, 0  ;;  %v33_v25 = vperm.slane %v30_v23, 1 }
   0x8   :  { %76 = vmatpush.bf16.msra.mxu0 %v146_v11  ;;  %172 = vmatpush.bf16.msra.mxu2 %v146_v11 }
   0x9   :  { %104 = vmatpush.bf16.msra.mxu1 %v150_v15  ;;  %174 = vmatpush.bf16.msra.mxu3 %v150_v15 }
   0xb   :  { %159 = vmatmul.msk.bf16.vlgmr.msra.gmra.mxu0 %vm56_vm0, %v22_v16  ;;  %161 = vmatmul.msk.bf16.vlgmr.msra.gmra.mxu2 %vm56_vm0, %v24_v17 }
   0xc   :  { %163 = vmatmul.msk.bf16.vlgmr.msra.gmra.mxu1 %vm56_vm0, %v22_v16  ;;  %165 = vmatmul.msk.bf16.vlgmr.msra.gmra.mxu3 %vm56_vm0, %v24_v17 }
  0x1b   :  { %160 = vmatmul.msk.bf16.gmra.mxu0 %vm56_vm0, %v23_v21  ;;  %162 = vmatmul.msk.bf16.gmra.mxu2 %vm56_vm0, %v25_v22 }
  0x1c   :  { %164 = vmatmul.msk.bf16.gmra.mxu1 %vm56_vm0, %v23_v21  ;;  %166 = vmatmul.msk.bf16.gmra.mxu3 %vm56_vm0, %v25_v22 }
  0x88   :  { %v78_v26 = vpop.f32.mrf.mxu0 }
  0x89   :  { %v79_v27 = vadd.f32 %v78_v26, %v32_v24  ;;  %v106_v28 = vpop.f32.mrf.mxu1 }
  0x8a   :  { %v107_v29 = vadd.f32 %v106_v28, %v33_v25 }
  0x8b   :  { %125 = vst [vmem:[%s288_s3] sm:$0xff] %v79_v27 }
  0x8c   :  { %126 = vst [vmem:[%s288_s3 + $0x8] sm:$0xff] %v107_v29 }
  0x8e   :  { %v88_v30 = vpop.f32.mrf.mxu2 }
  0x8f   :  { %v89_v31 = vadd.f32 %v88_v30, %v32_v24  ;;  %v116_v32 = vpop.f32.mrf.mxu3 }
  0x90   :  { %v117_v33 = vadd.f32 %v116_v32, %v33_v25  ;;  %v80_v34 = vpop.f32.mrf.mxu0 }
  0x91   :  { %133 = vst [vmem:[%s288_s3 + $0x40] sm:$0xff] %v89_v31  ;;  %v81_v35 = vadd.f32 %v80_v34, %v32_v24  ;;  %v108_v36 = vpop.f32.mrf.mxu1 }
  0x92   :  { %134 = vst [vmem:[%s288_s3 + $0x48] sm:$0xff] %v117_v33  ;;  %v109_v37 = vadd.f32 %v108_v36, %v33_v25 }
  0x93   :  { %127 = vst [vmem:[%s288_s3 + $0x10] sm:$0xff] %v81_v35 }
  0x94   :  { %128 = vst [vmem:[%s288_s3 + $0x18] sm:$0xff] %v109_v37 }
  0x96   :  { %v90_v38 = vpop.f32.mrf.mxu2 }
  0x97   :  { %v91_v39 = vadd.f32 %v90_v38, %v32_v24  ;;  %v118_v40 = vpop.f32.mrf.mxu3 }
  0x98   :  { %v119_v41 = vadd.f32 %v118_v40, %v33_v25  ;;  %v83_v42 = vpop.f32.mrf.mxu0 }
  0x99   :  { %135 = vst [vmem:[%s288_s3 + $0x50] sm:$0xff] %v91_v39  ;;  %v84_v43 = vadd.f32 %v83_v42, %v32_v24  ;;  %v111_v44 = vpop.f32.mrf.mxu1 }
  0x9a   :  { %136 = vst [vmem:[%s288_s3 + $0x58] sm:$0xff] %v119_v41  ;;  %v112_v45 = vadd.f32 %v111_v44, %v33_v25 }
  0x9b   :  { %129 = vst [vmem:[%s288_s3 + $0x20] sm:$0xff] %v84_v43 }
  0x9c   :  { %130 = vst [vmem:[%s288_s3 + $0x28] sm:$0xff] %v112_v45 }
  0x9e   :  { %v93_v46 = vpop.f32.mrf.mxu2 }
  0x9f   :  { %v94_v47 = vadd.f32 %v93_v46, %v32_v24  ;;  %v121_v48 = vpop.f32.mrf.mxu3 }
  0xa0   :  { %v122_v49 = vadd.f32 %v121_v48, %v33_v25  ;;  %v85_v50 = vpop.f32.mrf.mxu0 }
  0xa1   :  { %137 = vst [vmem:[%s288_s3 + $0x60] sm:$0x3] %v94_v47  ;;  %v86_v51 = vadd.f32 %v85_v50, %v32_v24  ;;  %v113_v52 = vpop.f32.mrf.mxu1 }
  0xa2   :  { %138 = vst [vmem:[%s288_s3 + $0x68] sm:$0x3] %v122_v49  ;;  %v114_v53 = vadd.f32 %v113_v52, %v33_v25 }
  0xa3   :  { %131 = vst [vmem:[%s288_s3 + $0x30] sm:$0xff] %v86_v51 }
  0xa4   :  { %132 = vst [vmem:[%s288_s3 + $0x38] sm:$0xff] %v114_v53 }
  0xa6   :  { %v95_v54 = vpop.f32.mrf.mxu2 }
  0xa7   :  { %v123_v55 = vpop.f32.mrf.mxu3 }

// kernel: rnn_layer.6
= control target key start
LH: loop header
LB: loop body
LE: loop exit
PB: predicated region body
PF: predicated region fallthrough
CT: control target
= control target key end

     0   :  { %vm72_vm0 = vcmask 523264   ;;  %s243_s1 = inlined_call_operand.vmem [shape: bf16[64,256], index: 1, kind: input, shape index: {}]   ;;  %s244_s0 = inlined_call_operand.vmem [shape: f32[16,64], index: 0, kind: input, shape index: {}]   ;;  %s245_s2 = inlined_call_operand.vmem [shape: f32[1,256], index: 2, kind: input, shape index: {}]   ;;  %s246_s3 = inlined_call_operand.vmem [shape: f32[16,256], index: 3, kind: output, shape index: {}]  }
   0x1   :  { %v138_v0 = vld [vmem:[%s243_s1 + $0x30] sm:$0xf]  ;;  %v153_v1 = vld [vmem:[%s243_s1 + $0x34] sm:$0xf0]  ;;  %v152_v2 = vld [vmem:[%s243_s1 + $0x34] sm:$0xf] }
   0x2   :  { %v139_v3 = vor.u32 %v153_v1, %v138_v0  ;;  %v140_v4 = vld [vmem:[%s243_s1 + $0x38] sm:$0xf0]  ;;  %v130_v5 = vld [vmem:[%s243_s1 + $0x20] sm:$0xf]  ;;  %v151_v6 = vld [vmem:[%s243_s1 + $0x24] sm:$0xf0] }
   0x3   :  { %v143_v7 = vor.u32 %v152_v2, %v140_v4  ;;  %v150_v8 = vld [vmem:[%s243_s1 + $0x24] sm:$0xf]  ;;  %v132_v9 = vld [vmem:[%s243_s1 + $0x28] sm:$0xf0]  ;;  %v131_v10 = vor.u32 %v151_v6, %v130_v5  ;;  %v122_v12 = vld [vmem:[%s243_s1 + $0x10] sm:$0xf] }
   0x4   :  { %80 = vmatpush.bf16.msra.mxu0 %v139_v3  ;;  %v135_v11 = vor.u32 %v150_v8, %v132_v9  ;;  %v149_v13 = vld [vmem:[%s243_s1 + $0x14] sm:$0xf0]  ;;  %v148_v14 = vld [vmem:[%s243_s1 + $0x14] sm:$0xf]  ;;  %v124_v15 = vld [vmem:[%s243_s1 + $0x18] sm:$0xf0] }
   0x5   :  { %94 = vmatpush.bf16.msra.mxu1 %v143_v7  ;;  %v123_v16 = vor.u32 %v149_v13, %v122_v12  ;;  %v127_v17 = vor.u32 %v148_v14, %v124_v15  ;;  %v114_v18 = vld [vmem:[%s243_s1] sm:$0xf]  ;;  %v147_v19 = vld [vmem:[%s243_s1 + $0x4] sm:$0xf0]  ;;  %v146_v20 = vld [vmem:[%s243_s1 + $0x4] sm:$0xf] }
   0x6   :  { %v116_v21 = vld [vmem:[%s243_s1 + $0x8] sm:$0xf0]  ;;  %v115_v22 = vor.u32 %v147_v19, %v114_v18  ;;  %v15_v23 = vld [vmem:[%s244_s0] sm:$0xff] }
   0x7   :  { %v16_v24 = vld [vmem:[%s244_s0 + $0x8] sm:$0xff]  ;;  %v119_v25 = vor.u32 %v146_v20, %v116_v21  ;;  %v26_v27 = vld [vmem:[%s245_s2] sm:$0x3] }
   0x8   :  { %81 = vmatpush.bf16.msra.mxu0 %v131_v10  ;;  %v17_v26 = vpack.c.bf16 %v16_v24, %v15_v23  ;;  %v28_v28 = vperm.slane %v26_v27, 0  ;;  %v29_v29 = vperm.slane %v26_v27, 1 }
   0x9   :  { %95 = vmatpush.bf16.msra.mxu1 %v135_v11 }
   0xc   :  { %82 = vmatpush.bf16.msra.mxu0 %v123_v16 }
   0xd   :  { %96 = vmatpush.bf16.msra.mxu1 %v127_v17 }
  0x10   :  { %83 = vmatpush.bf16.msra.mxu0 %v115_v22 }
  0x11   :  { %97 = vmatpush.bf16.msra.mxu1 %v119_v25 }
  0x13   :  { %144 = vmatmul.msk.bf16.vlgmr.msra.gmra.mxu0 %vm72_vm0, %v17_v26 }
  0x14   :  { %145 = vmatmul.msk.bf16.vlgmr.msra.gmra.mxu1 %vm72_vm0, %v17_v26 }
  0x90   :  { %v85_v30 = vpop.f32.mrf.mxu0 }
  0x91   :  { %v86_v31 = vadd.f32 %v85_v30, %v28_v28  ;;  %v99_v32 = vpop.f32.mrf.mxu1 }
  0x92   :  { %v100_v33 = vadd.f32 %v99_v32, %v29_v29 }
  0x93   :  { %104 = vst [vmem:[%s246_s3] sm:$0xff] %v86_v31 }
  0x94   :  { %105 = vst [vmem:[%s246_s3 + $0x8] sm:$0xff] %v100_v33 }
  0x98   :  { %v87_v34 = vpop.f32.mrf.mxu0 }
  0x99   :  { %v88_v35 = vadd.f32 %v87_v34, %v28_v28  ;;  %v101_v36 = vpop.f32.mrf.mxu1 }
  0x9a   :  { %v102_v37 = vadd.f32 %v101_v36, %v29_v29 }
  0x9b   :  { %106 = vst [vmem:[%s246_s3 + $0x10] sm:$0xff] %v88_v35 }
  0x9c   :  { %107 = vst [vmem:[%s246_s3 + $0x18] sm:$0xff] %v102_v37 }

// kernel: rnn_layer.5
= control target key start
LH: loop header
LB: loop body
LE: loop exit
PB: predicated region body
PF: predicated region fallthrough
CT: control target
= control target key end

     0   :  { %vm12_vm0 = vcmask 517120   ;;  %vm14_vm1 = vcmask 254976   ;;  %v1589_v13 = vmov 0.0   ;;  %s1590_s13 = smov 32   ;;  %vm67_vm2 = vcmask 523264   ;;  %s1591_s17 = smov 64   ;;  %s2049_s1 = inlined_call_operand.vmem [shape: bf16[64,256], index: 1, kind: input, shape index: {}]   ;;  %s2050_s0 = inlined_call_operand.vmem [shape: f32[8,2,256], index: 0, kind: input, shape index: {}]   ;;  %s2051_s2 = inlined_call_operand.vmem [shape: f32[8,2,64], index: 2, kind: output, shape index: {}]  }
   0x1   :  { %v1383_v0 = vld [vmem:[%s2049_s1 + $0x30] sm:$0xf]  ;;  %v1456_v1 = vld [vmem:[%s2049_s1 + $0x34] sm:$0xf0]  ;;  %v1375_v2 = vld [vmem:[%s2049_s1 + $0x20] sm:$0xf] }
   0x2   :  { %v1617_v3 = vor.u32 %v1456_v1, %v1383_v0  ;;  %v1454_v4 = vld [vmem:[%s2049_s1 + $0x24] sm:$0xf0]  ;;  %v1455_v5 = vld [vmem:[%s2049_s1 + $0x34] sm:$0xf]  ;;  %v1385_v6 = vld [vmem:[%s2049_s1 + $0x38] sm:$0xf0] }
   0x3   :  { %v1629_v7 = vor.u32 %v1454_v4, %v1375_v2  ;;  %v1631_v8 = vor.u32 %v1455_v5, %v1385_v6  ;;  %v1453_v9 = vld [vmem:[%s2049_s1 + $0x24] sm:$0xf]  ;;  %v1377_v10 = vld [vmem:[%s2049_s1 + $0x28] sm:$0xf0]  ;;  %v1367_v11 = vld [vmem:[%s2049_s1 + $0x10] sm:$0xf] }
   0x4   :  { %75 = vmatpush.bf16.msra.mxu0 %v1617_v3  ;;  %237 = vmatpush.bf16.msra.mxu2 %v1617_v3  ;;  %v1452_v12 = vld [vmem:[%s2049_s1 + $0x14] sm:$0xf0]  ;;  %13 = vst.msk [vmem:[#allocation2] sm:$0x3] %vm12_vm0, %v1589_v13  ;;  %v1647_v14 = vor.u32 %v1453_v9, %v1377_v10  ;;  %v1451_v15 = vld [vmem:[%s2049_s1 + $0x14] sm:$0xf] }
   0x5   :  { %88 = vmatpush.bf16.msra.mxu1 %v1631_v8  ;;  %15 = vst.msk [vmem:[#allocation3] sm:$0x3] %vm14_vm1, %v1589_v13  ;;  %250 = vmatpush.bf16.msra.mxu3 %v1631_v8  ;;  %v1369_v16 = vld [vmem:[%s2049_s1 + $0x18] sm:$0xf0]  ;;  %v1659_v17 = vor.u32 %v1452_v12, %v1367_v11  ;;  %v1359_v18 = vld [vmem:[%s2049_s1] sm:$0xf] }
   0x6   :  { %16 = vst.msk [vmem:[#allocation4] sm:$0x3] %vm14_vm1, %v1589_v13  ;;  %v1450_v19 = vld [vmem:[%s2049_s1 + $0x4] sm:$0xf0]  ;;  %v1669_v20 = vor.u32 %v1451_v15, %v1369_v16  ;;  %v1449_v21 = vld [vmem:[%s2049_s1 + $0x4] sm:$0xf] }
   0x7   :  { %v1361_v22 = vld [vmem:[%s2049_s1 + $0x8] sm:$0xf0]  ;;  %v1679_v23 = vor.u32 %v1450_v19, %v1359_v18  ;;  %v97_v29 = vld [vmem:[%s2050_s0] sm:$0x3]  ;;  %v1391_v33 = vld [vmem:[%s2050_s0 + $0x1e] sm:$0x3] }
   0x8   :  { %76 = vmatpush.bf16.msra.mxu0 %v1629_v7  ;;  %238 = vmatpush.bf16.msra.mxu2 %v1629_v7  ;;  %v1683_v26 = vor.u32 %v1449_v21, %v1361_v22  ;;  %s1592_s18 = smov 96   ;;  %vm199_vm11 = vcmask 517376  }
   0x9   :  { %89 = vmatpush.bf16.msra.mxu1 %v1647_v14  ;;  %251 = vmatpush.bf16.msra.mxu3 %v1647_v14 }
   0xb   :  { %v25_v24 = vld [vmem:[#allocation2] sm:$0x3] }
   0xc   :  { %77 = vmatpush.bf16.msra.mxu0 %v1659_v17  ;;  %239 = vmatpush.bf16.msra.mxu2 %v1659_v17  ;;  %v102_v25 = vld [vmem:[#allocation3] sm:$0x3]  ;;  %v26_v28 = vpack.c.bf16 %v25_v24, %v25_v24 }
   0xd   :  { %90 = vmatpush.bf16.msra.mxu1 %v1669_v20  ;;  %124 = vrot.lane.b32.xlu1 %v102_v25, %s1590_s13  ;;  %v144_v27 = vld [vmem:[#allocation4] sm:$0x3] }
   0xe   :  { %166 = vrot.lane.b32.xlu2 %v144_v27, %s1590_s13  ;;  %252 = vmatpush.bf16.msra.mxu3 %v1669_v20 }
  0x10   :  { %78 = vmatpush.bf16.msra.mxu0 %v1679_v23  ;;  %240 = vmatpush.bf16.msra.mxu2 %v1679_v23 }
  0x11   :  { %91 = vmatpush.bf16.msra.mxu1 %v1683_v26 }
  0x12   :  { %253 = vmatpush.bf16.msra.mxu3 %v1683_v26 }
  0x13   :  { %1389 = vmatmul.msk.bf16.vlgmr.msra.gmra.mxu0 %vm67_vm2, %v26_v28 }
  0x14   :  { %400 = vmatpush.bf16.msrb.mxu0 %v1617_v3  ;;  %563 = vmatpush.bf16.msrb.mxu2 %v1617_v3 }
  0x15   :  { %413 = vmatpush.bf16.msrb.mxu1 %v1631_v8 }
  0x16   :  { %576 = vmatpush.bf16.msrb.mxu3 %v1631_v8  ;;  %1390 = vmatmul.msk.bf16.vlgmr.msra.gmra.mxu1 %vm67_vm2, %v26_v28 }
  0x18   :  { %401 = vmatpush.bf16.msrb.mxu0 %v1629_v7  ;;  %564 = vmatpush.bf16.msrb.mxu2 %v1629_v7 }
  0x19   :  { %414 = vmatpush.bf16.msrb.mxu1 %v1647_v14 }
  0x1a   :  { %577 = vmatpush.bf16.msrb.mxu3 %v1647_v14 }
  0x1c   :  { %402 = vmatpush.bf16.msrb.mxu0 %v1659_v17  ;;  %565 = vmatpush.bf16.msrb.mxu2 %v1659_v17 }
  0x1d   :  { %415 = vmatpush.bf16.msrb.mxu1 %v1669_v20 }
  0x1e   :  { %578 = vmatpush.bf16.msrb.mxu3 %v1669_v20 }
  0x20   :  { %403 = vmatpush.bf16.msrb.mxu0 %v1679_v23  ;;  %566 = vmatpush.bf16.msrb.mxu2 %v1679_v23 }
  0x21   :  { %416 = vmatpush.bf16.msrb.mxu1 %v1683_v26 }
  0x22   :  { %579 = vmatpush.bf16.msrb.mxu3 %v1683_v26 }
  0x24   :  { %726 = vmatpush.bf16.msra.mxu0 %v1617_v3 }
  0x25   :  { %739 = vmatpush.bf16.msra.mxu1 %v1631_v8 }
  0x28   :  { %727 = vmatpush.bf16.msra.mxu0 %v1629_v7 }
  0x29   :  { %740 = vmatpush.bf16.msra.mxu1 %v1647_v14 }
  0x2c   :  { %728 = vmatpush.bf16.msra.mxu0 %v1659_v17 }
  0x2d   :  { %741 = vmatpush.bf16.msra.mxu1 %v1669_v20 }
  0x30   :  { %729 = vmatpush.bf16.msra.mxu0 %v1679_v23 }
  0x31   :  { %742 = vmatpush.bf16.msra.mxu1 %v1683_v26 }
  0x68   :  { %v167_v6 = vpop.permute.xlu2 %166 }
  0x7f   :  { %v125_v12 = vpop.permute.xlu1 %124 }
  0x90   :  { %v80_v30 = vpop.f32.mrf.mxu0 }
  0x91   :  { %v98_v31 = vadd.f32 %v97_v29, %v80_v30 }
  0x93   :  { %v93_v32 = vpop.f32.mrf.mxu1  ;;  %1461 = vtanh.f32 %v98_v31  ;;  %v1392_v39 = vmul.f32 -1.442695, %v98_v31 }
  0x94   :  { %v101_v34 = vadd.f32 %v1391_v33, %v93_v32 }
  0x96   :  { %1463 = vtanh.f32 %v101_v34  ;;  %v1393_v40 = vmul.f32 -1.442695, %v101_v34 }
  0x97   :  { %1465 = vpow2.f32 %v1392_v39  ;;  %v1397_v39 = vld [vmem:[%s2050_s0 + $0x4] sm:$0x3] }
  0x98   :  { %v82_v35 = vpop.f32.mrf.mxu0  ;;  %1467 = vpow2.f32 %v1393_v40  ;;  %v1398_v40 = vld [vmem:[%s2050_s0 + $0x1a] sm:$0x3] }
  0x99   :  { %v1462_v36 = vpop.eup %1461 }
  0x9a   :  { %129 = vrot.lane.b32.xlu0 %v1462_v36, %s1590_s13 }
  0x9b   :  { %v95_v37 = vpop.f32.mrf.mxu1 }
  0x9c   :  { %v1464_v38 = vpop.eup %1463 }
  0x9d   :  { %v1466_v41 = vpop.eup %1465 }
  0x9e   :  { %v106_v42 = vadd.f32 1.0, %v1466_v41  ;;  %v1468_v43 = vpop.eup %1467 }
  0x9f   :  { %v148_v44 = vadd.f32 1.0, %v1468_v43 }
  0xa0   :  { %1469 = vrcp.f32 %v106_v42  ;;  %v118_v53 = vand.u32 2147483648, %v106_v42  ;;  %vm112_vm4 = vweird.f32 %v106_v42  ;;  %v116_v54 = vand.u32 2147483647, %v106_v42 }
  0xa1   :  { %1471 = vrcp.f32 %v148_v44  ;;  %vm154_vm7 = vweird.f32 %v148_v44  ;;  %v160_v59 = vand.u32 2147483648, %v148_v44  ;;  %v158_v62 = vand.u32 2147483647, %v148_v44 }
  0xa2   :  { %171 = vrot.lane.b32.xlu0 %v1464_v38, %s1590_s13  ;;  %v119_v57 = vor.u32 1.1754944e-38, %v118_v53  ;;  %vm117_vm6 = vcmp.eq.f32.partialorder %v116_v54, 8.507059e+37 }
  0xa3   :  { %v161_v0 = vor.u32 1.1754944e-38, %v160_v59  ;;  %vm159_vm10 = vcmp.eq.f32.partialorder %v158_v62, 8.507059e+37 }
  0xa6   :  { %v1470_v45 = vpop.eup %1469 }
  0xa7   :  { %v108_v46 = vmul.f32 %v1470_v45, %v106_v42  ;;  %v1472_v48 = vpop.eup %1471  ;;  %vm113_vm3 = vweird.f32 %v1470_v45 }
  0xa8   :  { %v150_v50 = vmul.f32 %v1472_v48, %v148_v44  ;;  %vm114_vm5 = vmor %vm112_vm4, %vm113_vm3  ;;  %vm155_vm8 = vweird.f32 %v1472_v48 }
  0xa9   :  { %v109_v47 = vsub.f32 1.0, %v108_v46  ;;  %vm156_vm9 = vmor %vm154_vm7, %vm155_vm8 }
  0xaa   :  { %v151_v52 = vsub.f32 1.0, %v150_v50 }
  0xab   :  { %v110_v49 = vmul.f32 %v1470_v45, %v109_v47 }
  0xac   :  { %v152_v56 = vmul.f32 %v1472_v48, %v151_v52 }
  0xad   :  { %v111_v51 = vadd.f32 %v1470_v45, %v110_v49 }
  0xae   :  { %v153_v61 = vadd.f32 %v1472_v48, %v152_v56 }
  0xaf   :  { %v115_v55 = vsel %vm114_vm5, %v1470_v45, %v111_v51 }
  0xb0   :  { %v120_v58 = vsel %vm117_vm6, %v119_v57, %v115_v55  ;;  %v157_v1 = vsel %vm156_vm9, %v1472_v48, %v153_v61 }
  0xb1   :  { %v162_v2 = vsel %vm159_vm10, %v161_v0, %v157_v1  ;;  %v127_v15 = vmul.f32 %v125_v12, %v120_v58 }
  0xb2   :  { %v169_v9 = vmul.f32 %v167_v6, %v162_v2 }
 0x10c   :  { %v130_v60 = vpop.permute.xlu0 %129 }
 0x10d   :  { %v132_v63 = vmul.f32 %v130_v60, %v120_v58 }
 0x10f   :  { %134 = vrot.lane.b32.xlu1 %v132_v63, %s1590_s13 }
 0x114   :  { %v172_v4 = vpop.permute.xlu0 %171 }
 0x115   :  { %v174_v5 = vmul.f32 %v172_v4, %v162_v2 }
 0x117   :  { %176 = vrot.lane.b32.xlu2 %v174_v5, %s1590_s13 }
 0x171   :  { %v177_v10 = vpop.permute.xlu2 %176 }
 0x172   :  { %v179_v11 = vadd.f32 %v177_v10, %v169_v9 }
 0x174   :  { %1473 = vtanh.f32 %v179_v11 }
 0x17a   :  { %v1474_v13 = vpop.eup %1473 }
 0x17b   :  { %182 = vrot.lane.b32.xlu1 %v1474_v13, %s1590_s13 }
 0x181   :  { %v135_v16 = vpop.permute.xlu1 %134 }
 0x182   :  { %v137_v18 = vadd.f32 %v135_v16, %v127_v15 }
 0x184   :  { %1475 = vtanh.f32 %v137_v18 }
 0x18a   :  { %v1476_v19 = vpop.eup %1475 }
 0x18b   :  { %140 = vrot.lane.b32.xlu0 %v1476_v19, %s1590_s13 }
 0x1ed   :  { %v183_v24 = vpop.permute.xlu1 %182 }
 0x1ee   :  { %v185_v25 = vmul.f32 %v183_v24, %v162_v2 }
 0x1fd   :  { %v141_v21 = vpop.permute.xlu0 %140 }
 0x1fe   :  { %v143_v22 = vmul.f32 %v141_v21, %v120_v58 }
 0x200   :  { %187 = vst [vmem:[#allocation1] ss:$4 sm:$0xff] %v143_v22 }
 0x207   :  { %v188_v27 = vld.sshfl [vmem:[#allocation1] sm:$0xff pattern:$0x73625140] }
 0x208   :  { %194 = vst [vmem:[#allocation1] ss:$4 sm:$0xff] %v185_v25  ;;  %189 = vrot.lane.b32.xlu2 %v188_v27, %s1591_s17 }
 0x20f   :  { %v195_v28 = vld.sshfl [vmem:[#allocation1] sm:$0xff pattern:$0x73625140] }
 0x210   :  { %202 = vst [vmem:[#allocation1] ss:$4 sm:$0xff] %v137_v18  ;;  %196 = vrot.lane.b32.xlu0 %v195_v28, %s1592_s18 }
 0x217   :  { %v203_v29 = vld.sshfl [vmem:[#allocation1] sm:$0xff pattern:$0x73625140] }
 0x218   :  { %209 = vst [vmem:[#allocation1] ss:$4 sm:$0xff] %v179_v11  ;;  %204 = vrot.lane.b32.xlu1 %v203_v29, %s1592_s18 }
 0x21f   :  { %v210_v30 = vld.sshfl [vmem:[#allocation1] sm:$0xff pattern:$0x73625140] }
 0x220   :  { %215 = vst [vmem:[#allocation1] ss:$4 sm:$0xff] %v143_v22  ;;  %211 = vrot.lane.b32.xlu2 %v210_v30, %s1592_s18 }
 0x227   :  { %v1734_v31 = vld.sshfl [vmem:[#allocation1] sm:$0xff pattern:$0x73625140] }
 0x228   :  { %221 = vst [vmem:[#allocation1] ss:$4 sm:$0xff] %v185_v25 }
 0x262   :  { %v190_v32 = vpop.permute.xlu2 %189 }
 0x263   :  { %192 = vst.msk [vmem:[#allocation2] sm:$0x3] %vm14_vm1, %v190_v32 }
 0x27a   :  { %v212_v33 = vpop.permute.xlu2 %211 }
 0x27b   :  { %214 = vst.msk [vmem:[#allocation4] sm:$0x3] %vm14_vm1, %v212_v33 }
 0x282   :  { %v197_v34 = vpop.permute.xlu0 %196  ;;  %v307_v49 = vld [vmem:[#allocation4] sm:$0x3] }
 0x283   :  { %200 = vst.msk [vmem:[#allocation2] sm:$0x3] %vm199_vm11, %v197_v34 }
 0x28a   :  { %v228_v35 = vld [vmem:[#allocation2] sm:$0x3]  ;;  %v205_v36 = vpop.permute.xlu1 %204 }
 0x28b   :  { %207 = vst.msk [vmem:[#allocation3] sm:$0x3] %vm14_vm1, %v205_v36  ;;  %v229_v37 = vpack.c.bf16 %v228_v35, %v228_v35 }
 0x28d   :  { %1395 = vmatmul.msk.bf16.vlgmr.msra.gmra.mxu2 %vm67_vm2, %v229_v37  ;;  %1396 = vmatmul.msk.bf16.vlgmr.msra.gmra.mxu3 %vm67_vm2, %v229_v37  ;;  %v1764_v37 = vld.sshfl [vmem:[#allocation1] sm:$0xff pattern:$0x73625140] }
 0x28e   :  { %885 = vmatpush.bf16.msra.mxu2 %v1617_v3  ;;  %898 = vmatpush.bf16.msra.mxu3 %v1631_v8 }
 0x292   :  { %v265_v38 = vld [vmem:[#allocation3] sm:$0x3]  ;;  %886 = vmatpush.bf16.msra.mxu2 %v1629_v7  ;;  %899 = vmatpush.bf16.msra.mxu3 %v1647_v14 }
 0x293   :  { %287 = vrot.lane.b32.xlu2 %v265_v38, %s1590_s13 }
 0x296   :  { %887 = vmatpush.bf16.msra.mxu2 %v1659_v17  ;;  %900 = vmatpush.bf16.msra.mxu3 %v1669_v20 }
 0x29a   :  { %888 = vmatpush.bf16.msra.mxu2 %v1679_v23  ;;  %901 = vmatpush.bf16.msra.mxu3 %v1683_v26 }
 0x2ed   :  { %v288_v22 = vpop.permute.xlu2 %287 }
 0x310   :  { %v242_v41 = vpop.f32.mrf.mxu2  ;;  %v255_v42 = vpop.f32.mrf.mxu3 }
 0x311   :  { %v261_v43 = vadd.f32 %v1397_v39, %v242_v41  ;;  %v264_v44 = vadd.f32 %v1398_v40, %v255_v42 }
 0x313   :  { %1477 = vtanh.f32 %v261_v43  ;;  %v1399_v50 = vmul.f32 -1.442695, %v261_v43  ;;  %v1400_v51 = vmul.f32 -1.442695, %v264_v44 }
 0x314   :  { %1479 = vtanh.f32 %v264_v44 }
 0x315   :  { %1481 = vpow2.f32 %v1399_v50 }
 0x316   :  { %1483 = vpow2.f32 %v1400_v51 }
 0x318   :  { %v244_v45 = vpop.f32.mrf.mxu2  ;;  %v257_v46 = vpop.f32.mrf.mxu3 }
 0x319   :  { %v1478_v47 = vpop.eup %1477 }
 0x31a   :  { %v1480_v48 = vpop.eup %1479  ;;  %292 = vrot.lane.b32.xlu0 %v1478_v47, %s1590_s13 }
 0x31b   :  { %334 = vrot.lane.b32.xlu1 %v1480_v48, %s1590_s13  ;;  %v1482_v52 = vpop.eup %1481 }
 0x31c   :  { %v1484_v53 = vpop.eup %1483  ;;  %v269_v54 = vadd.f32 1.0, %v1482_v52  ;;  %v1405_v52 = vld [vmem:[%s2050_s0 + $0x8] sm:$0x3] }
 0x31d   :  { %v311_v55 = vadd.f32 1.0, %v1484_v53  ;;  %v1406_v53 = vld [vmem:[%s2050_s0 + $0x16] sm:$0x3] }
 0x31e   :  { %1485 = vrcp.f32 %v269_v54  ;;  %v281_v1 = vand.u32 2147483648, %v269_v54  ;;  %vm275_vm14 = vweird.f32 %v269_v54  ;;  %v279_v4 = vand.u32 2147483647, %v269_v54 }
 0x31f   :  { %1487 = vrcp.f32 %v311_v55  ;;  %v323_v5 = vand.u32 2147483648, %v311_v55  ;;  %vm317_vm0 = vweird.f32 %v311_v55  ;;  %v321_v6 = vand.u32 2147483647, %v311_v55 }
 0x320   :  { %v282_v10 = vor.u32 1.1754944e-38, %v281_v1  ;;  %vm280_vm4 = vcmp.eq.f32.partialorder %v279_v4, 8.507059e+37 }
 0x321   :  { %v324_v12 = vor.u32 1.1754944e-38, %v323_v5  ;;  %vm322_vm5 = vcmp.eq.f32.partialorder %v321_v6, 8.507059e+37 }
 0x323   :  { %329 = vrot.lane.b32.xlu1 %v307_v49, %s1590_s13 }
 0x324   :  { %v1486_v56 = vpop.eup %1485 }
 0x325   :  { %v1488_v57 = vpop.eup %1487  ;;  %v271_v58 = vmul.f32 %v1486_v56, %v269_v54  ;;  %vm276_vm12 = vweird.f32 %v1486_v56 }
 0x326   :  { %v313_v59 = vmul.f32 %v1488_v57, %v311_v55  ;;  %vm318_vm13 = vweird.f32 %v1488_v57  ;;  %vm277_vm15 = vmor %vm275_vm14, %vm276_vm12 }
 0x327   :  { %v272_v60 = vsub.f32 1.0, %v271_v58  ;;  %vm319_vm3 = vmor %vm317_vm0, %vm318_vm13 }
 0x328   :  { %v314_v61 = vsub.f32 1.0, %v313_v59 }
 0x329   :  { %v273_v62 = vmul.f32 %v1486_v56, %v272_v60 }
 0x32a   :  { %v315_v63 = vmul.f32 %v1488_v57, %v314_v61 }
 0x32b   :  { %v274_v0 = vadd.f32 %v1486_v56, %v273_v62 }
 0x32c   :  { %v316_v2 = vadd.f32 %v1488_v57, %v315_v63 }
 0x32d   :  { %v278_v9 = vsel %vm277_vm15, %v1486_v56, %v274_v0 }
 0x32e   :  { %v320_v11 = vsel %vm319_vm3, %v1488_v57, %v316_v2  ;;  %v283_v15 = vsel %vm280_vm4, %v282_v10, %v278_v9 }
 0x32f   :  { %v325_v18 = vsel %vm322_vm5, %v324_v12, %v320_v11  ;;  %v290_v30 = vmul.f32 %v288_v22, %v283_v15 }
 0x38c   :  { %v293_v13 = vpop.permute.xlu0 %292 }
 0x38d   :  { %v295_v16 = vmul.f32 %v293_v13, %v283_v15  ;;  %v335_v19 = vpop.permute.xlu1 %334 }
 0x38e   :  { %v337_v21 = vmul.f32 %v335_v19, %v325_v18 }
 0x38f   :  { %297 = vrot.lane.b32.xlu0 %v295_v16, %s1590_s13 }
 0x390   :  { %339 = vrot.lane.b32.xlu2 %v337_v21, %s1590_s13 }
 0x395   :  { %v330_v24 = vpop.permute.xlu1 %329 }
 0x396   :  { %v332_v25 = vmul.f32 %v330_v24, %v325_v18 }
 0x3ea   :  { %v340_v27 = vpop.permute.xlu2 %339 }
 0x3eb   :  { %v342_v28 = vadd.f32 %v340_v27, %v332_v25 }
 0x3ed   :  { %1489 = vtanh.f32 %v342_v28 }
 0x3f3   :  { %v1490_v29 = vpop.eup %1489 }
 0x3f4   :  { %345 = vrot.lane.b32.xlu1 %v1490_v29, %s1590_s13 }
 0x401   :  { %v298_v32 = vpop.permute.xlu0 %297 }
 0x402   :  { %v300_v33 = vadd.f32 %v298_v32, %v290_v30 }
 0x404   :  { %1491 = vtanh.f32 %v300_v33 }
 0x40a   :  { %v1492_v34 = vpop.eup %1491 }
 0x40b   :  { %303 = vrot.lane.b32.xlu0 %v1492_v34, %s1590_s13 }
 0x466   :  { %v346_v38 = vpop.permute.xlu1 %345 }
 0x467   :  { %v348_v39 = vmul.f32 %v346_v38, %v325_v18 }
 0x47d   :  { %v304_v35 = vpop.permute.xlu0 %303 }
 0x47e   :  { %v306_v36 = vmul.f32 %v304_v35, %v283_v15 }
 0x480   :  { %350 = vst [vmem:[#allocation1] ss:$4 sm:$0xff] %v306_v36 }
 0x487   :  { %v351_v40 = vld.sshfl [vmem:[#allocation1] sm:$0xff pattern:$0x73625140] }
 0x488   :  { %357 = vst [vmem:[#allocation1] ss:$4 sm:$0xff] %v348_v39  ;;  %352 = vrot.lane.b32.xlu2 %v351_v40, %s1591_s17 }
 0x48f   :  { %v358_v41 = vld.sshfl [vmem:[#allocation1] sm:$0xff pattern:$0x73625140] }
 0x490   :  { %364 = vst [vmem:[#allocation1] ss:$4 sm:$0xff] %v300_v33  ;;  %359 = vrot.lane.b32.xlu0 %v358_v41, %s1592_s18 }
 0x497   :  { %v365_v42 = vld.sshfl [vmem:[#allocation1] sm:$0xff pattern:$0x73625140] }
 0x498   :  { %371 = vst [vmem:[#allocation1] ss:$4 sm:$0xff] %v342_v28  ;;  %366 = vrot.lane.b32.xlu1 %v365_v42, %s1592_s18 }
 0x49f   :  { %v372_v43 = vld.sshfl [vmem:[#allocation1] sm:$0xff pattern:$0x73625140] }
 0x4a0   :  { %377 = vst [vmem:[#allocation1] ss:$4 sm:$0xff] %v306_v36  ;;  %373 = vrot.lane.b32.xlu2 %v372_v43, %s1592_s18 }
 0x4a7   :  { %v1770_v44 = vld.sshfl [vmem:[#allocation1] sm:$0xff pattern:$0x73625140] }
 0x4a8   :  { %384 = vst [vmem:[#allocation1] ss:$4 sm:$0xff] %v348_v39 }
 0x4e2   :  { %v353_v45 = vpop.permute.xlu2 %352 }
 0x4e3   :  { %355 = vst.msk [vmem:[#allocation2] sm:$0x3] %vm14_vm1, %v353_v45 }
 0x4fa   :  { %v374_v46 = vpop.permute.xlu2 %373 }
 0x4fb   :  { %376 = vst.msk [vmem:[#allocation4] sm:$0x3] %vm14_vm1, %v374_v46 }
 0x502   :  { %v360_v47 = vpop.permute.xlu0 %359  ;;  %v470_v62 = vld [vmem:[#allocation4] sm:$0x3] }
 0x503   :  { %362 = vst.msk [vmem:[#allocation2] sm:$0x3] %vm199_vm11, %v360_v47 }
 0x50a   :  { %v391_v48 = vld [vmem:[#allocation2] sm:$0x3]  ;;  %v367_v49 = vpop.permute.xlu1 %366 }
 0x50b   :  { %369 = vst.msk [vmem:[#allocation3] sm:$0x3] %vm14_vm1, %v367_v49  ;;  %v392_v50 = vpack.c.bf16 %v391_v48, %v391_v48 }
 0x50d   :  { %1403 = vmatmul.msk.bf16.vlgmr.msrb.gmra.mxu0 %vm67_vm2, %v392_v50  ;;  %1404 = vmatmul.msk.bf16.vlgmr.msrb.gmra.mxu1 %vm67_vm2, %v392_v50 }
 0x50e   :  { %1044 = vmatpush.bf16.msrb.mxu0 %v1617_v3  ;;  %1057 = vmatpush.bf16.msrb.mxu1 %v1631_v8 }
 0x512   :  { %v428_v51 = vld [vmem:[#allocation3] sm:$0x3]  ;;  %1045 = vmatpush.bf16.msrb.mxu0 %v1629_v7  ;;  %1058 = vmatpush.bf16.msrb.mxu1 %v1647_v14 }
 0x513   :  { %450 = vrot.lane.b32.xlu2 %v428_v51, %s1590_s13 }
 0x516   :  { %1046 = vmatpush.bf16.msrb.mxu0 %v1659_v17  ;;  %1059 = vmatpush.bf16.msrb.mxu1 %v1669_v20 }
 0x51a   :  { %1047 = vmatpush.bf16.msrb.mxu0 %v1679_v23  ;;  %1060 = vmatpush.bf16.msrb.mxu1 %v1683_v26 }
 0x56d   :  { %v451_v39 = vpop.permute.xlu2 %450 }
 0x58a   :  { %v405_v54 = vpop.f32.mrf.mxu0  ;;  %v418_v55 = vpop.f32.mrf.mxu1 }
 0x58b   :  { %v424_v56 = vadd.f32 %v1405_v52, %v405_v54  ;;  %v427_v57 = vadd.f32 %v1406_v53, %v418_v55  ;;  %v1800_v52 = vld.sshfl [vmem:[#allocation1] sm:$0xff pattern:$0x73625140] }
 0x58d   :  { %1493 = vtanh.f32 %v424_v56  ;;  %v1407_v63 = vmul.f32 -1.442695, %v424_v56  ;;  %v1408_v0 = vmul.f32 -1.442695, %v427_v57 }
 0x58e   :  { %1495 = vtanh.f32 %v427_v57 }
 0x58f   :  { %1497 = vpow2.f32 %v1407_v63 }
 0x590   :  { %1499 = vpow2.f32 %v1408_v0 }
 0x592   :  { %v407_v58 = vpop.f32.mrf.mxu0  ;;  %v420_v59 = vpop.f32.mrf.mxu1 }
 0x593   :  { %v1494_v60 = vpop.eup %1493 }
 0x594   :  { %v1496_v61 = vpop.eup %1495  ;;  %455 = vrot.lane.b32.xlu0 %v1494_v60, %s1590_s13 }
 0x595   :  { %497 = vrot.lane.b32.xlu1 %v1496_v61, %s1590_s13  ;;  %v1498_v1 = vpop.eup %1497 }
 0x596   :  { %v1500_v2 = vpop.eup %1499  ;;  %v432_v4 = vadd.f32 1.0, %v1498_v1 }
 0x597   :  { %v474_v5 = vadd.f32 1.0, %v1500_v2 }
 0x598   :  { %1501 = vrcp.f32 %v432_v4  ;;  %v444_v19 = vand.u32 2147483648, %v432_v4  ;;  %vm438_vm8 = vweird.f32 %v432_v4  ;;  %v442_v22 = vand.u32 2147483647, %v432_v4 }
 0x599   :  { %1503 = vrcp.f32 %v474_v5  ;;  %v486_v24 = vand.u32 2147483648, %v474_v5  ;;  %vm480_vm10 = vweird.f32 %v474_v5  ;;  %v484_v25 = vand.u32 2147483647, %v474_v5 }
 0x59a   :  { %v445_v28 = vor.u32 1.1754944e-38, %v444_v19  ;;  %vm443_vm13 = vcmp.eq.f32.partialorder %v442_v22, 8.507059e+37 }
 0x59b   :  { %v487_v30 = vor.u32 1.1754944e-38, %v486_v24  ;;  %vm485_vm14 = vcmp.eq.f32.partialorder %v484_v25, 8.507059e+37 }
 0x59d   :  { %492 = vrot.lane.b32.xlu1 %v470_v62, %s1590_s13 }
 0x59e   :  { %v1502_v6 = vpop.eup %1501 }
 0x59f   :  { %v1504_v9 = vpop.eup %1503  ;;  %v434_v10 = vmul.f32 %v1502_v6, %v432_v4  ;;  %vm439_vm6 = vweird.f32 %v1502_v6 }
 0x5a0   :  { %v476_v11 = vmul.f32 %v1504_v9, %v474_v5  ;;  %vm481_vm7 = vweird.f32 %v1504_v9  ;;  %vm440_vm9 = vmor %vm438_vm8, %vm439_vm6 }
 0x5a1   :  { %v435_v12 = vsub.f32 1.0, %v434_v10  ;;  %vm482_vm12 = vmor %vm480_vm10, %vm481_vm7 }
 0x5a2   :  { %v477_v13 = vsub.f32 1.0, %v476_v11 }
 0x5a3   :  { %v436_v15 = vmul.f32 %v1502_v6, %v435_v12 }
 0x5a4   :  { %v478_v16 = vmul.f32 %v1504_v9, %v477_v13 }
 0x5a5   :  { %v437_v18 = vadd.f32 %v1502_v6, %v436_v15 }
 0x5a6   :  { %v479_v21 = vadd.f32 %v1504_v9, %v478_v16 }
 0x5a7   :  { %v441_v27 = vsel %vm440_vm9, %v1502_v6, %v437_v18 }
 0x5a8   :  { %v483_v29 = vsel %vm482_vm12, %v1504_v9, %v479_v21  ;;  %v446_v33 = vsel %vm443_vm13, %v445_v28, %v441_v27 }
 0x5a9   :  { %v488_v35 = vsel %vm485_vm14, %v487_v30, %v483_v29  ;;  %v453_v46 = vmul.f32 %v451_v39, %v446_v33 }
 0x606   :  { %v456_v32 = vpop.permute.xlu0 %455 }
 0x607   :  { %v458_v34 = vmul.f32 %v456_v32, %v446_v33  ;;  %v498_v36 = vpop.permute.xlu1 %497 }
 0x608   :  { %v500_v38 = vmul.f32 %v498_v36, %v488_v35 }
 0x609   :  { %460 = vrot.lane.b32.xlu0 %v458_v34, %s1590_s13 }
 0x60a   :  { %502 = vrot.lane.b32.xlu2 %v500_v38, %s1590_s13 }
 0x60f   :  { %v493_v40 = vpop.permute.xlu1 %492 }
 0x610   :  { %v495_v41 = vmul.f32 %v493_v40, %v488_v35 }
 0x664   :  { %v503_v42 = vpop.permute.xlu2 %502 }
 0x665   :  { %v505_v43 = vadd.f32 %v503_v42, %v495_v41 }
 0x667   :  { %1505 = vtanh.f32 %v505_v43 }
 0x66d   :  { %v1506_v45 = vpop.eup %1505 }
 0x66e   :  { %508 = vrot.lane.b32.xlu1 %v1506_v45, %s1590_s13 }
 0x67b   :  { %v461_v47 = vpop.permute.xlu0 %460 }
 0x67c   :  { %v463_v48 = vadd.f32 %v461_v47, %v453_v46 }
 0x67e   :  { %1507 = vtanh.f32 %v463_v48 }
 0x684   :  { %v1508_v49 = vpop.eup %1507 }
 0x685   :  { %466 = vrot.lane.b32.xlu0 %v1508_v49, %s1590_s13 }
 0x6e0   :  { %v509_v53 = vpop.permute.xlu1 %508 }
 0x6e1   :  { %v511_v54 = vmul.f32 %v509_v53, %v488_v35 }
 0x6f7   :  { %v467_v50 = vpop.permute.xlu0 %466 }
 0x6f8   :  { %v469_v51 = vmul.f32 %v467_v50, %v446_v33 }
 0x6fa   :  { %513 = vst [vmem:[#allocation1] ss:$4 sm:$0xff] %v469_v51 }
 0x701   :  { %v514_v55 = vld.sshfl [vmem:[#allocation1] sm:$0xff pattern:$0x73625140] }
 0x702   :  { %520 = vst [vmem:[#allocation1] ss:$4 sm:$0xff] %v511_v54  ;;  %515 = vrot.lane.b32.xlu2 %v514_v55, %s1591_s17 }
 0x709   :  { %v521_v56 = vld.sshfl [vmem:[#allocation1] sm:$0xff pattern:$0x73625140] }
 0x70a   :  { %527 = vst [vmem:[#allocation1] ss:$4 sm:$0xff] %v463_v48  ;;  %522 = vrot.lane.b32.xlu0 %v521_v56, %s1592_s18 }
 0x711   :  { %v528_v57 = vld.sshfl [vmem:[#allocation1] sm:$0xff pattern:$0x73625140] }
 0x712   :  { %534 = vst [vmem:[#allocation1] ss:$4 sm:$0xff] %v505_v43  ;;  %529 = vrot.lane.b32.xlu1 %v528_v57, %s1592_s18 }
 0x719   :  { %v535_v58 = vld.sshfl [vmem:[#allocation1] sm:$0xff pattern:$0x73625140] }
 0x71a   :  { %540 = vst [vmem:[#allocation1] ss:$4 sm:$0xff] %v469_v51  ;;  %536 = vrot.lane.b32.xlu2 %v535_v58, %s1592_s18 }
 0x721   :  { %v1806_v59 = vld.sshfl [vmem:[#allocation1] sm:$0xff pattern:$0x73625140] }
 0x722   :  { %547 = vst [vmem:[#allocation1] ss:$4 sm:$0xff] %v511_v54 }
 0x75c   :  { %v516_v60 = vpop.permute.xlu2 %515 }
 0x75d   :  { %518 = vst.msk [vmem:[#allocation2] sm:$0x3] %vm14_vm1, %v516_v60 }
 0x774   :  { %v537_v61 = vpop.permute.xlu2 %536 }
 0x775   :  { %539 = vst.msk [vmem:[#allocation4] sm:$0x3] %vm14_vm1, %v537_v61  ;;  %v1836_v61 = vld.sshfl [vmem:[#allocation1] sm:$0xff pattern:$0x73625140] }
 0x77c   :  { %v523_v62 = vpop.permute.xlu0 %522 }
 0x77d   :  { %525 = vst.msk [vmem:[#allocation2] sm:$0x3] %vm199_vm11, %v523_v62 }
 0x784   :  { %v530_v63 = vpop.permute.xlu1 %529  ;;  %v554_v0 = vld [vmem:[#allocation2] sm:$0x3] }
 0x785   :  { %532 = vst.msk [vmem:[#allocation3] sm:$0x3] %vm14_vm1, %v530_v63  ;;  %v555_v1 = vpack.c.bf16 %v554_v0, %v554_v0 }
 0x787   :  { %1411 = vmatmul.msk.bf16.vlgmr.msrb.gmra.mxu2 %vm67_vm2, %v555_v1  ;;  %1412 = vmatmul.msk.bf16.vlgmr.msrb.gmra.mxu3 %vm67_vm2, %v555_v1 }
 0x788   :  { %1203 = vmatpush.bf16.msrb.mxu2 %v1617_v3  ;;  %1216 = vmatpush.bf16.msrb.mxu3 %v1631_v8  ;;  %v1413_v3 = vld [vmem:[%s2050_s0 + $0xc] sm:$0x3] }
 0x78c   :  { %v591_v2 = vld [vmem:[#allocation3] sm:$0x3]  ;;  %1204 = vmatpush.bf16.msrb.mxu2 %v1629_v7  ;;  %1217 = vmatpush.bf16.msrb.mxu3 %v1647_v14  ;;  %v1414_v7 = vld [vmem:[%s2050_s0 + $0x12] sm:$0x3] }
 0x78d   :  { %613 = vrot.lane.b32.xlu2 %v591_v2, %s1590_s13 }
 0x790   :  { %1205 = vmatpush.bf16.msrb.mxu2 %v1659_v17  ;;  %1218 = vmatpush.bf16.msrb.mxu3 %v1669_v20 }
 0x794   :  { %1206 = vmatpush.bf16.msrb.mxu2 %v1679_v23  ;;  %1219 = vmatpush.bf16.msrb.mxu3 %v1683_v26  ;;  %v633_v26 = vld [vmem:[#allocation4] sm:$0x3] }
 0x7e7   :  { %v614_v47 = vpop.permute.xlu2 %613 }
 0x80a   :  { %v568_v8 = vpop.f32.mrf.mxu2  ;;  %v581_v14 = vpop.f32.mrf.mxu3 }
 0x80b   :  { %v587_v4 = vadd.f32 %v1413_v3, %v568_v8  ;;  %v590_v5 = vadd.f32 %v1414_v7, %v581_v14 }
 0x80d   :  { %1509 = vtanh.f32 %v587_v4  ;;  %v1415_v9 = vmul.f32 -1.442695, %v587_v4  ;;  %v1416_v10 = vmul.f32 -1.442695, %v590_v5 }
 0x80e   :  { %1511 = vtanh.f32 %v590_v5 }
 0x80f   :  { %1513 = vpow2.f32 %v1415_v9 }
 0x810   :  { %1515 = vpow2.f32 %v1416_v10 }
 0x812   :  { %v570_v17 = vpop.f32.mrf.mxu2  ;;  %v583_v20 = vpop.f32.mrf.mxu3 }
 0x813   :  { %v1510_v6 = vpop.eup %1509 }
 0x814   :  { %v1512_v23 = vpop.eup %1511  ;;  %618 = vrot.lane.b32.xlu0 %v1510_v6, %s1590_s13 }
 0x815   :  { %660 = vrot.lane.b32.xlu1 %v1512_v23, %s1590_s13  ;;  %v1514_v11 = vpop.eup %1513  ;;  %v1421_v23 = vld [vmem:[%s2050_s0 + $0x10] sm:$0x3] }
 0x816   :  { %v1516_v12 = vpop.eup %1515  ;;  %v595_v13 = vadd.f32 1.0, %v1514_v11 }
 0x817   :  { %v637_v15 = vadd.f32 1.0, %v1516_v12 }
 0x818   :  { %1517 = vrcp.f32 %v595_v13  ;;  %v607_v29 = vand.u32 2147483648, %v595_v13  ;;  %vm601_vm3 = vweird.f32 %v595_v13  ;;  %v605_v32 = vand.u32 2147483647, %v595_v13 }
 0x819   :  { %1519 = vrcp.f32 %v637_v15  ;;  %v649_v33 = vand.u32 2147483648, %v637_v15  ;;  %vm643_vm5 = vweird.f32 %v637_v15  ;;  %v647_v34 = vand.u32 2147483647, %v637_v15 }
 0x81a   :  { %v608_v36 = vor.u32 1.1754944e-38, %v607_v29  ;;  %vm606_vm7 = vcmp.eq.f32.partialorder %v605_v32, 8.507059e+37 }
 0x81b   :  { %v650_v39 = vor.u32 1.1754944e-38, %v649_v33  ;;  %vm648_vm8 = vcmp.eq.f32.partialorder %v647_v34, 8.507059e+37 }
 0x81d   :  { %655 = vrot.lane.b32.xlu1 %v633_v26, %s1590_s13  ;;  %v1422_v26 = vld [vmem:[%s2050_s0 + $0xe] sm:$0x3] }
 0x81e   :  { %v1518_v16 = vpop.eup %1517 }
 0x81f   :  { %v1520_v18 = vpop.eup %1519  ;;  %v597_v19 = vmul.f32 %v1518_v16, %v595_v13  ;;  %vm602_vm15 = vweird.f32 %v1518_v16 }
 0x820   :  { %v639_v21 = vmul.f32 %v1520_v18, %v637_v15  ;;  %vm644_vm0 = vweird.f32 %v1520_v18  ;;  %vm603_vm4 = vmor %vm601_vm3, %vm602_vm15 }
 0x821   :  { %v598_v22 = vsub.f32 1.0, %v597_v19  ;;  %vm645_vm6 = vmor %vm643_vm5, %vm644_vm0 }
 0x822   :  { %v640_v24 = vsub.f32 1.0, %v639_v21 }
 0x823   :  { %v599_v25 = vmul.f32 %v1518_v16, %v598_v22 }
 0x824   :  { %v641_v27 = vmul.f32 %v1520_v18, %v640_v24 }
 0x825   :  { %v600_v28 = vadd.f32 %v1518_v16, %v599_v25 }
 0x826   :  { %v642_v30 = vadd.f32 %v1520_v18, %v641_v27 }
 0x827   :  { %v604_v35 = vsel %vm603_vm4, %v1518_v16, %v600_v28 }
 0x828   :  { %v646_v38 = vsel %vm645_vm6, %v1520_v18, %v642_v30  ;;  %v609_v41 = vsel %vm606_vm7, %v608_v36, %v604_v35 }
 0x829   :  { %v651_v43 = vsel %vm648_vm8, %v650_v39, %v646_v38  ;;  %v616_v54 = vmul.f32 %v614_v47, %v609_v41 }
 0x886   :  { %v619_v40 = vpop.permute.xlu0 %618 }
 0x887   :  { %v621_v42 = vmul.f32 %v619_v40, %v609_v41  ;;  %v661_v45 = vpop.permute.xlu1 %660 }
 0x888   :  { %v663_v46 = vmul.f32 %v661_v45, %v651_v43 }
 0x889   :  { %623 = vrot.lane.b32.xlu0 %v621_v42, %s1590_s13 }
 0x88a   :  { %665 = vrot.lane.b32.xlu2 %v663_v46, %s1590_s13 }
 0x88f   :  { %v656_v48 = vpop.permute.xlu1 %655 }
 0x890   :  { %v658_v49 = vmul.f32 %v656_v48, %v651_v43 }
 0x8e4   :  { %v666_v50 = vpop.permute.xlu2 %665 }
 0x8e5   :  { %v668_v51 = vadd.f32 %v666_v50, %v658_v49 }
 0x8e7   :  { %1521 = vtanh.f32 %v668_v51 }
 0x8ed   :  { %v1522_v53 = vpop.eup %1521 }
 0x8ee   :  { %671 = vrot.lane.b32.xlu1 %v1522_v53, %s1590_s13 }
 0x8fb   :  { %v624_v55 = vpop.permute.xlu0 %623 }
 0x8fc   :  { %v626_v56 = vadd.f32 %v624_v55, %v616_v54 }
 0x8fe   :  { %1523 = vtanh.f32 %v626_v56 }
 0x904   :  { %v1524_v57 = vpop.eup %1523 }
 0x905   :  { %629 = vrot.lane.b32.xlu0 %v1524_v57, %s1590_s13 }
 0x960   :  { %v672_v62 = vpop.permute.xlu1 %671 }
 0x961   :  { %v674_v63 = vmul.f32 %v672_v62, %v651_v43 }
 0x977   :  { %v630_v58 = vpop.permute.xlu0 %629 }
 0x978   :  { %v632_v60 = vmul.f32 %v630_v58, %v609_v41 }
 0x97a   :  { %676 = vst [vmem:[#allocation1] ss:$4 sm:$0xff] %v632_v60 }
 0x981   :  { %v677_v0 = vld.sshfl [vmem:[#allocation1] sm:$0xff pattern:$0x73625140] }
 0x982   :  { %678 = vrot.lane.b32.xlu2 %v677_v0, %s1591_s17  ;;  %683 = vst [vmem:[#allocation1] ss:$4 sm:$0xff] %v674_v63 }
 0x989   :  { %v684_v1 = vld.sshfl [vmem:[#allocation1] sm:$0xff pattern:$0x73625140] }
 0x98a   :  { %685 = vrot.lane.b32.xlu0 %v684_v1, %s1592_s18  ;;  %690 = vst [vmem:[#allocation1] ss:$4 sm:$0xff] %v626_v56 }
 0x991   :  { %v691_v2 = vld.sshfl [vmem:[#allocation1] sm:$0xff pattern:$0x73625140] }
 0x992   :  { %692 = vrot.lane.b32.xlu1 %v691_v2, %s1592_s18  ;;  %697 = vst [vmem:[#allocation1] ss:$4 sm:$0xff] %v668_v51 }
 0x999   :  { %v698_v3 = vld.sshfl [vmem:[#allocation1] sm:$0xff pattern:$0x73625140] }
 0x99a   :  { %699 = vrot.lane.b32.xlu2 %v698_v3, %s1592_s18  ;;  %703 = vst [vmem:[#allocation1] ss:$4 sm:$0xff] %v632_v60 }
 0x9a1   :  { %v1842_v7 = vld.sshfl [vmem:[#allocation1] sm:$0xff pattern:$0x73625140] }
 0x9a2   :  { %710 = vst [vmem:[#allocation1] ss:$4 sm:$0xff] %v674_v63 }
 0x9dc   :  { %v679_v8 = vpop.permute.xlu2 %678 }
 0x9dd   :  { %681 = vst.msk [vmem:[#allocation2] sm:$0x3] %vm14_vm1, %v679_v8 }
 0x9f4   :  { %v700_v14 = vpop.permute.xlu2 %699 }
 0x9f5   :  { %702 = vst.msk [vmem:[#allocation4] sm:$0x3] %vm14_vm1, %v700_v14 }
 0x9fc   :  { %v686_v4 = vpop.permute.xlu0 %685  ;;  %v794_v19 = vld [vmem:[#allocation4] sm:$0x3] }
 0x9fd   :  { %688 = vst.msk [vmem:[#allocation2] sm:$0x3] %vm199_vm11, %v686_v4 }
 0xa04   :  { %v693_v5 = vpop.permute.xlu1 %692  ;;  %v717_v17 = vld [vmem:[#allocation2] sm:$0x3] }
 0xa05   :  { %695 = vst.msk [vmem:[#allocation3] sm:$0x3] %vm14_vm1, %v693_v5  ;;  %v718_v20 = vpack.c.bf16 %v717_v17, %v717_v17  ;;  %v1864_v5 = vld.sshfl [vmem:[#allocation1] sm:$0xff pattern:$0x73625140] }
 0xa07   :  { %1419 = vmatmul.msk.bf16.vlgmr.msra.gmra.mxu0 %vm67_vm2, %v718_v20  ;;  %1420 = vmatmul.msk.bf16.vlgmr.msra.gmra.mxu1 %vm67_vm2, %v718_v20 }
 0xa0c   :  { %v752_v6 = vld [vmem:[#allocation3] sm:$0x3] }
 0xa0d   :  { %774 = vrot.lane.b32.xlu2 %v752_v6, %s1590_s13 }
 0xa67   :  { %v775_v57 = vpop.permute.xlu2 %774 }
 0xa84   :  { %v731_v9 = vpop.f32.mrf.mxu0  ;;  %v744_v10 = vpop.f32.mrf.mxu1 }
 0xa85   :  { %v749_v11 = vadd.f32 %v1421_v23, %v731_v9  ;;  %v751_v12 = vadd.f32 %v1422_v26, %v744_v10 }
 0xa87   :  { %1525 = vtanh.f32 %v749_v11  ;;  %v1423_v21 = vmul.f32 -1.442695, %v749_v11  ;;  %v1424_v22 = vmul.f32 -1.442695, %v751_v12 }
 0xa88   :  { %1527 = vtanh.f32 %v751_v12 }
 0xa89   :  { %1529 = vpow2.f32 %v1423_v21  ;;  %v1429_v21 = vld [vmem:[%s2050_s0 + $0x14] sm:$0x3] }
 0xa8a   :  { %1531 = vpow2.f32 %v1424_v22  ;;  %v1430_v22 = vld [vmem:[%s2050_s0 + $0xa] sm:$0x3] }
 0xa8c   :  { %v733_v13 = vpop.f32.mrf.mxu0  ;;  %v746_v15 = vpop.f32.mrf.mxu1 }
 0xa8d   :  { %v1526_v16 = vpop.eup %1525 }
 0xa8e   :  { %v1528_v18 = vpop.eup %1527  ;;  %779 = vrot.lane.b32.xlu0 %v1526_v16, %s1590_s13 }
 0xa8f   :  { %821 = vrot.lane.b32.xlu1 %v1528_v18, %s1590_s13  ;;  %v1530_v24 = vpop.eup %1529 }
 0xa90   :  { %v1532_v25 = vpop.eup %1531  ;;  %v756_v27 = vadd.f32 1.0, %v1530_v24 }
 0xa91   :  { %v798_v28 = vadd.f32 1.0, %v1532_v25 }
 0xa92   :  { %1533 = vrcp.f32 %v756_v27  ;;  %v768_v40 = vand.u32 2147483648, %v756_v27  ;;  %vm762_vm12 = vweird.f32 %v756_v27  ;;  %v766_v42 = vand.u32 2147483647, %v756_v27 }
 0xa93   :  { %1535 = vrcp.f32 %v798_v28  ;;  %v810_v43 = vand.u32 2147483648, %v798_v28  ;;  %vm804_vm14 = vweird.f32 %v798_v28  ;;  %v808_v45 = vand.u32 2147483647, %v798_v28 }
 0xa94   :  { %v769_v47 = vor.u32 1.1754944e-38, %v768_v40  ;;  %vm767_vm0 = vcmp.eq.f32.partialorder %v766_v42, 8.507059e+37 }
 0xa95   :  { %v811_v49 = vor.u32 1.1754944e-38, %v810_v43  ;;  %vm809_vm3 = vcmp.eq.f32.partialorder %v808_v45, 8.507059e+37 }
 0xa97   :  { %816 = vrot.lane.b32.xlu1 %v794_v19, %s1590_s13 }
 0xa98   :  { %v1534_v29 = vpop.eup %1533 }
 0xa99   :  { %v1536_v30 = vpop.eup %1535  ;;  %v758_v32 = vmul.f32 %v1534_v29, %v756_v27  ;;  %vm763_vm9 = vweird.f32 %v1534_v29 }
 0xa9a   :  { %v800_v33 = vmul.f32 %v1536_v30, %v798_v28  ;;  %vm805_vm10 = vweird.f32 %v1536_v30  ;;  %vm764_vm13 = vmor %vm762_vm12, %vm763_vm9 }
 0xa9b   :  { %v759_v34 = vsub.f32 1.0, %v758_v32  ;;  %vm806_vm15 = vmor %vm804_vm14, %vm805_vm10 }
 0xa9c   :  { %v801_v35 = vsub.f32 1.0, %v800_v33 }
 0xa9d   :  { %v760_v36 = vmul.f32 %v1534_v29, %v759_v34 }
 0xa9e   :  { %v802_v38 = vmul.f32 %v1536_v30, %v801_v35 }
 0xa9f   :  { %v761_v39 = vadd.f32 %v1534_v29, %v760_v36 }
 0xaa0   :  { %v803_v41 = vadd.f32 %v1536_v30, %v802_v38 }
 0xaa1   :  { %v765_v46 = vsel %vm764_vm13, %v1534_v29, %v761_v39 }
 0xaa2   :  { %v807_v48 = vsel %vm806_vm15, %v1536_v30, %v803_v41  ;;  %v770_v51 = vsel %vm767_vm0, %v769_v47, %v765_v46 }
 0xaa3   :  { %v812_v54 = vsel %vm809_vm3, %v811_v49, %v807_v48  ;;  %v777_v1 = vmul.f32 %v775_v57, %v770_v51 }
 0xb00   :  { %v780_v50 = vpop.permute.xlu0 %779 }
 0xb01   :  { %v782_v53 = vmul.f32 %v780_v50, %v770_v51  ;;  %v822_v55 = vpop.permute.xlu1 %821 }
 0xb02   :  { %v824_v56 = vmul.f32 %v822_v55, %v812_v54 }
 0xb03   :  { %784 = vrot.lane.b32.xlu0 %v782_v53, %s1590_s13 }
 0xb04   :  { %826 = vrot.lane.b32.xlu2 %v824_v56, %s1590_s13 }
 0xb09   :  { %v817_v58 = vpop.permute.xlu1 %816 }
 0xb0a   :  { %v819_v60 = vmul.f32 %v817_v58, %v812_v54 }
 0xb5e   :  { %v827_v62 = vpop.permute.xlu2 %826 }
 0xb5f   :  { %v829_v63 = vadd.f32 %v827_v62, %v819_v60 }
 0xb61   :  { %1537 = vtanh.f32 %v829_v63 }
 0xb67   :  { %v1538_v0 = vpop.eup %1537 }
 0xb68   :  { %832 = vrot.lane.b32.xlu1 %v1538_v0, %s1590_s13 }
 0xb75   :  { %v785_v2 = vpop.permute.xlu0 %784 }
 0xb76   :  { %v787_v3 = vadd.f32 %v785_v2, %v777_v1 }
 0xb78   :  { %1539 = vtanh.f32 %v787_v3 }
 0xb7e   :  { %v1540_v8 = vpop.eup %1539 }
 0xb7f   :  { %790 = vrot.lane.b32.xlu0 %v1540_v8, %s1590_s13 }
 0xbda   :  { %v833_v17 = vpop.permute.xlu1 %832 }
 0xbdb   :  { %v835_v20 = vmul.f32 %v833_v17, %v812_v54 }
 0xbf1   :  { %v791_v14 = vpop.permute.xlu0 %790 }
 0xbf2   :  { %v793_v4 = vmul.f32 %v791_v14, %v770_v51 }
 0xbf4   :  { %837 = vst [vmem:[#allocation1] ss:$4 sm:$0xff] %v793_v4 }
 0xbfb   :  { %v838_v6 = vld.sshfl [vmem:[#allocation1] sm:$0xff pattern:$0x73625140] }
 0xbfc   :  { %839 = vrot.lane.b32.xlu2 %v838_v6, %s1591_s17  ;;  %844 = vst [vmem:[#allocation1] ss:$4 sm:$0xff] %v835_v20 }
 0xc03   :  { %v845_v23 = vld.sshfl [vmem:[#allocation1] sm:$0xff pattern:$0x73625140] }
 0xc04   :  { %846 = vrot.lane.b32.xlu0 %v845_v23, %s1592_s18  ;;  %851 = vst [vmem:[#allocation1] ss:$4 sm:$0xff] %v787_v3 }
 0xc0b   :  { %v852_v26 = vld.sshfl [vmem:[#allocation1] sm:$0xff pattern:$0x73625140] }
 0xc0c   :  { %853 = vrot.lane.b32.xlu1 %v852_v26, %s1592_s18  ;;  %858 = vst [vmem:[#allocation1] ss:$4 sm:$0xff] %v829_v63 }
 0xc13   :  { %v859_v9 = vld.sshfl [vmem:[#allocation1] sm:$0xff pattern:$0x73625140] }
 0xc14   :  { %860 = vrot.lane.b32.xlu2 %v859_v9, %s1592_s18  ;;  %864 = vst [vmem:[#allocation1] ss:$4 sm:$0xff] %v793_v4 }
 0xc1b   :  { %v1870_v10 = vld.sshfl [vmem:[#allocation1] sm:$0xff pattern:$0x73625140] }
 0xc1c   :  { %870 = vst [vmem:[#allocation1] ss:$4 sm:$0xff] %v835_v20 }
 0xc56   :  { %v840_v11 = vpop.permute.xlu2 %839 }
 0xc57   :  { %842 = vst.msk [vmem:[#allocation2] sm:$0x3] %vm14_vm1, %v840_v11 }
 0xc6e   :  { %v861_v12 = vpop.permute.xlu2 %860 }
 0xc6f   :  { %863 = vst.msk [vmem:[#allocation4] sm:$0x3] %vm14_vm1, %v861_v12 }
 0xc76   :  { %v847_v13 = vpop.permute.xlu0 %846  ;;  %v953_v34 = vld [vmem:[#allocation4] sm:$0x3] }
 0xc77   :  { %849 = vst.msk [vmem:[#allocation2] sm:$0x3] %vm199_vm11, %v847_v13 }
 0xc7e   :  { %v854_v15 = vpop.permute.xlu1 %853  ;;  %v876_v16 = vld [vmem:[#allocation2] sm:$0x3] }
 0xc7f   :  { %856 = vst.msk [vmem:[#allocation3] sm:$0x3] %vm14_vm1, %v854_v15  ;;  %v877_v18 = vpack.c.bf16 %v876_v16, %v876_v16 }
 0xc81   :  { %1427 = vmatmul.msk.bf16.vlgmr.msra.gmra.mxu2 %vm67_vm2, %v877_v18  ;;  %1428 = vmatmul.msk.bf16.vlgmr.msra.gmra.mxu3 %vm67_vm2, %v877_v18  ;;  %v1892_v18 = vld.sshfl [vmem:[#allocation1] sm:$0xff pattern:$0x73625140] }
 0xc86   :  { %v911_v19 = vld [vmem:[#allocation3] sm:$0x3] }
 0xc87   :  { %933 = vrot.lane.b32.xlu2 %v911_v19, %s1590_s13 }
 0xce1   :  { %v934_v4 = vpop.permute.xlu2 %933 }
 0xd04   :  { %v890_v24 = vpop.f32.mrf.mxu2  ;;  %v903_v25 = vpop.f32.mrf.mxu3 }
 0xd05   :  { %v908_v27 = vadd.f32 %v1429_v21, %v890_v24  ;;  %v910_v28 = vadd.f32 %v1430_v22, %v903_v25 }
 0xd07   :  { %1541 = vtanh.f32 %v908_v27  ;;  %v1431_v35 = vmul.f32 -1.442695, %v908_v27  ;;  %v1432_v36 = vmul.f32 -1.442695, %v910_v28 }
 0xd08   :  { %1543 = vtanh.f32 %v910_v28 }
 0xd09   :  { %1545 = vpow2.f32 %v1431_v35 }
 0xd0a   :  { %1547 = vpow2.f32 %v1432_v36 }
 0xd0c   :  { %v892_v29 = vpop.f32.mrf.mxu2  ;;  %v905_v30 = vpop.f32.mrf.mxu3 }
 0xd0d   :  { %v1542_v32 = vpop.eup %1541 }
 0xd0e   :  { %v1544_v33 = vpop.eup %1543  ;;  %938 = vrot.lane.b32.xlu0 %v1542_v32, %s1590_s13 }
 0xd0f   :  { %980 = vrot.lane.b32.xlu1 %v1544_v33, %s1590_s13  ;;  %v1546_v38 = vpop.eup %1545 }
 0xd10   :  { %v1548_v39 = vpop.eup %1547  ;;  %v915_v40 = vadd.f32 1.0, %v1546_v38  ;;  %v1437_v38 = vld [vmem:[%s2050_s0 + $0x18] sm:$0x3] }
 0xd11   :  { %v957_v41 = vadd.f32 1.0, %v1548_v39  ;;  %v1438_v39 = vld [vmem:[%s2050_s0 + $0x6] sm:$0x3] }
 0xd12   :  { %1549 = vrcp.f32 %v915_v40  ;;  %v927_v53 = vand.u32 2147483648, %v915_v40  ;;  %vm921_vm6 = vweird.f32 %v915_v40  ;;  %v925_v55 = vand.u32 2147483647, %v915_v40 }
 0xd13   :  { %1551 = vrcp.f32 %v957_v41  ;;  %v969_v56 = vand.u32 2147483648, %v957_v41  ;;  %vm963_vm8 = vweird.f32 %v957_v41  ;;  %v967_v57 = vand.u32 2147483647, %v957_v41 }
 0xd14   :  { %v928_v60 = vor.u32 1.1754944e-38, %v927_v53  ;;  %vm926_vm10 = vcmp.eq.f32.partialorder %v925_v55, 8.507059e+37 }
 0xd15   :  { %v970_v63 = vor.u32 1.1754944e-38, %v969_v56  ;;  %vm968_vm12 = vcmp.eq.f32.partialorder %v967_v57, 8.507059e+37 }
 0xd17   :  { %975 = vrot.lane.b32.xlu1 %v953_v34, %s1590_s13 }
 0xd18   :  { %v1550_v42 = vpop.eup %1549 }
 0xd19   :  { %v1552_v43 = vpop.eup %1551  ;;  %v917_v45 = vmul.f32 %v1550_v42, %v915_v40  ;;  %vm922_vm4 = vweird.f32 %v1550_v42 }
 0xd1a   :  { %v959_v46 = vmul.f32 %v1552_v43, %v957_v41  ;;  %vm964_vm5 = vweird.f32 %v1552_v43  ;;  %vm923_vm7 = vmor %vm921_vm6, %vm922_vm4 }
 0xd1b   :  { %v918_v47 = vsub.f32 1.0, %v917_v45  ;;  %vm965_vm9 = vmor %vm963_vm8, %vm964_vm5 }
 0xd1c   :  { %v960_v48 = vsub.f32 1.0, %v959_v46 }
 0xd1d   :  { %v919_v49 = vmul.f32 %v1550_v42, %v918_v47 }
 0xd1e   :  { %v961_v50 = vmul.f32 %v1552_v43, %v960_v48 }
 0xd1f   :  { %v920_v51 = vadd.f32 %v1550_v42, %v919_v49 }
 0xd20   :  { %v962_v54 = vadd.f32 %v1552_v43, %v961_v50 }
 0xd21   :  { %v924_v58 = vsel %vm923_vm7, %v1550_v42, %v920_v51 }
 0xd22   :  { %v966_v62 = vsel %vm965_vm9, %v1552_v43, %v962_v54  ;;  %v929_v1 = vsel %vm926_vm10, %v928_v60, %v924_v58 }
 0xd23   :  { %v971_v3 = vsel %vm968_vm12, %v970_v63, %v966_v62  ;;  %v936_v9 = vmul.f32 %v934_v4, %v929_v1 }
 0xd80   :  { %v939_v0 = vpop.permute.xlu0 %938 }
 0xd81   :  { %v941_v2 = vmul.f32 %v939_v0, %v929_v1  ;;  %v981_v8 = vpop.permute.xlu1 %980 }
 0xd82   :  { %v983_v14 = vmul.f32 %v981_v8, %v971_v3 }
 0xd83   :  { %943 = vrot.lane.b32.xlu0 %v941_v2, %s1590_s13 }
 0xd84   :  { %985 = vrot.lane.b32.xlu2 %v983_v14, %s1590_s13 }
 0xd89   :  { %v976_v17 = vpop.permute.xlu1 %975 }
 0xd8a   :  { %v978_v20 = vmul.f32 %v976_v17, %v971_v3 }
 0xdde   :  { %v986_v6 = vpop.permute.xlu2 %985 }
 0xddf   :  { %v988_v23 = vadd.f32 %v986_v6, %v978_v20 }
 0xde1   :  { %1553 = vtanh.f32 %v988_v23 }
 0xde7   :  { %v1554_v26 = vpop.eup %1553 }
 0xde8   :  { %991 = vrot.lane.b32.xlu1 %v1554_v26, %s1590_s13 }
 0xdf5   :  { %v944_v11 = vpop.permute.xlu0 %943 }
 0xdf6   :  { %v946_v12 = vadd.f32 %v944_v11, %v936_v9 }
 0xdf8   :  { %1555 = vtanh.f32 %v946_v12 }
 0xdfe   :  { %v1556_v13 = vpop.eup %1555 }
 0xdff   :  { %949 = vrot.lane.b32.xlu0 %v1556_v13, %s1590_s13 }
 0xe5a   :  { %v992_v19 = vpop.permute.xlu1 %991 }
 0xe5b   :  { %v994_v21 = vmul.f32 %v992_v19, %v971_v3 }
 0xe71   :  { %v950_v15 = vpop.permute.xlu0 %949 }
 0xe72   :  { %v952_v16 = vmul.f32 %v950_v15, %v929_v1 }
 0xe74   :  { %996 = vst [vmem:[#allocation1] ss:$4 sm:$0xff] %v952_v16 }
 0xe7b   :  { %v997_v22 = vld.sshfl [vmem:[#allocation1] sm:$0xff pattern:$0x73625140] }
 0xe7c   :  { %998 = vrot.lane.b32.xlu2 %v997_v22, %s1591_s17  ;;  %1003 = vst [vmem:[#allocation1] ss:$4 sm:$0xff] %v994_v21 }
 0xe83   :  { %v1004_v24 = vld.sshfl [vmem:[#allocation1] sm:$0xff pattern:$0x73625140] }
 0xe84   :  { %1005 = vrot.lane.b32.xlu0 %v1004_v24, %s1592_s18  ;;  %1010 = vst [vmem:[#allocation1] ss:$4 sm:$0xff] %v946_v12 }
 0xe8b   :  { %v1011_v25 = vld.sshfl [vmem:[#allocation1] sm:$0xff pattern:$0x73625140] }
 0xe8c   :  { %1012 = vrot.lane.b32.xlu1 %v1011_v25, %s1592_s18  ;;  %1017 = vst [vmem:[#allocation1] ss:$4 sm:$0xff] %v988_v23 }
 0xe93   :  { %v1018_v27 = vld.sshfl [vmem:[#allocation1] sm:$0xff pattern:$0x73625140] }
 0xe94   :  { %1019 = vrot.lane.b32.xlu2 %v1018_v27, %s1592_s18  ;;  %1023 = vst [vmem:[#allocation1] ss:$4 sm:$0xff] %v952_v16 }
 0xe9b   :  { %v1898_v28 = vld.sshfl [vmem:[#allocation1] sm:$0xff pattern:$0x73625140] }
 0xe9c   :  { %1029 = vst [vmem:[#allocation1] ss:$4 sm:$0xff] %v994_v21 }
 0xed6   :  { %v999_v29 = vpop.permute.xlu2 %998 }
 0xed7   :  { %1001 = vst.msk [vmem:[#allocation2] sm:$0x3] %vm14_vm1, %v999_v29 }
 0xeee   :  { %v1020_v30 = vpop.permute.xlu2 %1019 }
 0xeef   :  { %1022 = vst.msk [vmem:[#allocation4] sm:$0x3] %vm14_vm1, %v1020_v30 }
 0xef6   :  { %v1006_v32 = vpop.permute.xlu0 %1005  ;;  %v1112_v49 = vld [vmem:[#allocation4] sm:$0x3] }
 0xef7   :  { %1008 = vst.msk [vmem:[#allocation2] sm:$0x3] %vm199_vm11, %v1006_v32 }
 0xefe   :  { %v1013_v33 = vpop.permute.xlu1 %1012  ;;  %v1035_v34 = vld [vmem:[#allocation2] sm:$0x3] }
 0xeff   :  { %1015 = vst.msk [vmem:[#allocation3] sm:$0x3] %vm14_vm1, %v1013_v33  ;;  %v1036_v35 = vpack.c.bf16 %v1035_v34, %v1035_v34 }
 0xf01   :  { %1435 = vmatmul.msk.bf16.vlgmr.msrb.gmra.mxu0 %vm67_vm2, %v1036_v35  ;;  %1436 = vmatmul.msk.bf16.vlgmr.msrb.gmra.mxu1 %vm67_vm2, %v1036_v35 }
 0xf06   :  { %v1070_v36 = vld [vmem:[#allocation3] sm:$0x3] }
 0xf07   :  { %1092 = vrot.lane.b32.xlu2 %v1070_v36, %s1590_s13 }
 0xf61   :  { %v1093_v21 = vpop.permute.xlu2 %1092 }
 0xf7e   :  { %v1049_v40 = vpop.f32.mrf.mxu0  ;;  %v1062_v41 = vpop.f32.mrf.mxu1 }
 0xf7f   :  { %v1067_v42 = vadd.f32 %v1437_v38, %v1049_v40  ;;  %v1069_v43 = vadd.f32 %v1438_v39, %v1062_v41  ;;  %v1920_v38 = vld.sshfl [vmem:[#allocation1] sm:$0xff pattern:$0x73625140] }
 0xf81   :  { %1557 = vtanh.f32 %v1067_v42  ;;  %v1439_v50 = vmul.f32 -1.442695, %v1067_v42  ;;  %v1440_v51 = vmul.f32 -1.442695, %v1069_v43 }
 0xf82   :  { %1559 = vtanh.f32 %v1069_v43 }
 0xf83   :  { %1561 = vpow2.f32 %v1439_v50 }
 0xf84   :  { %1563 = vpow2.f32 %v1440_v51 }
 0xf86   :  { %v1051_v45 = vpop.f32.mrf.mxu0  ;;  %v1064_v46 = vpop.f32.mrf.mxu1 }
 0xf87   :  { %v1558_v47 = vpop.eup %1557 }
 0xf88   :  { %v1560_v48 = vpop.eup %1559  ;;  %1097 = vrot.lane.b32.xlu0 %v1558_v47, %s1590_s13 }
 0xf89   :  { %1139 = vrot.lane.b32.xlu1 %v1560_v48, %s1590_s13  ;;  %v1562_v53 = vpop.eup %1561 }
 0xf8a   :  { %v1564_v54 = vpop.eup %1563  ;;  %v1074_v55 = vadd.f32 1.0, %v1562_v53 }
 0xf8b   :  { %v1116_v56 = vadd.f32 1.0, %v1564_v54 }
 0xf8c   :  { %1565 = vrcp.f32 %v1074_v55  ;;  %v1086_v8 = vand.u32 2147483648, %v1074_v55  ;;  %vm1080_vm15 = vweird.f32 %v1074_v55  ;;  %v1084_v4 = vand.u32 2147483647, %v1074_v55 }
 0xf8d   :  { %1567 = vrcp.f32 %v1116_v56  ;;  %v1128_v17 = vand.u32 2147483648, %v1116_v56  ;;  %vm1122_vm3 = vweird.f32 %v1116_v56  ;;  %v1126_v20 = vand.u32 2147483647, %v1116_v56 }
 0xf8e   :  { %v1087_v23 = vor.u32 1.1754944e-38, %v1086_v8  ;;  %vm1085_vm5 = vcmp.eq.f32.partialorder %v1084_v4, 8.507059e+37 }
 0xf8f   :  { %v1129_v9 = vor.u32 1.1754944e-38, %v1128_v17  ;;  %vm1127_vm6 = vcmp.eq.f32.partialorder %v1126_v20, 8.507059e+37 }
 0xf91   :  { %1134 = vrot.lane.b32.xlu1 %v1112_v49, %s1590_s13 }
 0xf92   :  { %v1566_v57 = vpop.eup %1565 }
 0xf93   :  { %v1568_v58 = vpop.eup %1567  ;;  %v1076_v60 = vmul.f32 %v1566_v57, %v1074_v55  ;;  %vm1081_vm13 = vweird.f32 %v1566_v57  ;;  %v1445_v55 = vld [vmem:[%s2050_s0 + $0x1c] sm:$0x3] }
 0xf94   :  { %v1118_v62 = vmul.f32 %v1568_v58, %v1116_v56  ;;  %vm1123_vm14 = vweird.f32 %v1568_v58  ;;  %vm1082_vm0 = vmor %vm1080_vm15, %vm1081_vm13  ;;  %v1227_v56 = vld [vmem:[%s2050_s0 + $0x2] sm:$0x3] }
 0xf95   :  { %v1077_v63 = vsub.f32 1.0, %v1076_v60  ;;  %vm1124_vm4 = vmor %vm1122_vm3, %vm1123_vm14 }
 0xf96   :  { %v1119_v0 = vsub.f32 1.0, %v1118_v62 }
 0xf97   :  { %v1078_v1 = vmul.f32 %v1566_v57, %v1077_v63 }
 0xf98   :  { %v1120_v2 = vmul.f32 %v1568_v58, %v1119_v0 }
 0xf99   :  { %v1079_v3 = vadd.f32 %v1566_v57, %v1078_v1 }
 0xf9a   :  { %v1121_v14 = vadd.f32 %v1568_v58, %v1120_v2 }
 0xf9b   :  { %v1083_v6 = vsel %vm1082_vm0, %v1566_v57, %v1079_v3 }
 0xf9c   :  { %v1125_v26 = vsel %vm1124_vm4, %v1568_v58, %v1121_v14  ;;  %v1088_v12 = vsel %vm1085_vm5, %v1087_v23, %v1083_v6 }
 0xf9d   :  { %v1130_v15 = vsel %vm1127_vm6, %v1129_v9, %v1125_v26  ;;  %v1095_v30 = vmul.f32 %v1093_v21, %v1088_v12 }
 0xffa   :  { %v1098_v11 = vpop.permute.xlu0 %1097 }
 0xffb   :  { %v1100_v13 = vmul.f32 %v1098_v11, %v1088_v12  ;;  %v1140_v16 = vpop.permute.xlu1 %1139 }
 0xffc   :  { %v1142_v19 = vmul.f32 %v1140_v16, %v1130_v15 }
 0xffd   :  { %1102 = vrot.lane.b32.xlu0 %v1100_v13, %s1590_s13 }
 0xffe   :  { %1144 = vrot.lane.b32.xlu2 %v1142_v19, %s1590_s13 }
0x1003   :  { %v1135_v22 = vpop.permute.xlu1 %1134 }
0x1004   :  { %v1137_v24 = vmul.f32 %v1135_v22, %v1130_v15 }
0x1058   :  { %v1145_v25 = vpop.permute.xlu2 %1144 }
0x1059   :  { %v1147_v27 = vadd.f32 %v1145_v25, %v1137_v24 }
0x105b   :  { %1569 = vtanh.f32 %v1147_v27 }
0x1061   :  { %v1570_v29 = vpop.eup %1569 }
0x1062   :  { %1150 = vrot.lane.b32.xlu1 %v1570_v29, %s1590_s13 }
0x106f   :  { %v1103_v32 = vpop.permute.xlu0 %1102 }
0x1070   :  { %v1105_v33 = vadd.f32 %v1103_v32, %v1095_v30 }
0x1072   :  { %1571 = vtanh.f32 %v1105_v33 }
0x1078   :  { %v1572_v34 = vpop.eup %1571 }
0x1079   :  { %1108 = vrot.lane.b32.xlu0 %v1572_v34, %s1590_s13 }
0x10d4   :  { %v1151_v39 = vpop.permute.xlu1 %1150 }
0x10d5   :  { %v1153_v40 = vmul.f32 %v1151_v39, %v1130_v15 }
0x10eb   :  { %v1109_v35 = vpop.permute.xlu0 %1108 }
0x10ec   :  { %v1111_v36 = vmul.f32 %v1109_v35, %v1088_v12 }
0x10ee   :  { %1155 = vst [vmem:[#allocation1] ss:$4 sm:$0xff] %v1111_v36 }
0x10f5   :  { %v1156_v41 = vld.sshfl [vmem:[#allocation1] sm:$0xff pattern:$0x73625140] }
0x10f6   :  { %1157 = vrot.lane.b32.xlu2 %v1156_v41, %s1591_s17  ;;  %1162 = vst [vmem:[#allocation1] ss:$4 sm:$0xff] %v1153_v40 }
0x10fd   :  { %v1163_v42 = vld.sshfl [vmem:[#allocation1] sm:$0xff pattern:$0x73625140] }
0x10fe   :  { %1164 = vrot.lane.b32.xlu0 %v1163_v42, %s1592_s18  ;;  %1169 = vst [vmem:[#allocation1] ss:$4 sm:$0xff] %v1105_v33 }
0x1105   :  { %v1170_v43 = vld.sshfl [vmem:[#allocation1] sm:$0xff pattern:$0x73625140] }
0x1106   :  { %1171 = vrot.lane.b32.xlu1 %v1170_v43, %s1592_s18  ;;  %1176 = vst [vmem:[#allocation1] ss:$4 sm:$0xff] %v1147_v27 }
0x110d   :  { %v1177_v45 = vld.sshfl [vmem:[#allocation1] sm:$0xff pattern:$0x73625140] }
0x110e   :  { %1178 = vrot.lane.b32.xlu2 %v1177_v45, %s1592_s18  ;;  %1182 = vst [vmem:[#allocation1] ss:$4 sm:$0xff] %v1111_v36 }
0x1115   :  { %v1926_v46 = vld.sshfl [vmem:[#allocation1] sm:$0xff pattern:$0x73625140] }
0x1116   :  { %1188 = vst [vmem:[#allocation1] ss:$4 sm:$0xff] %v1153_v40 }
0x1150   :  { %v1158_v47 = vpop.permute.xlu2 %1157 }
0x1151   :  { %1160 = vst.msk [vmem:[#allocation2] sm:$0x3] %vm14_vm1, %v1158_v47 }
0x1168   :  { %v1179_v48 = vpop.permute.xlu2 %1178 }
0x1169   :  { %1181 = vst.msk [vmem:[#allocation4] sm:$0x3] %vm14_vm1, %v1179_v48 }
0x1170   :  { %v1165_v49 = vpop.permute.xlu0 %1164  ;;  %v1271_v3 = vld [vmem:[#allocation4] sm:$0x3] }
0x1171   :  { %1167 = vst.msk [vmem:[#allocation2] sm:$0x3] %vm199_vm11, %v1165_v49 }
0x1178   :  { %v1172_v50 = vpop.permute.xlu1 %1171  ;;  %v1194_v51 = vld [vmem:[#allocation2] sm:$0x3] }
0x1179   :  { %1174 = vst.msk [vmem:[#allocation3] sm:$0x3] %vm14_vm1, %v1172_v50  ;;  %v1195_v53 = vpack.c.bf16 %v1194_v51, %v1194_v51 }
0x117b   :  { %1443 = vmatmul.msk.bf16.vlgmr.msrb.gmra.mxu2 %vm67_vm2, %v1195_v53  ;;  %1444 = vmatmul.msk.bf16.vlgmr.msrb.gmra.mxu3 %vm67_vm2, %v1195_v53 }
0x1180   :  { %v1229_v54 = vld [vmem:[#allocation3] sm:$0x3] }
0x1181   :  { %1251 = vrot.lane.b32.xlu2 %v1229_v54, %s1590_s13 }
0x11db   :  { %v1252_v42 = vpop.permute.xlu2 %1251 }
0x11fe   :  { %v1208_v57 = vpop.f32.mrf.mxu2  ;;  %v1221_v58 = vpop.f32.mrf.mxu3 }
0x11ff   :  { %v1226_v60 = vadd.f32 %v1445_v55, %v1208_v57  ;;  %v1228_v62 = vadd.f32 %v1227_v56, %v1221_v58 }
0x1201   :  { %1573 = vtanh.f32 %v1226_v60  ;;  %v1446_v8 = vmul.f32 -1.442695, %v1226_v60  ;;  %v1447_v14 = vmul.f32 -1.442695, %v1228_v62 }
0x1202   :  { %1575 = vtanh.f32 %v1228_v62 }
0x1203   :  { %1577 = vpow2.f32 %v1446_v8 }
0x1204   :  { %1579 = vpow2.f32 %v1447_v14 }
0x1206   :  { %v1210_v63 = vpop.f32.mrf.mxu2  ;;  %v1223_v0 = vpop.f32.mrf.mxu3 }
0x1207   :  { %v1574_v1 = vpop.eup %1573 }
0x1208   :  { %v1576_v2 = vpop.eup %1575  ;;  %1256 = vrot.lane.b32.xlu0 %v1574_v1, %s1590_s13 }
0x1209   :  { %1298 = vrot.lane.b32.xlu1 %v1576_v2, %s1590_s13  ;;  %v1578_v4 = vpop.eup %1577 }
0x120a   :  { %v1580_v17 = vpop.eup %1579  ;;  %v1233_v20 = vadd.f32 1.0, %v1578_v4 }
0x120b   :  { %v1275_v6 = vadd.f32 1.0, %v1580_v17 }
0x120c   :  { %1581 = vrcp.f32 %v1233_v20  ;;  %v1245_v21 = vand.u32 2147483648, %v1233_v20  ;;  %vm1239_vm8 = vweird.f32 %v1233_v20  ;;  %v1243_v24 = vand.u32 2147483647, %v1233_v20 }
0x120d   :  { %1583 = vrcp.f32 %v1275_v6  ;;  %v1287_v25 = vand.u32 2147483648, %v1275_v6  ;;  %vm1281_vm10 = vweird.f32 %v1275_v6  ;;  %v1285_v27 = vand.u32 2147483647, %v1275_v6 }
0x120e   :  { %v1246_v30 = vor.u32 1.1754944e-38, %v1245_v21  ;;  %vm1244_vm13 = vcmp.eq.f32.partialorder %v1243_v24, 8.507059e+37 }
0x120f   :  { %v1288_v33 = vor.u32 1.1754944e-38, %v1287_v25  ;;  %vm1286_vm14 = vcmp.eq.f32.partialorder %v1285_v27, 8.507059e+37 }
0x1211   :  { %1293 = vrot.lane.b32.xlu1 %v1271_v3, %s1590_s13 }
0x1212   :  { %v1582_v23 = vpop.eup %1581 }
0x1213   :  { %v1584_v26 = vpop.eup %1583  ;;  %v1235_v9 = vmul.f32 %v1582_v23, %v1233_v20  ;;  %vm1240_vm2 = vweird.f32 %v1582_v23 }
0x1214   :  { %v1277_v11 = vmul.f32 %v1584_v26, %v1275_v6  ;;  %vm1282_vm7 = vweird.f32 %v1584_v26  ;;  %vm1241_vm9 = vmor %vm1239_vm8, %vm1240_vm2 }
0x1215   :  { %v1236_v12 = vsub.f32 1.0, %v1235_v9  ;;  %vm1283_vm12 = vmor %vm1281_vm10, %vm1282_vm7 }
0x1216   :  { %v1278_v13 = vsub.f32 1.0, %v1277_v11 }
0x1217   :  { %v1237_v15 = vmul.f32 %v1582_v23, %v1236_v12 }
0x1218   :  { %v1279_v16 = vmul.f32 %v1584_v26, %v1278_v13 }
0x1219   :  { %v1238_v19 = vadd.f32 %v1582_v23, %v1237_v15 }
0x121a   :  { %v1280_v22 = vadd.f32 %v1584_v26, %v1279_v16 }
0x121b   :  { %v1242_v29 = vsel %vm1241_vm9, %v1582_v23, %v1238_v19 }
0x121c   :  { %v1284_v32 = vsel %vm1283_vm12, %v1584_v26, %v1280_v22  ;;  %v1247_v35 = vsel %vm1244_vm13, %v1246_v30, %v1242_v29 }
0x121d   :  { %v1289_v39 = vsel %vm1286_vm14, %v1288_v33, %v1284_v32 }
0x127a   :  { %v1257_v34 = vpop.permute.xlu0 %1256 }
0x127b   :  { %v1259_v36 = vmul.f32 %v1257_v34, %v1247_v35  ;;  %v1299_v40 = vpop.permute.xlu1 %1298 }
0x127c   :  { %v1301_v41 = vmul.f32 %v1299_v40, %v1289_v39 }
0x127d   :  { %1261 = vrot.lane.b32.xlu0 %v1259_v36, %s1590_s13 }
0x127e   :  { %1303 = vrot.lane.b32.xlu2 %v1301_v41, %s1590_s13 }
0x1283   :  { %v1294_v43 = vpop.permute.xlu1 %1293 }
0x1284   :  { %v1296_v45 = vmul.f32 %v1294_v43, %v1289_v39 }
0x1286   :  { %217 = vrot.lane.b32.xlu2 %v1734_v31, %s1591_s17 }
0x128e   :  { %386 = vrot.lane.b32.xlu2 %v1800_v52, %s1592_s18 }
0x1296   :  { %705 = vrot.lane.b32.xlu2 %v1842_v7, %s1591_s17  ;;  %v1254_v7 = vmul.f32 %v1252_v42, %v1247_v35 }
0x129e   :  { %866 = vrot.lane.b32.xlu2 %v1870_v10, %s1591_s17 }
0x12a6   :  { %1031 = vrot.lane.b32.xlu2 %v1920_v38, %s1592_s18 }
0x12d8   :  { %v1304_v47 = vpop.permute.xlu2 %1303 }
0x12d9   :  { %v1306_v48 = vadd.f32 %v1304_v47, %v1296_v45 }
0x12db   :  { %1585 = vtanh.f32 %v1306_v48 }
0x12e0   :  { %v218_v49 = vpop.permute.xlu2 %217 }
0x12e1   :  { %v1586_v31 = vpop.eup %1585  ;;  %220 = vst.msk [vmem:[%s2051_s2] sm:$0x3] %vm14_vm1, %v218_v49 }
0x12e2   :  { %1309 = vrot.lane.b32.xlu1 %v1586_v31, %s1590_s13 }
0x12e8   :  { %v387_v52 = vpop.permute.xlu2 %386 }
0x12e9   :  { %1402 = vst.msk [vmem:[%s2051_s2 + $0xc] sm:$0x3] %vm199_vm11, %v387_v52 }
0x12ea   :  { %379 = vrot.lane.b32.xlu1 %v1770_v44, %s1591_s17  ;;  %v1189_v44 = vld.sshfl [vmem:[#allocation1] sm:$0xff pattern:$0x73625140] }
0x12ef   :  { %v1262_v10 = vpop.permute.xlu0 %1261 }
0x12f0   :  { %v1264_v38 = vadd.f32 %v1262_v10, %v1254_v7  ;;  %v706_v50 = vpop.permute.xlu2 %705 }
0x12f1   :  { %1417 = vst.msk [vmem:[%s2051_s2 + $0x6] sm:$0x3] %vm14_vm1, %v706_v50 }
0x12f2   :  { %1587 = vtanh.f32 %v1264_v38  ;;  %549 = vrot.lane.b32.xlu1 %v1836_v61, %s1592_s18 }
0x12f8   :  { %v1588_v51 = vpop.eup %1587 }
0x12f9   :  { %1267 = vrot.lane.b32.xlu0 %v1588_v51, %s1590_s13 }
0x12fa   :  { %1025 = vrot.lane.b32.xlu1 %v1898_v28, %s1591_s17 }
0x1301   :  { %223 = vrot.lane.b32.xlu0 %v1764_v37, %s1592_s18 }
0x1302   :  { %1190 = vrot.lane.b32.xlu1 %v1189_v44, %s1592_s18 }
0x1309   :  { %542 = vrot.lane.b32.xlu0 %v1806_v59, %s1591_s17 }
0x1311   :  { %712 = vrot.lane.b32.xlu0 %v1864_v5, %s1592_s18 }
0x1319   :  { %872 = vrot.lane.b32.xlu0 %v1892_v18, %s1592_s18  ;;  %v867_v18 = vpop.permute.xlu2 %866 }
0x1321   :  { %1184 = vrot.lane.b32.xlu0 %v1926_v46, %s1591_s17  ;;  %v1032_v58 = vpop.permute.xlu2 %1031 }
0x1354   :  { %v1310_v61 = vpop.permute.xlu1 %1309 }
0x1355   :  { %v1312_v54 = vmul.f32 %v1310_v61, %v1289_v39 }
0x135c   :  { %v380_v28 = vpop.permute.xlu1 %379 }
0x135d   :  { %1401 = vst.msk [vmem:[%s2051_s2 + $0x2] sm:$0x3] %vm14_vm1, %v380_v28 }
0x1364   :  { %v550_v37 = vpop.permute.xlu1 %549 }
0x1365   :  { %1410 = vst.msk [vmem:[%s2051_s2 + $0xa] sm:$0x3] %vm199_vm11, %v550_v37 }
0x136b   :  { %v1268_v59 = vpop.permute.xlu0 %1267 }
0x136c   :  { %v1270_v5 = vmul.f32 %v1268_v59, %v1247_v35  ;;  %v1026_v53 = vpop.permute.xlu1 %1025 }
0x136d   :  { %1433 = vst.msk [vmem:[%s2051_s2 + $0xa] sm:$0x3] %vm14_vm1, %v1026_v53 }
0x136e   :  { %1314 = vst [vmem:[#allocation1] ss:$4 sm:$0xff] %v1270_v5 }
0x1373   :  { %v224_v46 = vpop.permute.xlu0 %223 }
0x1374   :  { %1394 = vst.msk [vmem:[%s2051_s2 + $0xe] sm:$0x3] %vm199_vm11, %v224_v46  ;;  %v1191_v55 = vpop.permute.xlu1 %1190 }
0x1375   :  { %1442 = vst.msk [vmem:[%s2051_s2 + $0x2] sm:$0x3] %vm199_vm11, %v1191_v55  ;;  %v1315_v56 = vld.sshfl [vmem:[#allocation1] sm:$0xff pattern:$0x73625140] }
0x1376   :  { %1316 = vrot.lane.b32.xlu1 %v1315_v56, %s1591_s17  ;;  %1321 = vst [vmem:[#allocation1] ss:$4 sm:$0xff] %v1312_v54 }
0x137b   :  { %v543_v57 = vpop.permute.xlu0 %542 }
0x137c   :  { %1409 = vst.msk [vmem:[%s2051_s2 + $0x4] sm:$0x3] %vm14_vm1, %v543_v57 }
0x137d   :  { %1434 = vst.msk [vmem:[%s2051_s2 + $0x4] sm:$0x3] %vm199_vm11, %v1032_v58  ;;  %v1322_v60 = vld.sshfl [vmem:[#allocation1] sm:$0xff pattern:$0x73625140] }
0x137e   :  { %1323 = vrot.lane.b32.xlu2 %v1322_v60, %s1592_s18  ;;  %1328 = vst [vmem:[#allocation1] ss:$4 sm:$0xff] %v1264_v38 }
0x1383   :  { %v713_v62 = vpop.permute.xlu0 %712 }
0x1384   :  { %1418 = vst.msk [vmem:[%s2051_s2 + $0x8] sm:$0x3] %vm199_vm11, %v713_v62 }
0x1385   :  { %1425 = vst.msk [vmem:[%s2051_s2 + $0x8] sm:$0x3] %vm14_vm1, %v867_v18  ;;  %v1329_v63 = vld.sshfl [vmem:[#allocation1] sm:$0xff pattern:$0x73625140] }
0x1386   :  { %1330 = vrot.lane.b32.xlu0 %v1329_v63, %s1592_s18  ;;  %1335 = vst [vmem:[#allocation1] ss:$4 sm:$0xff] %v1306_v48 }
0x138b   :  { %v873_v0 = vpop.permute.xlu0 %872 }
0x138c   :  { %1426 = vst.msk [vmem:[%s2051_s2 + $0x6] sm:$0x3] %vm199_vm11, %v873_v0 }
0x138d   :  { %v1336_v1 = vld.sshfl [vmem:[#allocation1] sm:$0xff pattern:$0x73625140] }
0x138e   :  { %1337 = vrot.lane.b32.xlu1 %v1336_v1, %s1592_s18  ;;  %1341 = vst [vmem:[#allocation1] ss:$4 sm:$0xff] %v1270_v5 }
0x1393   :  { %v1185_v2 = vpop.permute.xlu0 %1184 }
0x1394   :  { %1441 = vst.msk [vmem:[%s2051_s2 + $0xc] sm:$0x3] %vm14_vm1, %v1185_v2 }
0x1395   :  { %v1342_v3 = vld.sshfl [vmem:[#allocation1] sm:$0xff pattern:$0x73625140] }
0x1396   :  { %1343 = vrot.lane.b32.xlu2 %v1342_v3, %s1591_s17  ;;  %1347 = vst [vmem:[#allocation1] ss:$4 sm:$0xff] %v1312_v54 }
0x139d   :  { %v1348_v8 = vld.sshfl [vmem:[#allocation1] sm:$0xff pattern:$0x73625140] }
0x139e   :  { %1349 = vrot.lane.b32.xlu0 %v1348_v8, %s1592_s18 }
0x13d8   :  { %v1324_v14 = vpop.permute.xlu2 %1323 }
0x13e8   :  { %v1317_v4 = vpop.permute.xlu1 %1316 }
0x13e9   :  { %1319 = vst.msk [vmem:[#allocation2] sm:$0x3] %vm14_vm1, %v1317_v4 }
0x13ea   :  { %1326 = vst.msk [vmem:[#allocation2] sm:$0x3] %vm199_vm11, %v1324_v14 }
0x13f0   :  { %v1344_v17 = vpop.permute.xlu2 %1343 }
0x13f1   :  { %1448 = vst.msk [vmem:[%s2051_s2 + $0xe] sm:$0x3] %vm14_vm1, %v1344_v17 }
0x13f8   :  { %v1331_v20 = vpop.permute.xlu0 %1330 }
0x13f9   :  { %1333 = vst.msk [vmem:[#allocation3] sm:$0x3] %vm14_vm1, %v1331_v20 }
0x1400   :  { %v1338_v6 = vpop.permute.xlu1 %1337 }
0x1401   :  { %1340 = vst.msk [vmem:[#allocation4] sm:$0x3] %vm14_vm1, %v1338_v6 }
0x1410   :  { %v1350_v23 = vpop.permute.xlu0 %1349 }
0x1411   :  { %1352 = vst.msk [vmem:[%s2051_s2] sm:$0x3] %vm199_vm11, %v1350_v23 }

</bundles_post_ra>
